<compile_context>
chip_gen: v6e
topology: v6e:2x2x1
jax: 0.10.0
libtpu: 0.0.40
codegen_flags: <defaults>
</compile_context>

<pallas_src>
import jax
import jax.numpy as jnp
from jax.experimental import pallas as pl
from jax.experimental.pallas import tpu as pltpu

_BN_EPS = 1e-5
_VMEM = pl.BlockSpec(memory_space=pltpu.MemorySpace.VMEM)


def _round_up(x, m):
    return ((x + m - 1) // m) * m


# ----------------------------- Pallas kernels ------------------------------ #

def _make_hnn_kernel(hp1, wp1, k2, pool2):
    """Fully fused per-batch-tile kernel:
       conv1 (im2col GEMM, BN folded) + ReLU + 2x2 pool -> h1 (stays in VMEM)
       conv2 (im2col built in-kernel, BN folded) + ReLU + 2x2 pool -> h2
       fc1 + ReLU -> fc2 + ReLU -> out  (logits, 10 padded to 128 lanes)."""
    n_sp = hp1 * wp1

    def kernel(p1_ref, w1_ref, b1_ref, w2_ref, b2_ref, w3_ref, b3_ref,
               w4_ref, b4_ref, w5_ref, b5_ref, o_ref):
        tb, m_all, k1 = p1_ref.shape            # (TB, 4*Hp*Wp, 32)
        cpad = w1_ref.shape[1]                  # 128
        ng = m_all // n_sp                      # 4 pool-window groups

        # ---- conv1: one GEMM over all pool groups / spatial sites, then the 2x2
        # max-pool as a VPU max over the group axis; bias(+folded BN shift)+ReLU.
        # (maxpool(relu(conv*s + t)) == relu(max(conv*s) + t): shift const, relu monotone)
        y1 = jnp.dot(p1_ref[...].reshape(tb * m_all, k1), w1_ref[...],
                     preferred_element_type=jnp.float32)
        y1 = y1.reshape(tb, m_all, cpad)
        m1 = y1[:, 0:n_sp, :]
        for g in range(1, ng):
            m1 = jnp.maximum(m1, y1[:, g * n_sp:(g + 1) * n_sp, :])
        h1 = jnp.maximum(m1 + b1_ref[...], 0.0)          # (TB, Hp*Wp, 128) row-major

        # ---- conv2 (k2 x k2, stride 1) + BN + ReLU + 2x2 pool (1x1 output):
        # im2col built directly from the VMEM-resident h1 (lane-dense 128-wide
        # pieces concatenated along lanes); all 4 pool positions merged into one dot.
        rows = []
        for dh in range(pool2):
            for dw in range(pool2):
                cols = [h1[:, (dh + kh) * wp1 + (dw + kw), :]
                        for kh in range(k2) for kw in range(k2)]
                rows.append(jnp.concatenate(cols, axis=-1))   # (TB, k2*k2*128)
        p2 = jnp.concatenate(rows, axis=0)                     # (4*TB, k2*k2*128)
        y2 = jnp.dot(p2, w2_ref[...], preferred_element_type=jnp.float32)
        m2 = y2[0:tb]
        for g in range(1, pool2 * pool2):
            m2 = jnp.maximum(m2, y2[g * tb:(g + 1) * tb])
        h2 = jnp.maximum(m2 + b2_ref[...], 0.0)                # (TB, 128)

        # ---- FC head (widths padded to lane multiples: 300->384, 10->128).
        h3 = jnp.maximum(
            jnp.dot(h2, w3_ref[...], preferred_element_type=jnp.float32) + b3_ref[...], 0.0)
        h4 = jnp.maximum(
            jnp.dot(h3, w4_ref[...], preferred_element_type=jnp.float32) + b4_ref[...], 0.0)
        o_ref[...] = jnp.dot(h4, w5_ref[...],
                             preferred_element_type=jnp.float32) + b5_ref[...]

    return kernel


def _hnn_fused(p1, w1f, b1f, w2f, b2f, w3, b3, w4, b4, w5, b5, *, tb, hp1, wp1):
    b_pad, m_all, k1 = p1.shape
    n_out = w5.shape[1]
    kernel = _make_hnn_kernel(hp1, wp1, k2=5, pool2=2)

    flops = 2 * b_pad * (m_all * k1 * 128 + 4 * w2f.shape[0] * 128
                         + w3.shape[0] * w3.shape[1]
                         + w4.shape[0] * w4.shape[1]
                         + w5.shape[0] * w5.shape[1])
    nbytes = 4 * (p1.size + w1f.size + b1f.size + w2f.size + b2f.size + w3.size
                  + b3.size + w4.size + b4.size + w5.size + b5.size + b_pad * n_out)

    return pl.pallas_call(
        kernel,
        out_shape=jax.ShapeDtypeStruct((b_pad, n_out), jnp.float32),
        grid=(b_pad // tb,),
        in_specs=[
            pl.BlockSpec((tb, m_all, k1), lambda i: (i, 0, 0)),
            pl.BlockSpec(w1f.shape, lambda i: (0, 0)),
            pl.BlockSpec(b1f.shape, lambda i: (0, 0)),
            pl.BlockSpec(w2f.shape, lambda i: (0, 0)),
            pl.BlockSpec(b2f.shape, lambda i: (0, 0)),
            pl.BlockSpec(w3.shape, lambda i: (0, 0)),
            pl.BlockSpec(b3.shape, lambda i: (0, 0)),
            pl.BlockSpec(w4.shape, lambda i: (0, 0)),
            pl.BlockSpec(b4.shape, lambda i: (0, 0)),
            pl.BlockSpec(w5.shape, lambda i: (0, 0)),
            pl.BlockSpec(b5.shape, lambda i: (0, 0)),
        ],
        out_specs=pl.BlockSpec((tb, n_out), lambda i: (i, 0)),
        compiler_params=pltpu.CompilerParams(dimension_semantics=("parallel",)),
        cost_estimate=pl.CostEstimate(flops=flops, transcendentals=0,
                                      bytes_accessed=nbytes),
    )(p1, w1f, b1f, w2f, b2f, w3, b3, w4, b4, w5, b5)


def _log_softmax_dim0_kernel(x_ref, o_ref):
    x = x_ref[...]
    mx = jnp.max(x, axis=0, keepdims=True)
    lse = mx + jnp.log(jnp.sum(jnp.exp(x - mx), axis=0, keepdims=True))
    o_ref[...] = x - lse


def _log_softmax_dim0(logits):
    # log_softmax over dim=0 couples every batch row, so this runs as one block.
    # TODO(synk): fine for up to tens of thousands of rows; very large batches would
    # need a two-pass (per-column max/sum-exp) reduction.
    b, n = logits.shape
    return pl.pallas_call(
        _log_softmax_dim0_kernel,
        out_shape=jax.ShapeDtypeStruct((b, n), jnp.float32),
        in_specs=[_VMEM],
        out_specs=_VMEM,
        cost_estimate=pl.CostEstimate(flops=4 * b * n, transcendentals=b * n,
                                      bytes_accessed=8 * b * n),
    )(logits)


# ------------------------------ JAX glue ----------------------------------- #

def _pooled_patches(x, *, k, stride, pool, k_pad):
    """im2col patches for a VALID conv(k, stride) followed by a pool x pool max-pool.
    x: (B, H, W, C) -> ((B, pool*pool, Hp*Wp, k_pad), Hp, Wp) where axis 1 holds the
    pool-window positions (g = dh*pool + dw), patch columns are ordered (kh, kw, cin)
    and zero-padded up to k_pad (pad fused into the concat — no extra jnp.pad pass)."""
    b, h, w, c = x.shape
    ho = (h - k) // stride + 1
    wo = (w - k) // stride + 1
    hp, wp = ho // pool, wo // pool
    taps = []
    for di in range(k):
        for dj in range(k):
            t = jax.lax.slice(
                x, (0, di, dj, 0),
                (b, di + (pool * hp - 1) * stride + 1,
                 dj + (pool * wp - 1) * stride + 1, c),
                (1, stride, stride, 1))                       # (B, pool*Hp, pool*Wp, C)
            t = t.reshape(b, hp, pool, wp, pool, c)
            t = jnp.transpose(t, (0, 2, 4, 1, 3, 5))          # (B, dh, dw, hp, wp, C)
            taps.append(t.reshape(b, pool * pool, hp * wp, c))
    kk = k * k * c
    assert k_pad >= kk
    if k_pad > kk:
        taps.append(jnp.zeros((b, pool * pool, hp * wp, k_pad - kk), x.dtype))
    return jnp.concatenate(taps, axis=-1), hp, wp


def _fold_bn(conv_bias, gamma, beta, mean, var):
    scale = gamma / jnp.sqrt(var + _BN_EPS)
    shift = (conv_bias - mean) * scale + beta
    return scale.reshape(1, -1), shift.reshape(1, -1)


def hnn_forward(params, x_nchw, tb=16):
    b = x_nchw.shape[0]
    x = jnp.transpose(x_nchw, (0, 2, 3, 1)).astype(jnp.float32)          # NHWC

    tb = max(1, min(tb, b))
    b_pad = _round_up(b, tb)
    if b_pad != b:
        # Pad the cheap raw input (3 KB/sample) instead of the patch tensor.
        x = jnp.pad(x, ((0, b_pad - b), (0, 0), (0, 0), (0, 0)))

    # conv1 im2col: (B, 4, 36, 32) with K already padded 25->32, then flattened to
    # (B, 144, 32) so the in-kernel leading-dim collapse is tile-exact (144 % 8 == 0).
    p1, hp1, wp1 = _pooled_patches(x, k=5, stride=2, pool=2, k_pad=32)
    assert (hp1, wp1) == (6, 6), "fc1 in_features=48 implies a 28x28-like input"
    p1 = p1.reshape(b_pad, 4 * hp1 * wp1, 32)

    # conv1 weights: BN scale folded, K 25->32, Cout 24->128 (lane dense).
    w1 = jnp.transpose(params["w1"], (2, 3, 1, 0)).reshape(25, 24)       # (kh,kw,cin,cout)
    s1, t1 = _fold_bn(params["b1"], params["bn1_gamma"], params["bn1_beta"],
                      params["bn1_mean"], params["bn1_var"])
    w1f = jnp.pad(w1 * s1, ((0, 7), (0, 104)))                           # (32, 128)
    b1f = jnp.pad(t1, ((0, 0), (0, 104)))                                # (1, 128)

    # conv2 weights: BN scale folded, rows ordered (kh, kw, cin_pad) with cin 24->128
    # (so the in-kernel im2col stays 128-lane aligned) and cout 48->128.
    s2, t2 = _fold_bn(params["b2"], params["bn2_gamma"], params["bn2_beta"],
                      params["bn2_mean"], params["bn2_var"])
    w2 = jnp.transpose(params["w2"], (2, 3, 1, 0)) * s2.reshape(1, 1, 1, 48)
    w2f = jnp.pad(w2, ((0, 0), (0, 0), (0, 104), (0, 80))).reshape(25 * 128, 128)
    b2f = jnp.pad(t2, ((0, 0), (0, 80)))                                 # (1, 128)

    # FC weights padded to lane multiples (300->384, 10->128).
    w3 = jnp.pad(params["fc1_w"], ((0, 80), (0, 84)))                    # (128, 384)
    b3 = jnp.pad(params["fc1_b"].reshape(1, -1), ((0, 0), (0, 84)))
    w4 = jnp.pad(params["fc2_w"], ((0, 84), (0, 84)))                    # (384, 384)
    b4 = jnp.pad(params["fc2_b"].reshape(1, -1), ((0, 0), (0, 84)))
    w5 = jnp.pad(params["out_w"], ((0, 84), (0, 118)))                   # (384, 128)
    b5 = jnp.pad(params["out_b"].reshape(1, -1), ((0, 0), (0, 118)))

    logits = _hnn_fused(p1, w1f, b1f, w2f, b2f, w3, b3, w4, b4, w5, b5,
                        tb=tb, hp1=hp1, wp1=wp1)                         # (B_pad, 128)
    if b_pad != b:
        logits = logits[:b]          # drop padded rows before logsumexp over dim=0
    return _log_softmax_dim0(logits)[:, :10]


# --------------------------- pure-JAX reference ----------------------------- #

def hnn_reference(params, x_nchw):
    hi = jax.lax.Precision.HIGHEST
    b = x_nchw.shape[0]
    x = jnp.transpose(x_nchw, (0, 2, 3, 1)).astype(jnp.float32)

    def conv_bn_relu_pool(x, w_oihw, bias, g, be, mu, var, stride):
        w = jnp.transpose(w_oihw, (2, 3, 1, 0))                          # HWIO
        y = jax.lax.conv_general_dilated(
            x, w, (stride, stride), "VALID",
            dimension_numbers=("NHWC", "HWIO", "NHWC"), precision=hi)
        s = g / jnp.sqrt(var + _BN_EPS)
        z = jnp.maximum((y + bias - mu) * s + be, 0.0)
        b_, h_, w_, c_ = z.shape
        z = z[:, :h_ // 2 * 2, :w_ // 2 * 2, :]
        return z.reshape(b_, h_ // 2, 2, w_ // 2, 2, c_).max(axis=(2, 4))

    h = conv_bn_relu_pool(x, params["w1"], params["b1"], params["bn1_gamma"],
                          params["bn1_beta"], params["bn1_mean"], params["bn1_var"], 2)
    h = conv_bn_relu_pool(h, params["w2"], params["b2"], params["bn2_gamma"],
                          params["bn2_beta"], params["bn2_mean"], params["bn2_var"], 1)
    h = h.reshape(b, -1)
    h = jnp.maximum(jnp.dot(h, params["fc1_w"], precision=hi) + params["fc1_b"], 0.0)
    h = jnp.maximum(jnp.dot(h, params["fc2_w"], precision=hi) + params["fc2_b"], 0.0)
    logits = jnp.dot(h, params["out_w"], precision=hi) + params["out_b"]
    mx = jnp.max(logits, axis=0, keepdims=True)
    lse = mx + jnp.log(jnp.sum(jnp.exp(logits - mx), axis=0, keepdims=True))
    return logits - lse


# ------------------------------- params ------------------------------------ #

def init_params(key):
    ks = jax.random.split(key, 18)

    def nrm(k, shape, scale):
        return scale * jax.random.normal(k, shape, dtype=jnp.float32)

    p = {}
    # conv1: Conv2d(1, 24, 5, stride=2) + BatchNorm2d(24)
    p["w1"] = nrm(ks[0], (24, 1, 5, 5), 0.2)        # PyTorch (out, in, kh, kw)
    p["b1"] = nrm(ks[1], (24,), 0.1)
    p["bn1_gamma"] = 1.0 + nrm(ks[2], (24,), 0.1)
    p["bn1_beta"] = nrm(ks[3], (24,), 0.1)
    p["bn1_mean"] = nrm(ks[4], (24,), 0.1)
    p["bn1_var"] = 1.0 + jnp.abs(nrm(ks[5], (24,), 0.1))
    # conv2: Conv2d(24, 48, 5) + BatchNorm2d(48)
    p["w2"] = nrm(ks[6], (48, 24, 5, 5), 0.05)
    p["b2"] = nrm(ks[7], (48,), 0.1)
    p["bn2_gamma"] = 1.0 + nrm(ks[8], (48,), 0.1)
    p["bn2_beta"] = nrm(ks[9], (48,), 0.1)
    p["bn2_mean"] = nrm(ks[10], (48,), 0.1)
    p["bn2_var"] = 1.0 + jnp.abs(nrm(ks[11], (48,), 0.1))
    # fully connected (stored (in, out); equivalent to torch weight.T)
    p["fc1_w"] = nrm(ks[12], (48, 300), 0.1)
    p["fc1_b"] = nrm(ks[13], (300,), 0.1)
    p["fc2_w"] = nrm(ks[14], (300, 300), 0.05)
    p["fc2_b"] = nrm(ks[15], (300,), 0.1)
    p["out_w"] = nrm(ks[16], (300, 10), 0.1)
    p["out_b"] = nrm(ks[17], (10,), 0.1)
    return p


if __name__ == "__main__":
    key = jax.random.PRNGKey(0)
    pkey, xkey = jax.random.split(key)
    params = init_params(pkey)

    # fc1 in_features=48 forces a 1x1 spatial map after conv2's pool, i.e. a
    # 28x28 (MNIST-like) single-channel input.
    x = jax.random.normal(xkey, (2, 1, 28, 28), dtype=jnp.float32)

    fwd = jax.jit(hnn_forward)
    out = jax.block_until_ready(fwd(params, x))
    ref = hnn_reference(params, x)

    assert out.shape == (2, 10), out.shape
    max_err = float(jnp.max(jnp.abs(out - ref)))
    assert jnp.allclose(out, ref, atol=2e-3, rtol=2e-3), max_err
    print("KERNEL_OK")
</pallas_src>

<mosaic_0001>
module attributes {stable_mosaic.version = 11 : i64} {
  func.func @_log_softmax_dim0_kernel(%arg0: memref<2x128xf32, #tpu.memory_space<vmem>>, %arg1: memref<2x128xf32, #tpu.memory_space<vmem>>) attributes {dimension_semantics = [], scalar_prefetch = 0 : i64, scratch_operands = 0 : i64, tpu.core_type = #tpu.core_type<tc>} {
    %c0 = arith.constant 0 : index
    %c0_0 = arith.constant 0 : index
    %0 = vector.load %arg0[%c0, %c0_0] : memref<2x128xf32, #tpu.memory_space<vmem>>, vector<2x128xf32>
    %cst = arith.constant dense<0xFF800000> : vector<128xf32>
    %1 = vector.multi_reduction <maximumf>, %0, %cst [0] : vector<2x128xf32> to vector<128xf32>
    %2 = vector.shape_cast %1 : vector<128xf32> to vector<1x128xf32>
    %3 = vector.broadcast %2 : vector<1x128xf32> to vector<2x128xf32>
    %4 = arith.subf %0, %3 : vector<2x128xf32>
    %5 = math.exp %4 : vector<2x128xf32>
    %cst_1 = arith.constant dense<0.000000e+00> : vector<128xf32>
    %6 = vector.multi_reduction <add>, %5, %cst_1 [0] : vector<2x128xf32> to vector<128xf32>
    %7 = vector.shape_cast %6 : vector<128xf32> to vector<1x128xf32>
    %8 = math.log %7 : vector<1x128xf32>
    %9 = arith.addf %2, %8 : vector<1x128xf32>
    %10 = vector.broadcast %9 : vector<1x128xf32> to vector<2x128xf32>
    %11 = arith.subf %0, %10 : vector<2x128xf32>
    %c0_2 = arith.constant 0 : index
    %c0_3 = arith.constant 0 : index
    %12 = vector.load %arg1[%c0_2, %c0_3] : memref<2x128xf32, #tpu.memory_space<vmem>>, vector<2x128xf32>
    tpu.vector_store %arg1[%c0_2, %c0_3], %11 {strides = array<i32>} : memref<2x128xf32, #tpu.memory_space<vmem>>, vector<2x128xf32>,
    return
  }
}

module attributes {stable_mosaic.version = 11 : i64} {
  func.func @kernel(%arg0: i32, %arg1: memref<2x144x32xf32, #tpu.memory_space<vmem>>, %arg2: memref<32x128xf32, #tpu.memory_space<vmem>>, %arg3: memref<1x128xf32, #tpu.memory_space<vmem>>, %arg4: memref<3200x128xf32, #tpu.memory_space<vmem>>, %arg5: memref<1x128xf32, #tpu.memory_space<vmem>>, %arg6: memref<128x384xf32, #tpu.memory_space<vmem>>, %arg7: memref<1x384xf32, #tpu.memory_space<vmem>>, %arg8: memref<384x384xf32, #tpu.memory_space<vmem>>, %arg9: memref<1x384xf32, #tpu.memory_space<vmem>>, %arg10: memref<384x128xf32, #tpu.memory_space<vmem>>, %arg11: memref<1x128xf32, #tpu.memory_space<vmem>>, %arg12: memref<2x128xf32, #tpu.memory_space<vmem>>) attributes {dimension_semantics = [#tpu.dimension_semantics<parallel>], iteration_bounds = array<i64: 1>, scalar_prefetch = 0 : i64, scratch_operands = 0 : i64, tpu.core_type = #tpu.core_type<tc>, window_params = [{transform_indices = @transform_0, window_bounds = array<i64: 2, 144, 32>}, {pipeline_mode = #tpu.pipeline_mode<synchronous>, transform_indices = @transform_1, window_bounds = array<i64: 32, 128>}, {pipeline_mode = #tpu.pipeline_mode<synchronous>, transform_indices = @transform_2, window_bounds = array<i64: 1, 128>}, {pipeline_mode = #tpu.pipeline_mode<synchronous>, transform_indices = @transform_3, window_bounds = array<i64: 3200, 128>}, {pipeline_mode = #tpu.pipeline_mode<synchronous>, transform_indices = @transform_4, window_bounds = array<i64: 1, 128>}, {pipeline_mode = #tpu.pipeline_mode<synchronous>, transform_indices = @transform_5, window_bounds = array<i64: 128, 384>}, {pipeline_mode = #tpu.pipeline_mode<synchronous>, transform_indices = @transform_6, window_bounds = array<i64: 1, 384>}, {pipeline_mode = #tpu.pipeline_mode<synchronous>, transform_indices = @transform_7, window_bounds = array<i64: 384, 384>}, {pipeline_mode = #tpu.pipeline_mode<synchronous>, transform_indices = @transform_8, window_bounds = array<i64: 1, 384>}, {pipeline_mode = #tpu.pipeline_mode<synchronous>, transform_indices = @transform_9, window_bounds = array<i64: 384, 128>}, {pipeline_mode = #tpu.pipeline_mode<synchronous>, transform_indices = @transform_10, window_bounds = array<i64: 1, 128>}, {transform_indices = @transform_11, window_bounds = array<i64: 2, 128>}]} {
    %c0 = arith.constant 0 : index
    %c0_0 = arith.constant 0 : index
    %c0_1 = arith.constant 0 : index
    %0 = vector.load %arg1[%c0, %c0_0, %c0_1] : memref<2x144x32xf32, #tpu.memory_space<vmem>>, vector<2x144x32xf32>
    %1 = vector.shape_cast %0 : vector<2x144x32xf32> to vector<288x32xf32>
    %c0_2 = arith.constant 0 : index
    %c0_3 = arith.constant 0 : index
    %2 = vector.load %arg2[%c0_2, %c0_3] : memref<32x128xf32, #tpu.memory_space<vmem>>, vector<32x128xf32>
    %cst = arith.constant dense<0.000000e+00> : vector<288x128xf32>
    %3 = tpu.matmul %1, %2, %cst {dimension_numbers = #tpu.dot_dimension_numbers<[1], [0], [0], [1], [0, 0, 1, 1], [], []>} : vector<288x32xf32>, vector<32x128xf32>, vector<288x128xf32> -> vector<288x128xf32>
    %4 = vector.shape_cast %3 : vector<288x128xf32> to vector<2x144x128xf32>
    %5 = vector.extract_strided_slice %4 {offsets = [0, 0, 0], sizes = [2, 36, 128], strides = [1, 1, 1]} : vector<2x144x128xf32> to vector<2x36x128xf32>
    %6 = vector.extract_strided_slice %4 {offsets = [0, 36, 0], sizes = [2, 36, 128], strides = [1, 1, 1]} : vector<2x144x128xf32> to vector<2x36x128xf32>
    %7 = arith.maximumf %5, %6 : vector<2x36x128xf32>
    %8 = vector.extract_strided_slice %4 {offsets = [0, 72, 0], sizes = [2, 36, 128], strides = [1, 1, 1]} : vector<2x144x128xf32> to vector<2x36x128xf32>
    %9 = arith.maximumf %7, %8 : vector<2x36x128xf32>
    %10 = vector.extract_strided_slice %4 {offsets = [0, 108, 0], sizes = [2, 36, 128], strides = [1, 1, 1]} : vector<2x144x128xf32> to vector<2x36x128xf32>
    %11 = arith.maximumf %9, %10 : vector<2x36x128xf32>
    %c0_4 = arith.constant 0 : index
    %c0_5 = arith.constant 0 : index
    %12 = vector.load %arg3[%c0_4, %c0_5] : memref<1x128xf32, #tpu.memory_space<vmem>>, vector<1x128xf32>
    %13 = vector.shape_cast %12 : vector<1x128xf32> to vector<1x1x128xf32>
    %14 = vector.broadcast %13 : vector<1x1x128xf32> to vector<2x36x128xf32>
    %15 = arith.addf %11, %14 : vector<2x36x128xf32>
    %cst_6 = arith.constant 0.000000e+00 : f32
    %16 = vector.broadcast %cst_6 : f32 to vector<2x36x128xf32>
    %17 = arith.maximumf %15, %16 : vector<2x36x128xf32>
    %18 = vector.extract_strided_slice %17 {offsets = [0, 0, 0], sizes = [2, 1, 128], strides = [1, 1, 1]} : vector<2x36x128xf32> to vector<2x1x128xf32>
    %19 = vector.shape_cast %18 : vector<2x1x128xf32> to vector<2x128xf32>
    %20 = vector.extract_strided_slice %17 {offsets = [0, 1, 0], sizes = [2, 1, 128], strides = [1, 1, 1]} : vector<2x36x128xf32> to vector<2x1x128xf32>
    %21 = vector.shape_cast %20 : vector<2x1x128xf32> to vector<2x128xf32>
    %22 = vector.extract_strided_slice %17 {offsets = [0, 2, 0], sizes = [2, 1, 128], strides = [1, 1, 1]} : vector<2x36x128xf32> to vector<2x1x128xf32>
    %23 = vector.shape_cast %22 : vector<2x1x128xf32> to vector<2x128xf32>
    %24 = vector.extract_strided_slice %17 {offsets = [0, 3, 0], sizes = [2, 1, 128], strides = [1, 1, 1]} : vector<2x36x128xf32> to vector<2x1x128xf32>
    %25 = vector.shape_cast %24 : vector<2x1x128xf32> to vector<2x128xf32>
    %26 = vector.extract_strided_slice %17 {offsets = [0, 4, 0], sizes = [2, 1, 128], strides = [1, 1, 1]} : vector<2x36x128xf32> to vector<2x1x128xf32>
    %27 = vector.shape_cast %26 : vector<2x1x128xf32> to vector<2x128xf32>
    %28 = vector.extract_strided_slice %17 {offsets = [0, 6, 0], sizes = [2, 1, 128], strides = [1, 1, 1]} : vector<2x36x128xf32> to vector<2x1x128xf32>
    %29 = vector.shape_cast %28 : vector<2x1x128xf32> to vector<2x128xf32>
    %30 = vector.extract_strided_slice %17 {offsets = [0, 7, 0], sizes = [2, 1, 128], strides = [1, 1, 1]} : vector<2x36x128xf32> to vector<2x1x128xf32>
    %31 = vector.shape_cast %30 : vector<2x1x128xf32> to vector<2x128xf32>
    %32 = vector.extract_strided_slice %17 {offsets = [0, 8, 0], sizes = [2, 1, 128], strides = [1, 1, 1]} : vector<2x36x128xf32> to vector<2x1x128xf32>
    %33 = vector.shape_cast %32 : vector<2x1x128xf32> to vector<2x128xf32>
    %34 = vector.extract_strided_slice %17 {offsets = [0, 9, 0], sizes = [2, 1, 128], strides = [1, 1, 1]} : vector<2x36x128xf32> to vector<2x1x128xf32>
    %35 = vector.shape_cast %34 : vector<2x1x128xf32> to vector<2x128xf32>
    %36 = vector.extract_strided_slice %17 {offsets = [0, 10, 0], sizes = [2, 1, 128], strides = [1, 1, 1]} : vector<2x36x128xf32> to vector<2x1x128xf32>
    %37 = vector.shape_cast %36 : vector<2x1x128xf32> to vector<2x128xf32>
    %38 = vector.extract_strided_slice %17 {offsets = [0, 12, 0], sizes = [2, 1, 128], strides = [1, 1, 1]} : vector<2x36x128xf32> to vector<2x1x128xf32>
    %39 = vector.shape_cast %38 : vector<2x1x128xf32> to vector<2x128xf32>
    %40 = vector.extract_strided_slice %17 {offsets = [0, 13, 0], sizes = [2, 1, 128], strides = [1, 1, 1]} : vector<2x36x128xf32> to vector<2x1x128xf32>
    %41 = vector.shape_cast %40 : vector<2x1x128xf32> to vector<2x128xf32>
    %42 = vector.extract_strided_slice %17 {offsets = [0, 14, 0], sizes = [2, 1, 128], strides = [1, 1, 1]} : vector<2x36x128xf32> to vector<2x1x128xf32>
    %43 = vector.shape_cast %42 : vector<2x1x128xf32> to vector<2x128xf32>
    %44 = vector.extract_strided_slice %17 {offsets = [0, 15, 0], sizes = [2, 1, 128], strides = [1, 1, 1]} : vector<2x36x128xf32> to vector<2x1x128xf32>
    %45 = vector.shape_cast %44 : vector<2x1x128xf32> to vector<2x128xf32>
    %46 = vector.extract_strided_slice %17 {offsets = [0, 16, 0], sizes = [2, 1, 128], strides = [1, 1, 1]} : vector<2x36x128xf32> to vector<2x1x128xf32>
    %47 = vector.shape_cast %46 : vector<2x1x128xf32> to vector<2x128xf32>
    %48 = vector.extract_strided_slice %17 {offsets = [0, 18, 0], sizes = [2, 1, 128], strides = [1, 1, 1]} : vector<2x36x128xf32> to vector<2x1x128xf32>
    %49 = vector.shape_cast %48 : vector<2x1x128xf32> to vector<2x128xf32>
    %50 = vector.extract_strided_slice %17 {offsets = [0, 19, 0], sizes = [2, 1, 128], strides = [1, 1, 1]} : vector<2x36x128xf32> to vector<2x1x128xf32>
    %51 = vector.shape_cast %50 : vector<2x1x128xf32> to vector<2x128xf32>
    %52 = vector.extract_strided_slice %17 {offsets = [0, 20, 0], sizes = [2, 1, 128], strides = [1, 1, 1]} : vector<2x36x128xf32> to vector<2x1x128xf32>
    %53 = vector.shape_cast %52 : vector<2x1x128xf32> to vector<2x128xf32>
    %54 = vector.extract_strided_slice %17 {offsets = [0, 21, 0], sizes = [2, 1, 128], strides = [1, 1, 1]} : vector<2x36x128xf32> to vector<2x1x128xf32>
    %55 = vector.shape_cast %54 : vector<2x1x128xf32> to vector<2x128xf32>
    %56 = vector.extract_strided_slice %17 {offsets = [0, 22, 0], sizes = [2, 1, 128], strides = [1, 1, 1]} : vector<2x36x128xf32> to vector<2x1x128xf32>
    %57 = vector.shape_cast %56 : vector<2x1x128xf32> to vector<2x128xf32>
    %58 = vector.extract_strided_slice %17 {offsets = [0, 24, 0], sizes = [2, 1, 128], strides = [1, 1, 1]} : vector<2x36x128xf32> to vector<2x1x128xf32>
    %59 = vector.shape_cast %58 : vector<2x1x128xf32> to vector<2x128xf32>
    %60 = vector.extract_strided_slice %17 {offsets = [0, 25, 0], sizes = [2, 1, 128], strides = [1, 1, 1]} : vector<2x36x128xf32> to vector<2x1x128xf32>
    %61 = vector.shape_cast %60 : vector<2x1x128xf32> to vector<2x128xf32>
    %62 = vector.extract_strided_slice %17 {offsets = [0, 26, 0], sizes = [2, 1, 128], strides = [1, 1, 1]} : vector<2x36x128xf32> to vector<2x1x128xf32>
    %63 = vector.shape_cast %62 : vector<2x1x128xf32> to vector<2x128xf32>
    %64 = vector.extract_strided_slice %17 {offsets = [0, 27, 0], sizes = [2, 1, 128], strides = [1, 1, 1]} : vector<2x36x128xf32> to vector<2x1x128xf32>
    %65 = vector.shape_cast %64 : vector<2x1x128xf32> to vector<2x128xf32>
    %66 = vector.extract_strided_slice %17 {offsets = [0, 28, 0], sizes = [2, 1, 128], strides = [1, 1, 1]} : vector<2x36x128xf32> to vector<2x1x128xf32>
    %67 = vector.shape_cast %66 : vector<2x1x128xf32> to vector<2x128xf32>
    %68 = tpu.concatenate %19, %21, %23, %25, %27, %29, %31, %33, %35, %37, %39, %41, %43, %45, %47, %49 in 1 : vector<2x128xf32>, vector<2x128xf32>, vector<2x128xf32>, vector<2x128xf32>, vector<2x128xf32>, vector<2x128xf32>, vector<2x128xf32>, vector<2x128xf32>, vector<2x128xf32>, vector<2x128xf32>, vector<2x128xf32>, vector<2x128xf32>, vector<2x128xf32>, vector<2x128xf32>, vector<2x128xf32>, vector<2x128xf32> -> vector<2x2048xf32>
    %69 = tpu.concatenate %51, %53, %55, %57, %59, %61, %63, %65, %67 in 1 : vector<2x128xf32>, vector<2x128xf32>, vector<2x128xf32>, vector<2x128xf32>, vector<2x128xf32>, vector<2x128xf32>, vector<2x128xf32>, vector<2x128xf32>, vector<2x128xf32> -> vector<2x1152xf32>
    %70 = tpu.concatenate %68, %69 in 1 : vector<2x2048xf32>, vector<2x1152xf32> -> vector<2x3200xf32>
    %71 = vector.extract_strided_slice %17 {offsets = [0, 1, 0], sizes = [2, 1, 128], strides = [1, 1, 1]} : vector<2x36x128xf32> to vector<2x1x128xf32>
    %72 = vector.shape_cast %71 : vector<2x1x128xf32> to vector<2x128xf32>
    %73 = vector.extract_strided_slice %17 {offsets = [0, 2, 0], sizes = [2, 1, 128], strides = [1, 1, 1]} : vector<2x36x128xf32> to vector<2x1x128xf32>
    %74 = vector.shape_cast %73 : vector<2x1x128xf32> to vector<2x128xf32>
    %75 = vector.extract_strided_slice %17 {offsets = [0, 3, 0], sizes = [2, 1, 128], strides = [1, 1, 1]} : vector<2x36x128xf32> to vector<2x1x128xf32>
    %76 = vector.shape_cast %75 : vector<2x1x128xf32> to vector<2x128xf32>
    %77 = vector.extract_strided_slice %17 {offsets = [0, 4, 0], sizes = [2, 1, 128], strides = [1, 1, 1]} : vector<2x36x128xf32> to vector<2x1x128xf32>
    %78 = vector.shape_cast %77 : vector<2x1x128xf32> to vector<2x128xf32>
    %79 = vector.extract_strided_slice %17 {offsets = [0, 5, 0], sizes = [2, 1, 128], strides = [1, 1, 1]} : vector<2x36x128xf32> to vector<2x1x128xf32>
    %80 = vector.shape_cast %79 : vector<2x1x128xf32> to vector<2x128xf32>
    %81 = vector.extract_strided_slice %17 {offsets = [0, 7, 0], sizes = [2, 1, 128], strides = [1, 1, 1]} : vector<2x36x128xf32> to vector<2x1x128xf32>
    %82 = vector.shape_cast %81 : vector<2x1x128xf32> to vector<2x128xf32>
    %83 = vector.extract_strided_slice %17 {offsets = [0, 8, 0], sizes = [2, 1, 128], strides = [1, 1, 1]} : vector<2x36x128xf32> to vector<2x1x128xf32>
    %84 = vector.shape_cast %83 : vector<2x1x128xf32> to vector<2x128xf32>
    %85 = vector.extract_strided_slice %17 {offsets = [0, 9, 0], sizes = [2, 1, 128], strides = [1, 1, 1]} : vector<2x36x128xf32> to vector<2x1x128xf32>
    %86 = vector.shape_cast %85 : vector<2x1x128xf32> to vector<2x128xf32>
    %87 = vector.extract_strided_slice %17 {offsets = [0, 10, 0], sizes = [2, 1, 128], strides = [1, 1, 1]} : vector<2x36x128xf32> to vector<2x1x128xf32>
    %88 = vector.shape_cast %87 : vector<2x1x128xf32> to vector<2x128xf32>
    %89 = vector.extract_strided_slice %17 {offsets = [0, 11, 0], sizes = [2, 1, 128], strides = [1, 1, 1]} : vector<2x36x128xf32> to vector<2x1x128xf32>
    %90 = vector.shape_cast %89 : vector<2x1x128xf32> to vector<2x128xf32>
    %91 = vector.extract_strided_slice %17 {offsets = [0, 13, 0], sizes = [2, 1, 128], strides = [1, 1, 1]} : vector<2x36x128xf32> to vector<2x1x128xf32>
    %92 = vector.shape_cast %91 : vector<2x1x128xf32> to vector<2x128xf32>
    %93 = vector.extract_strided_slice %17 {offsets = [0, 14, 0], sizes = [2, 1, 128], strides = [1, 1, 1]} : vector<2x36x128xf32> to vector<2x1x128xf32>
    %94 = vector.shape_cast %93 : vector<2x1x128xf32> to vector<2x128xf32>
    %95 = vector.extract_strided_slice %17 {offsets = [0, 15, 0], sizes = [2, 1, 128], strides = [1, 1, 1]} : vector<2x36x128xf32> to vector<2x1x128xf32>
    %96 = vector.shape_cast %95 : vector<2x1x128xf32> to vector<2x128xf32>
    %97 = vector.extract_strided_slice %17 {offsets = [0, 16, 0], sizes = [2, 1, 128], strides = [1, 1, 1]} : vector<2x36x128xf32> to vector<2x1x128xf32>
    %98 = vector.shape_cast %97 : vector<2x1x128xf32> to vector<2x128xf32>
    %99 = vector.extract_strided_slice %17 {offsets = [0, 17, 0], sizes = [2, 1, 128], strides = [1, 1, 1]} : vector<2x36x128xf32> to vector<2x1x128xf32>
    %100 = vector.shape_cast %99 : vector<2x1x128xf32> to vector<2x128xf32>
    %101 = vector.extract_strided_slice %17 {offsets = [0, 19, 0], sizes = [2, 1, 128], strides = [1, 1, 1]} : vector<2x36x128xf32> to vector<2x1x128xf32>
    %102 = vector.shape_cast %101 : vector<2x1x128xf32> to vector<2x128xf32>
    %103 = vector.extract_strided_slice %17 {offsets = [0, 20, 0], sizes = [2, 1, 128], strides = [1, 1, 1]} : vector<2x36x128xf32> to vector<2x1x128xf32>
    %104 = vector.shape_cast %103 : vector<2x1x128xf32> to vector<2x128xf32>
    %105 = vector.extract_strided_slice %17 {offsets = [0, 21, 0], sizes = [2, 1, 128], strides = [1, 1, 1]} : vector<2x36x128xf32> to vector<2x1x128xf32>
    %106 = vector.shape_cast %105 : vector<2x1x128xf32> to vector<2x128xf32>
    %107 = vector.extract_strided_slice %17 {offsets = [0, 22, 0], sizes = [2, 1, 128], strides = [1, 1, 1]} : vector<2x36x128xf32> to vector<2x1x128xf32>
    %108 = vector.shape_cast %107 : vector<2x1x128xf32> to vector<2x128xf32>
    %109 = vector.extract_strided_slice %17 {offsets = [0, 23, 0], sizes = [2, 1, 128], strides = [1, 1, 1]} : vector<2x36x128xf32> to vector<2x1x128xf32>
    %110 = vector.shape_cast %109 : vector<2x1x128xf32> to vector<2x128xf32>
    %111 = vector.extract_strided_slice %17 {offsets = [0, 25, 0], sizes = [2, 1, 128], strides = [1, 1, 1]} : vector<2x36x128xf32> to vector<2x1x128xf32>
    %112 = vector.shape_cast %111 : vector<2x1x128xf32> to vector<2x128xf32>
    %113 = vector.extract_strided_slice %17 {offsets = [0, 26, 0], sizes = [2, 1, 128], strides = [1, 1, 1]} : vector<2x36x128xf32> to vector<2x1x128xf32>
    %114 = vector.shape_cast %113 : vector<2x1x128xf32> to vector<2x128xf32>
    %115 = vector.extract_strided_slice %17 {offsets = [0, 27, 0], sizes = [2, 1, 128], strides = [1, 1, 1]} : vector<2x36x128xf32> to vector<2x1x128xf32>
    %116 = vector.shape_cast %115 : vector<2x1x128xf32> to vector<2x128xf32>
    %117 = vector.extract_strided_slice %17 {offsets = [0, 28, 0], sizes = [2, 1, 128], strides = [1, 1, 1]} : vector<2x36x128xf32> to vector<2x1x128xf32>
    %118 = vector.shape_cast %117 : vector<2x1x128xf32> to vector<2x128xf32>
    %119 = vector.extract_strided_slice %17 {offsets = [0, 29, 0], sizes = [2, 1, 128], strides = [1, 1, 1]} : vector<2x36x128xf32> to vector<2x1x128xf32>
    %120 = vector.shape_cast %119 : vector<2x1x128xf32> to vector<2x128xf32>
    %121 = tpu.concatenate %72, %74, %76, %78, %80, %82, %84, %86, %88, %90, %92, %94, %96, %98, %100, %102 in 1 : vector<2x128xf32>, vector<2x128xf32>, vector<2x128xf32>, vector<2x128xf32>, vector<2x128xf32>, vector<2x128xf32>, vector<2x128xf32>, vector<2x128xf32>, vector<2x128xf32>, vector<2x128xf32>, vector<2x128xf32>, vector<2x128xf32>, vector<2x128xf32>, vector<2x128xf32>, vector<2x128xf32>, vector<2x128xf32> -> vector<2x2048xf32>
    %122 = tpu.concatenate %104, %106, %108, %110, %112, %114, %116, %118, %120 in 1 : vector<2x128xf32>, vector<2x128xf32>, vector<2x128xf32>, vector<2x128xf32>, vector<2x128xf32>, vector<2x128xf32>, vector<2x128xf32>, vector<2x128xf32>, vector<2x128xf32> -> vector<2x1152xf32>
    %123 = tpu.concatenate %121, %122 in 1 : vector<2x2048xf32>, vector<2x1152xf32> -> vector<2x3200xf32>
    %124 = vector.extract_strided_slice %17 {offsets = [0, 6, 0], sizes = [2, 1, 128], strides = [1, 1, 1]} : vector<2x36x128xf32> to vector<2x1x128xf32>
    %125 = vector.shape_cast %124 : vector<2x1x128xf32> to vector<2x128xf32>
    %126 = vector.extract_strided_slice %17 {offsets = [0, 7, 0], sizes = [2, 1, 128], strides = [1, 1, 1]} : vector<2x36x128xf32> to vector<2x1x128xf32>
    %127 = vector.shape_cast %126 : vector<2x1x128xf32> to vector<2x128xf32>
    %128 = vector.extract_strided_slice %17 {offsets = [0, 8, 0], sizes = [2, 1, 128], strides = [1, 1, 1]} : vector<2x36x128xf32> to vector<2x1x128xf32>
    %129 = vector.shape_cast %128 : vector<2x1x128xf32> to vector<2x128xf32>
    %130 = vector.extract_strided_slice %17 {offsets = [0, 9, 0], sizes = [2, 1, 128], strides = [1, 1, 1]} : vector<2x36x128xf32> to vector<2x1x128xf32>
    %131 = vector.shape_cast %130 : vector<2x1x128xf32> to vector<2x128xf32>
    %132 = vector.extract_strided_slice %17 {offsets = [0, 10, 0], sizes = [2, 1, 128], strides = [1, 1, 1]} : vector<2x36x128xf32> to vector<2x1x128xf32>
    %133 = vector.shape_cast %132 : vector<2x1x128xf32> to vector<2x128xf32>
    %134 = vector.extract_strided_slice %17 {offsets = [0, 12, 0], sizes = [2, 1, 128], strides = [1, 1, 1]} : vector<2x36x128xf32> to vector<2x1x128xf32>
    %135 = vector.shape_cast %134 : vector<2x1x128xf32> to vector<2x128xf32>
    %136 = vector.extract_strided_slice %17 {offsets = [0, 13, 0], sizes = [2, 1, 128], strides = [1, 1, 1]} : vector<2x36x128xf32> to vector<2x1x128xf32>
    %137 = vector.shape_cast %136 : vector<2x1x128xf32> to vector<2x128xf32>
    %138 = vector.extract_strided_slice %17 {offsets = [0, 14, 0], sizes = [2, 1, 128], strides = [1, 1, 1]} : vector<2x36x128xf32> to vector<2x1x128xf32>
    %139 = vector.shape_cast %138 : vector<2x1x128xf32> to vector<2x128xf32>
    %140 = vector.extract_strided_slice %17 {offsets = [0, 15, 0], sizes = [2, 1, 128], strides = [1, 1, 1]} : vector<2x36x128xf32> to vector<2x1x128xf32>
    %141 = vector.shape_cast %140 : vector<2x1x128xf32> to vector<2x128xf32>
    %142 = vector.extract_strided_slice %17 {offsets = [0, 16, 0], sizes = [2, 1, 128], strides = [1, 1, 1]} : vector<2x36x128xf32> to vector<2x1x128xf32>
    %143 = vector.shape_cast %142 : vector<2x1x128xf32> to vector<2x128xf32>
    %144 = vector.extract_strided_slice %17 {offsets = [0, 18, 0], sizes = [2, 1, 128], strides = [1, 1, 1]} : vector<2x36x128xf32> to vector<2x1x128xf32>
    %145 = vector.shape_cast %144 : vector<2x1x128xf32> to vector<2x128xf32>
    %146 = vector.extract_strided_slice %17 {offsets = [0, 19, 0], sizes = [2, 1, 128], strides = [1, 1, 1]} : vector<2x36x128xf32> to vector<2x1x128xf32>
    %147 = vector.shape_cast %146 : vector<2x1x128xf32> to vector<2x128xf32>
    %148 = vector.extract_strided_slice %17 {offsets = [0, 20, 0], sizes = [2, 1, 128], strides = [1, 1, 1]} : vector<2x36x128xf32> to vector<2x1x128xf32>
    %149 = vector.shape_cast %148 : vector<2x1x128xf32> to vector<2x128xf32>
    %150 = vector.extract_strided_slice %17 {offsets = [0, 21, 0], sizes = [2, 1, 128], strides = [1, 1, 1]} : vector<2x36x128xf32> to vector<2x1x128xf32>
    %151 = vector.shape_cast %150 : vector<2x1x128xf32> to vector<2x128xf32>
    %152 = vector.extract_strided_slice %17 {offsets = [0, 22, 0], sizes = [2, 1, 128], strides = [1, 1, 1]} : vector<2x36x128xf32> to vector<2x1x128xf32>
    %153 = vector.shape_cast %152 : vector<2x1x128xf32> to vector<2x128xf32>
    %154 = vector.extract_strided_slice %17 {offsets = [0, 24, 0], sizes = [2, 1, 128], strides = [1, 1, 1]} : vector<2x36x128xf32> to vector<2x1x128xf32>
    %155 = vector.shape_cast %154 : vector<2x1x128xf32> to vector<2x128xf32>
    %156 = vector.extract_strided_slice %17 {offsets = [0, 25, 0], sizes = [2, 1, 128], strides = [1, 1, 1]} : vector<2x36x128xf32> to vector<2x1x128xf32>
    %157 = vector.shape_cast %156 : vector<2x1x128xf32> to vector<2x128xf32>
    %158 = vector.extract_strided_slice %17 {offsets = [0, 26, 0], sizes = [2, 1, 128], strides = [1, 1, 1]} : vector<2x36x128xf32> to vector<2x1x128xf32>
    %159 = vector.shape_cast %158 : vector<2x1x128xf32> to vector<2x128xf32>
    %160 = vector.extract_strided_slice %17 {offsets = [0, 27, 0], sizes = [2, 1, 128], strides = [1, 1, 1]} : vector<2x36x128xf32> to vector<2x1x128xf32>
    %161 = vector.shape_cast %160 : vector<2x1x128xf32> to vector<2x128xf32>
    %162 = vector.extract_strided_slice %17 {offsets = [0, 28, 0], sizes = [2, 1, 128], strides = [1, 1, 1]} : vector<2x36x128xf32> to vector<2x1x128xf32>
    %163 = vector.shape_cast %162 : vector<2x1x128xf32> to vector<2x128xf32>
    %164 = vector.extract_strided_slice %17 {offsets = [0, 30, 0], sizes = [2, 1, 128], strides = [1, 1, 1]} : vector<2x36x128xf32> to vector<2x1x128xf32>
    %165 = vector.shape_cast %164 : vector<2x1x128xf32> to vector<2x128xf32>
    %166 = vector.extract_strided_slice %17 {offsets = [0, 31, 0], sizes = [2, 1, 128], strides = [1, 1, 1]} : vector<2x36x128xf32> to vector<2x1x128xf32>
    %167 = vector.shape_cast %166 : vector<2x1x128xf32> to vector<2x128xf32>
    %168 = vector.extract_strided_slice %17 {offsets = [0, 32, 0], sizes = [2, 1, 128], strides = [1, 1, 1]} : vector<2x36x128xf32> to vector<2x1x128xf32>
    %169 = vector.shape_cast %168 : vector<2x1x128xf32> to vector<2x128xf32>
    %170 = vector.extract_strided_slice %17 {offsets = [0, 33, 0], sizes = [2, 1, 128], strides = [1, 1, 1]} : vector<2x36x128xf32> to vector<2x1x128xf32>
    %171 = vector.shape_cast %170 : vector<2x1x128xf32> to vector<2x128xf32>
    %172 = vector.extract_strided_slice %17 {offsets = [0, 34, 0], sizes = [2, 1, 128], strides = [1, 1, 1]} : vector<2x36x128xf32> to vector<2x1x128xf32>
    %173 = vector.shape_cast %172 : vector<2x1x128xf32> to vector<2x128xf32>
    %174 = tpu.concatenate %125, %127, %129, %131, %133, %135, %137, %139, %141, %143, %145, %147, %149, %151, %153, %155 in 1 : vector<2x128xf32>, vector<2x128xf32>, vector<2x128xf32>, vector<2x128xf32>, vector<2x128xf32>, vector<2x128xf32>, vector<2x128xf32>, vector<2x128xf32>, vector<2x128xf32>, vector<2x128xf32>, vector<2x128xf32>, vector<2x128xf32>, vector<2x128xf32>, vector<2x128xf32>, vector<2x128xf32>, vector<2x128xf32> -> vector<2x2048xf32>
    %175 = tpu.concatenate %157, %159, %161, %163, %165, %167, %169, %171, %173 in 1 : vector<2x128xf32>, vector<2x128xf32>, vector<2x128xf32>, vector<2x128xf32>, vector<2x128xf32>, vector<2x128xf32>, vector<2x128xf32>, vector<2x128xf32>, vector<2x128xf32> -> vector<2x1152xf32>
    %176 = tpu.concatenate %174, %175 in 1 : vector<2x2048xf32>, vector<2x1152xf32> -> vector<2x3200xf32>
    %177 = vector.extract_strided_slice %17 {offsets = [0, 7, 0], sizes = [2, 1, 128], strides = [1, 1, 1]} : vector<2x36x128xf32> to vector<2x1x128xf32>
    %178 = vector.shape_cast %177 : vector<2x1x128xf32> to vector<2x128xf32>
    %179 = vector.extract_strided_slice %17 {offsets = [0, 8, 0], sizes = [2, 1, 128], strides = [1, 1, 1]} : vector<2x36x128xf32> to vector<2x1x128xf32>
    %180 = vector.shape_cast %179 : vector<2x1x128xf32> to vector<2x128xf32>
    %181 = vector.extract_strided_slice %17 {offsets = [0, 9, 0], sizes = [2, 1, 128], strides = [1, 1, 1]} : vector<2x36x128xf32> to vector<2x1x128xf32>
    %182 = vector.shape_cast %181 : vector<2x1x128xf32> to vector<2x128xf32>
    %183 = vector.extract_strided_slice %17 {offsets = [0, 10, 0], sizes = [2, 1, 128], strides = [1, 1, 1]} : vector<2x36x128xf32> to vector<2x1x128xf32>
    %184 = vector.shape_cast %183 : vector<2x1x128xf32> to vector<2x128xf32>
    %185 = vector.extract_strided_slice %17 {offsets = [0, 11, 0], sizes = [2, 1, 128], strides = [1, 1, 1]} : vector<2x36x128xf32> to vector<2x1x128xf32>
    %186 = vector.shape_cast %185 : vector<2x1x128xf32> to vector<2x128xf32>
    %187 = vector.extract_strided_slice %17 {offsets = [0, 13, 0], sizes = [2, 1, 128], strides = [1, 1, 1]} : vector<2x36x128xf32> to vector<2x1x128xf32>
    %188 = vector.shape_cast %187 : vector<2x1x128xf32> to vector<2x128xf32>
    %189 = vector.extract_strided_slice %17 {offsets = [0, 14, 0], sizes = [2, 1, 128], strides = [1, 1, 1]} : vector<2x36x128xf32> to vector<2x1x128xf32>
    %190 = vector.shape_cast %189 : vector<2x1x128xf32> to vector<2x128xf32>
    %191 = vector.extract_strided_slice %17 {offsets = [0, 15, 0], sizes = [2, 1, 128], strides = [1, 1, 1]} : vector<2x36x128xf32> to vector<2x1x128xf32>
    %192 = vector.shape_cast %191 : vector<2x1x128xf32> to vector<2x128xf32>
    %193 = vector.extract_strided_slice %17 {offsets = [0, 16, 0], sizes = [2, 1, 128], strides = [1, 1, 1]} : vector<2x36x128xf32> to vector<2x1x128xf32>
    %194 = vector.shape_cast %193 : vector<2x1x128xf32> to vector<2x128xf32>
    %195 = vector.extract_strided_slice %17 {offsets = [0, 17, 0], sizes = [2, 1, 128], strides = [1, 1, 1]} : vector<2x36x128xf32> to vector<2x1x128xf32>
    %196 = vector.shape_cast %195 : vector<2x1x128xf32> to vector<2x128xf32>
    %197 = vector.extract_strided_slice %17 {offsets = [0, 19, 0], sizes = [2, 1, 128], strides = [1, 1, 1]} : vector<2x36x128xf32> to vector<2x1x128xf32>
    %198 = vector.shape_cast %197 : vector<2x1x128xf32> to vector<2x128xf32>
    %199 = vector.extract_strided_slice %17 {offsets = [0, 20, 0], sizes = [2, 1, 128], strides = [1, 1, 1]} : vector<2x36x128xf32> to vector<2x1x128xf32>
    %200 = vector.shape_cast %199 : vector<2x1x128xf32> to vector<2x128xf32>
    %201 = vector.extract_strided_slice %17 {offsets = [0, 21, 0], sizes = [2, 1, 128], strides = [1, 1, 1]} : vector<2x36x128xf32> to vector<2x1x128xf32>
    %202 = vector.shape_cast %201 : vector<2x1x128xf32> to vector<2x128xf32>
    %203 = vector.extract_strided_slice %17 {offsets = [0, 22, 0], sizes = [2, 1, 128], strides = [1, 1, 1]} : vector<2x36x128xf32> to vector<2x1x128xf32>
    %204 = vector.shape_cast %203 : vector<2x1x128xf32> to vector<2x128xf32>
    %205 = vector.extract_strided_slice %17 {offsets = [0, 23, 0], sizes = [2, 1, 128], strides = [1, 1, 1]} : vector<2x36x128xf32> to vector<2x1x128xf32>
    %206 = vector.shape_cast %205 : vector<2x1x128xf32> to vector<2x128xf32>
    %207 = vector.extract_strided_slice %17 {offsets = [0, 25, 0], sizes = [2, 1, 128], strides = [1, 1, 1]} : vector<2x36x128xf32> to vector<2x1x128xf32>
    %208 = vector.shape_cast %207 : vector<2x1x128xf32> to vector<2x128xf32>
    %209 = vector.extract_strided_slice %17 {offsets = [0, 26, 0], sizes = [2, 1, 128], strides = [1, 1, 1]} : vector<2x36x128xf32> to vector<2x1x128xf32>
    %210 = vector.shape_cast %209 : vector<2x1x128xf32> to vector<2x128xf32>
    %211 = vector.extract_strided_slice %17 {offsets = [0, 27, 0], sizes = [2, 1, 128], strides = [1, 1, 1]} : vector<2x36x128xf32> to vector<2x1x128xf32>
    %212 = vector.shape_cast %211 : vector<2x1x128xf32> to vector<2x128xf32>
    %213 = vector.extract_strided_slice %17 {offsets = [0, 28, 0], sizes = [2, 1, 128], strides = [1, 1, 1]} : vector<2x36x128xf32> to vector<2x1x128xf32>
    %214 = vector.shape_cast %213 : vector<2x1x128xf32> to vector<2x128xf32>
    %215 = vector.extract_strided_slice %17 {offsets = [0, 29, 0], sizes = [2, 1, 128], strides = [1, 1, 1]} : vector<2x36x128xf32> to vector<2x1x128xf32>
    %216 = vector.shape_cast %215 : vector<2x1x128xf32> to vector<2x128xf32>
    %217 = vector.extract_strided_slice %17 {offsets = [0, 31, 0], sizes = [2, 1, 128], strides = [1, 1, 1]} : vector<2x36x128xf32> to vector<2x1x128xf32>
    %218 = vector.shape_cast %217 : vector<2x1x128xf32> to vector<2x128xf32>
    %219 = vector.extract_strided_slice %17 {offsets = [0, 32, 0], sizes = [2, 1, 128], strides = [1, 1, 1]} : vector<2x36x128xf32> to vector<2x1x128xf32>
    %220 = vector.shape_cast %219 : vector<2x1x128xf32> to vector<2x128xf32>
    %221 = vector.extract_strided_slice %17 {offsets = [0, 33, 0], sizes = [2, 1, 128], strides = [1, 1, 1]} : vector<2x36x128xf32> to vector<2x1x128xf32>
    %222 = vector.shape_cast %221 : vector<2x1x128xf32> to vector<2x128xf32>
    %223 = vector.extract_strided_slice %17 {offsets = [0, 34, 0], sizes = [2, 1, 128], strides = [1, 1, 1]} : vector<2x36x128xf32> to vector<2x1x128xf32>
    %224 = vector.shape_cast %223 : vector<2x1x128xf32> to vector<2x128xf32>
    %225 = vector.extract_strided_slice %17 {offsets = [0, 35, 0], sizes = [2, 1, 128], strides = [1, 1, 1]} : vector<2x36x128xf32> to vector<2x1x128xf32>
    %226 = vector.shape_cast %225 : vector<2x1x128xf32> to vector<2x128xf32>
    %227 = tpu.concatenate %178, %180, %182, %184, %186, %188, %190, %192, %194, %196, %198, %200, %202, %204, %206, %208 in 1 : vector<2x128xf32>, vector<2x128xf32>, vector<2x128xf32>, vector<2x128xf32>, vector<2x128xf32>, vector<2x128xf32>, vector<2x128xf32>, vector<2x128xf32>, vector<2x128xf32>, vector<2x128xf32>, vector<2x128xf32>, vector<2x128xf32>, vector<2x128xf32>, vector<2x128xf32>, vector<2x128xf32>, vector<2x128xf32> -> vector<2x2048xf32>
    %228 = tpu.concatenate %210, %212, %214, %216, %218, %220, %222, %224, %226 in 1 : vector<2x128xf32>, vector<2x128xf32>, vector<2x128xf32>, vector<2x128xf32>, vector<2x128xf32>, vector<2x128xf32>, vector<2x128xf32>, vector<2x128xf32>, vector<2x128xf32> -> vector<2x1152xf32>
    %229 = tpu.concatenate %227, %228 in 1 : vector<2x2048xf32>, vector<2x1152xf32> -> vector<2x3200xf32>
    %230 = tpu.concatenate %70, %123, %176, %229 in 0 : vector<2x3200xf32>, vector<2x3200xf32>, vector<2x3200xf32>, vector<2x3200xf32> -> vector<8x3200xf32>
    %c0_7 = arith.constant 0 : index
    %c0_8 = arith.constant 0 : index
    %231 = vector.load %arg4[%c0_7, %c0_8] : memref<3200x128xf32, #tpu.memory_space<vmem>>, vector<3200x128xf32>
    %cst_9 = arith.constant dense<0.000000e+00> : vector<8x128xf32>
    %232 = tpu.matmul %230, %231, %cst_9 {dimension_numbers = #tpu.dot_dimension_numbers<[1], [0], [0], [1], [0, 0, 1, 1], [], []>} : vector<8x3200xf32>, vector<3200x128xf32>, vector<8x128xf32> -> vector<8x128xf32>
    %233 = vector.extract_strided_slice %232 {offsets = [0, 0], sizes = [2, 128], strides = [1, 1]} : vector<8x128xf32> to vector<2x128xf32>
    %234 = vector.extract_strided_slice %232 {offsets = [2, 0], sizes = [2, 128], strides = [1, 1]} : vector<8x128xf32> to vector<2x128xf32>
    %235 = arith.maximumf %233, %234 : vector<2x128xf32>
    %236 = vector.extract_strided_slice %232 {offsets = [4, 0], sizes = [2, 128], strides = [1, 1]} : vector<8x128xf32> to vector<2x128xf32>
    %237 = arith.maximumf %235, %236 : vector<2x128xf32>
    %238 = vector.extract_strided_slice %232 {offsets = [6, 0], sizes = [2, 128], strides = [1, 1]} : vector<8x128xf32> to vector<2x128xf32>
    %239 = arith.maximumf %237, %238 : vector<2x128xf32>
    %c0_10 = arith.constant 0 : index
    %c0_11 = arith.constant 0 : index
    %240 = vector.load %arg5[%c0_10, %c0_11] : memref<1x128xf32, #tpu.memory_space<vmem>>, vector<1x128xf32>
    %241 = vector.broadcast %240 : vector<1x128xf32> to vector<2x128xf32>
    %242 = arith.addf %239, %241 : vector<2x128xf32>
    %cst_12 = arith.constant 0.000000e+00 : f32
    %243 = vector.broadcast %cst_12 : f32 to vector<2x128xf32>
    %244 = arith.maximumf %242, %243 : vector<2x128xf32>
    %c0_13 = arith.constant 0 : index
    %c0_14 = arith.constant 0 : index
    %245 = vector.load %arg6[%c0_13, %c0_14] : memref<128x384xf32, #tpu.memory_space<vmem>>, vector<128x384xf32>
    %cst_15 = arith.constant dense<0.000000e+00> : vector<2x384xf32>
    %246 = tpu.matmul %244, %245, %cst_15 {dimension_numbers = #tpu.dot_dimension_numbers<[1], [0], [0], [1], [0, 0, 1, 1], [], []>} : vector<2x128xf32>, vector<128x384xf32>, vector<2x384xf32> -> vector<2x384xf32>
    %c0_16 = arith.constant 0 : index
    %c0_17 = arith.constant 0 : index
    %247 = vector.load %arg7[%c0_16, %c0_17] : memref<1x384xf32, #tpu.memory_space<vmem>>, vector<1x384xf32>
    %248 = vector.broadcast %247 : vector<1x384xf32> to vector<2x384xf32>
    %249 = arith.addf %246, %248 : vector<2x384xf32>
    %cst_18 = arith.constant 0.000000e+00 : f32
    %250 = vector.broadcast %cst_18 : f32 to vector<2x384xf32>
    %251 = arith.maximumf %249, %250 : vector<2x384xf32>
    %c0_19 = arith.constant 0 : index
    %c0_20 = arith.constant 0 : index
    %252 = vector.load %arg8[%c0_19, %c0_20] : memref<384x384xf32, #tpu.memory_space<vmem>>, vector<384x384xf32>
    %cst_21 = arith.constant dense<0.000000e+00> : vector<2x384xf32>
    %253 = tpu.matmul %251, %252, %cst_21 {dimension_numbers = #tpu.dot_dimension_numbers<[1], [0], [0], [1], [0, 0, 1, 1], [], []>} : vector<2x384xf32>, vector<384x384xf32>, vector<2x384xf32> -> vector<2x384xf32>
    %c0_22 = arith.constant 0 : index
    %c0_23 = arith.constant 0 : index
    %254 = vector.load %arg9[%c0_22, %c0_23] : memref<1x384xf32, #tpu.memory_space<vmem>>, vector<1x384xf32>
    %255 = vector.broadcast %254 : vector<1x384xf32> to vector<2x384xf32>
    %256 = arith.addf %253, %255 : vector<2x384xf32>
    %cst_24 = arith.constant 0.000000e+00 : f32
    %257 = vector.broadcast %cst_24 : f32 to vector<2x384xf32>
    %258 = arith.maximumf %256, %257 : vector<2x384xf32>
    %c0_25 = arith.constant 0 : index
    %c0_26 = arith.constant 0 : index
    %259 = vector.load %arg10[%c0_25, %c0_26] : memref<384x128xf32, #tpu.memory_space<vmem>>, vector<384x128xf32>
    %cst_27 = arith.constant dense<0.000000e+00> : vector<2x128xf32>
    %260 = tpu.matmul %258, %259, %cst_27 {dimension_numbers = #tpu.dot_dimension_numbers<[1], [0], [0], [1], [0, 0, 1, 1], [], []>} : vector<2x384xf32>, vector<384x128xf32>, vector<2x128xf32> -> vector<2x128xf32>
    %c0_28 = arith.constant 0 : index
    %c0_29 = arith.constant 0 : index
    %261 = vector.load %arg11[%c0_28, %c0_29] : memref<1x128xf32, #tpu.memory_space<vmem>>, vector<1x128xf32>
    %262 = vector.broadcast %261 : vector<1x128xf32> to vector<2x128xf32>
    %263 = arith.addf %260, %262 : vector<2x128xf32>
    %c0_30 = arith.constant 0 : index
    %c0_31 = arith.constant 0 : index
    %264 = vector.load %arg12[%c0_30, %c0_31] : memref<2x128xf32, #tpu.memory_space<vmem>>, vector<2x128xf32>
    tpu.vector_store %arg12[%c0_30, %c0_31], %263 {strides = array<i32>} : memref<2x128xf32, #tpu.memory_space<vmem>>, vector<2x128xf32>,
    return
  }
  func.func @transform_0(%arg0: i32) -> (i32, i32, i32) {
    %c0_i32 = arith.constant 0 : i32
    %c0_i32_0 = arith.constant 0 : i32
    %c0_i32_1 = arith.constant 0 : i32
    return %arg0, %c0_i32, %c0_i32_0 : i32, i32, i32
  }
  func.func @transform_1(%arg0: i32) -> (i32, i32) {
    %c0_i32 = arith.constant 0 : i32
    %c0_i32_0 = arith.constant 0 : i32
    %c0_i32_1 = arith.constant 0 : i32
    return %c0_i32, %c0_i32_0 : i32, i32
  }
  func.func @transform_2(%arg0: i32) -> (i32, i32) {
    %c0_i32 = arith.constant 0 : i32
    %c0_i32_0 = arith.constant 0 : i32
    %c0_i32_1 = arith.constant 0 : i32
    return %c0_i32, %c0_i32_0 : i32, i32
  }
  func.func @transform_3(%arg0: i32) -> (i32, i32) {
    %c0_i32 = arith.constant 0 : i32
    %c0_i32_0 = arith.constant 0 : i32
    %c0_i32_1 = arith.constant 0 : i32
    return %c0_i32, %c0_i32_0 : i32, i32
  }
  func.func @transform_4(%arg0: i32) -> (i32, i32) {
    %c0_i32 = arith.constant 0 : i32
    %c0_i32_0 = arith.constant 0 : i32
    %c0_i32_1 = arith.constant 0 : i32
    return %c0_i32, %c0_i32_0 : i32, i32
  }
  func.func @transform_5(%arg0: i32) -> (i32, i32) {
    %c0_i32 = arith.constant 0 : i32
    %c0_i32_0 = arith.constant 0 : i32
    %c0_i32_1 = arith.constant 0 : i32
    return %c0_i32, %c0_i32_0 : i32, i32
  }
  func.func @transform_6(%arg0: i32) -> (i32, i32) {
    %c0_i32 = arith.constant 0 : i32
    %c0_i32_0 = arith.constant 0 : i32
    %c0_i32_1 = arith.constant 0 : i32
    return %c0_i32, %c0_i32_0 : i32, i32
  }
  func.func @transform_7(%arg0: i32) -> (i32, i32) {
    %c0_i32 = arith.constant 0 : i32
    %c0_i32_0 = arith.constant 0 : i32
    %c0_i32_1 = arith.constant 0 : i32
    return %c0_i32, %c0_i32_0 : i32, i32
  }
  func.func @transform_8(%arg0: i32) -> (i32, i32) {
    %c0_i32 = arith.constant 0 : i32
    %c0_i32_0 = arith.constant 0 : i32
    %c0_i32_1 = arith.constant 0 : i32
    return %c0_i32, %c0_i32_0 : i32, i32
  }
  func.func @transform_9(%arg0: i32) -> (i32, i32) {
    %c0_i32 = arith.constant 0 : i32
    %c0_i32_0 = arith.constant 0 : i32
    %c0_i32_1 = arith.constant 0 : i32
    return %c0_i32, %c0_i32_0 : i32, i32
  }
  func.func @transform_10(%arg0: i32) -> (i32, i32) {
    %c0_i32 = arith.constant 0 : i32
    %c0_i32_0 = arith.constant 0 : i32
    %c0_i32_1 = arith.constant 0 : i32
    return %c0_i32, %c0_i32_0 : i32, i32
  }
  func.func @transform_11(%arg0: i32) -> (i32, i32) {
    %c0_i32 = arith.constant 0 : i32
    %c0_i32_0 = arith.constant 0 : i32
    return %arg0, %c0_i32 : i32, i32
  }
}

</mosaic_0001>

<bundles_post_ra>
// kernel: hnn_forward.3
= control target key start
LH: loop header
LB: loop body
LE: loop exit
PB: predicated region body
PF: predicated region fallthrough
CT: control target
= control target key end

     0   :  { %vm10_vm0 = vcmask 1041408   ;;  %s91_s0 = inlined_call_operand.vmem [shape: f32[2,128], index: 0, kind: input, shape index: {}]   ;;  %s92_s1 = inlined_call_operand.hbm [shape: f32[2,128], index: 1, kind: output, shape index: {}]  }
   0x1   :  { %v9_v0 = vld [vmem:[%s91_s0] sm:$0x3] }
   0x2   :  { %6 = vsyncpa [#allocation3], 0  ;;  %v11_v1 = vsel %vm10_vm0, %v9_v0, -inf  ;;  %s74_s0 = smov [#allocation2]  }
   0x3   :  { %v12_v2 = vrot.slane %v11_v1, 4  ;;  %s39_s8 = sshll.u32 %s74_s0, 4  ;;  %s40_s8 = int_to_ptr.vmem [resolvable:$true] %s39_s8 }
   0x4   :  { %s52_s9 = scalar_lea.vmem %s40_s8, 32  ;;  %p57_p1 = scmp.lt.s32.totalorder %s40_s8, %s40_s8 }
   0x5   :  { %v13_v3 = vmax.f32 %v11_v1, %v12_v2  ;;  %p53_p0 = scmp.ne.s32.totalorder %s40_s8, %s52_s9  ;;  %p58_p2 = scmp.lt.s32.totalorder %s52_s9, %s52_s9 }
   0x7   :  { %v14_v4 = vrot.slane %v13_v3, 2  ;;  %p59_p3 = por %p58_p2, %p57_p1 }
   0x9   :  { %v15_v5 = vmax.f32 %v13_v3, %v14_v4  ;;  %p60_p4 = pnand %p59_p3, %p53_p0 }
   0xb   :  { %v16_v6 = vrot.slane %v15_v5, 1 }
   0xd   :  { %v17_v7 = vmax.f32 %v15_v5, %v16_v6 }
   0xf   :  { %v18_v8 = vsub.f32 %v9_v0, %v17_v7 }
  0x11   :  { %v19_v9 = vmul.f32 1.442695, %v18_v8 }
  0x13   :  { %48 = vpow2.f32 %v19_v9 }
  0x20   :  { %v49_v10 = vpop.eup %48 }
  0x21   :  { %v21_v11 = vsel %vm10_vm0, %v49_v10, 0.0 }
  0x22   :  { %v22_v12 = vrot.slane %v21_v11, 4 }
  0x24   :  { %v23_v13 = vadd.f32 %v22_v12, %v21_v11 }
  0x26   :  { %v24_v14 = vrot.slane %v23_v13, 2 }
  0x28   :  { %v25_v15 = vadd.f32 %v24_v14, %v23_v13 }
  0x2a   :  { %v26_v16 = vrot.slane %v25_v15, 1 }
  0x2c   :  { %v27_v17 = vadd.f32 %v26_v16, %v25_v15 }
  0x2e   :  { %50 = vlog2.f32 %v27_v17 }
  0x3b   :  { %v51_v18 = vpop.eup %50 }
  0x3c   :  { %v29_v19 = vmul.f32 0.6931472, %v51_v18 }
  0x3e   :  { %v30_v20 = vadd.f32 %v29_v19, %v17_v7 }
  0x40   :  { %v31_v21 = vsub.f32 %v9_v0, %v30_v20 }
  0x42   :  { %32 = vst [vmem:[#allocation2] sm:$0x3] %v31_v21 }
  0x43   :  { %63 = shalt.err (!%p60_p4)
}
  0x44   :  { %42 = dma.vmem_to_hbm [thread:$0]  %s40_s8, 32, %s92_s1, [#allocation3]  }
  0x45   :  { %72 = dma.done.wait [#allocation3], 32  }
  0x46   :  { %73 = vsyncadd [#allocation3], 4294967264 }
  0x47   :  { %46 = vsyncpa [#allocation3], 1 }

// kernel: hnn_forward.2
= control target key start
LH: loop header
LB: loop body
LE: loop exit
PB: predicated region body
PF: predicated region fallthrough
CT: control target
= control target key end

     0   :  { %vm78_vm0 = vcmask 261120   ;;  %vm442_vm1 = vcmask 1043456   ;;  %vm569_vm2 = vcmask 1041409   ;;  %vm673_vm3 = vcmask 1042434   ;;  %s6962_s1 = inlined_call_operand.vmem [shape: f32[32,128], index: 1, kind: input, shape index: {}]   ;;  %s6963_s0 = inlined_call_operand.vmem [shape: f32[2,144,32], index: 0, kind: input, shape index: {}]   ;;  %s6964_s3 = inlined_call_operand.vmem [shape: f32[3200,128], index: 3, kind: input, shape index: {}]   ;;  %s6965_s2 = inlined_call_operand.vmem [shape: f32[1,128], index: 2, kind: input, shape index: {}]   ;;  %s6966_s5 = inlined_call_operand.vmem [shape: f32[128,384], index: 5, kind: input, shape index: {}]   ;;  %s6967_s7 = inlined_call_operand.vmem [shape: f32[384,384], index: 7, kind: input, shape index: {}]   ;;  %s6968_s4 = inlined_call_operand.vmem [shape: f32[1,128], index: 4, kind: input, shape index: {}]   ;;  %s6969_s6 = inlined_call_operand.vmem [shape: f32[1,384], index: 6, kind: input, shape index: {}]   ;;  %s6970_s9 = inlined_call_operand.vmem [shape: f32[384,128], index: 9, kind: input, shape index: {}]   ;;  %s6971_s8 = inlined_call_operand.vmem [shape: f32[1,384], index: 8, kind: input, shape index: {}]   ;;  %s6972_s10 = inlined_call_operand.vmem [shape: f32[1,128], index: 10, kind: input, shape index: {}]   ;;  %s6973_s11 = inlined_call_operand.vmem [shape: f32[2,128], index: 11, kind: output, shape index: {}]  }
   0x1   :  { %v77_v0 = vld [vmem:[%s6962_s1 + $0x18] sm:$0xff]  ;;  %v76_v1 = vld [vmem:[%s6962_s1 + $0x10] sm:$0xff]  ;;  %v38_v2 = vld [vmem:[%s6963_s0] sm:$0xff]  ;;  %vm711_vm4 = vcmask 1047559   ;;  %vm885_vm5 = vcmask 1046528   ;;  %vm972_vm6 = vcmask 1041408  }
   0x2   :  { %3897 = vmatprep.subr.mxu0 %v77_v0  ;;  %v75_v3 = vld [vmem:[%s6962_s1 + $0x8] sm:$0xff]  ;;  %3905 = vmatprep.mubr.msk.f32.mxu0 %vm78_vm0, %v38_v2  ;;  %v74_v4 = vld [vmem:[%s6962_s1] sm:$0xff]  ;;  %v40_v6 = vld [vmem:[%s6963_s0 + $0x10] sm:$0xff]  ;;  %vm1023_vm7 = vcmask 1045504   ;;  %vm632_vm8 = vcmask 1044484   ;;  %vm692_vm9 = vcmask 1045509  }
   0x3   :  { %3898 = vmatpush3.msra.mxu0 %v77_v0  ;;  %v39_v5 = vld [vmem:[%s6963_s0 + $0x8] sm:$0xff]  ;;  %v41_v7 = vld [vmem:[%s6963_s0 + $0x18] sm:$0xff]  ;;  %v42_v8 = vld [vmem:[%s6963_s0 + $0x20] sm:$0xff]  ;;  %vm764_vm10 = vcmask 1043459   ;;  %vm4102_vm11 = vmmov 0  }
   0x4   :  { %3899 = vmatprep.subr.mxu0 %v76_v1  ;;  %v43_v9 = vld [vmem:[%s6963_s0 + $0x28] sm:$0xff]  ;;  %v44_v10 = vld [vmem:[%s6963_s0 + $0x30] sm:$0xff]  ;;  %v45_v11 = vld [vmem:[%s6963_s0 + $0x38] sm:$0xff] }
   0x5   :  { %3900 = vmatpush3.msra.mxu0 %v76_v1  ;;  %v46_v12 = vld [vmem:[%s6963_s0 + $0x40] sm:$0xff]  ;;  %v47_v13 = vld [vmem:[%s6963_s0 + $0x48] sm:$0xff]  ;;  %v48_v14 = vld [vmem:[%s6963_s0 + $0x50] sm:$0xff] }
   0x6   :  { %3901 = vmatprep.subr.mxu0 %v75_v3  ;;  %v49_v15 = vld [vmem:[%s6963_s0 + $0x58] sm:$0xff]  ;;  %v50_v16 = vld [vmem:[%s6963_s0 + $0x60] sm:$0xff]  ;;  %v51_v17 = vld [vmem:[%s6963_s0 + $0x68] sm:$0xff] }
   0x7   :  { %3902 = vmatpush3.msra.mxu0 %v75_v3  ;;  %v52_v18 = vld [vmem:[%s6963_s0 + $0x70] sm:$0xff]  ;;  %v53_v19 = vld [vmem:[%s6963_s0 + $0x78] sm:$0xff]  ;;  %v54_v20 = vld [vmem:[%s6963_s0 + $0x80] sm:$0xff] }
   0x8   :  { %3903 = vmatprep.subr.mxu0 %v74_v4  ;;  %v55_v21 = vld [vmem:[%s6963_s0 + $0x88] sm:$0xff]  ;;  %v56_v22 = vld [vmem:[%s6963_s0 + $0x90] sm:$0xff]  ;;  %v57_v23 = vld [vmem:[%s6963_s0 + $0x98] sm:$0xff] }
   0x9   :  { %3904 = vmatpush3.msra.mxu0 %v74_v4  ;;  %v58_v24 = vld [vmem:[%s6963_s0 + $0xa0] sm:$0xff]  ;;  %v59_v25 = vld [vmem:[%s6963_s0 + $0xa8] sm:$0xff]  ;;  %v60_v26 = vld [vmem:[%s6963_s0 + $0xb0] sm:$0xff] }
   0xa   :  { %3906 = vmatmul.mubr.msk.f32.vlgmr.msra.gmra.mxu0 %vm78_vm0, %v39_v5  ;;  %v61_v27 = vld [vmem:[%s6963_s0 + $0xb8] sm:$0xff]  ;;  %v62_v28 = vld [vmem:[%s6963_s0 + $0xc0] sm:$0xff]  ;;  %v63_v29 = vld [vmem:[%s6963_s0 + $0xc8] sm:$0xff] }
   0xb   :  { %3908 = vmatprep.mubr.msk.f32.mxu0 %vm78_vm0, %v40_v6  ;;  %v64_v30 = vld [vmem:[%s6963_s0 + $0xd0] sm:$0xff]  ;;  %v65_v31 = vld [vmem:[%s6963_s0 + $0xd8] sm:$0xff]  ;;  %v66_v32 = vld [vmem:[%s6963_s0 + $0xe0] sm:$0xff] }
   0xc   :  { %v67_v33 = vld [vmem:[%s6963_s0 + $0xe8] sm:$0xff]  ;;  %v68_v34 = vld [vmem:[%s6963_s0 + $0xf0] sm:$0xff]  ;;  %v69_v35 = vld [vmem:[%s6963_s0 + $0xf8] sm:$0xff] }
   0xd   :  { %v70_v36 = vld [vmem:[%s6963_s0 + $0x100] sm:$0xff]  ;;  %v71_v37 = vld [vmem:[%s6963_s0 + $0x108] sm:$0xff]  ;;  %v72_v38 = vld [vmem:[%s6963_s0 + $0x110] sm:$0xff] }
   0xe   :  { %3909 = vmatmul.mubr.msk.f32.gmra.mxu0 %vm78_vm0, %v41_v7  ;;  %v73_v39 = vld [vmem:[%s6963_s0 + $0x118] sm:$0xff]  ;;  %v1079_v44 = vld [vmem:[%s6964_s3 + $0xf0] sm:$0xff]  ;;  %v1078_v47 = vld [vmem:[%s6964_s3 + $0xe8] sm:$0xff] }
   0xf   :  { %3911 = vmatprep.mubr.msk.f32.mxu0 %vm78_vm0, %v42_v8  ;;  %v1144_v40 = vld [vmem:[%s6964_s3 + $0x2f8] sm:$0xff]  ;;  %v1063_v45 = vld [vmem:[%s6964_s3 + $0x70] sm:$0xff]  ;;  %v1062_v49 = vld [vmem:[%s6964_s3 + $0x68] sm:$0xff] }
  0x10   :  { %v1080_v41 = vld [vmem:[%s6964_s3 + $0xf8] sm:$0xff]  ;;  %3409 = vmatprep.subr.mxu0 %v1144_v40  ;;  %v1143_v46 = vld [vmem:[%s6964_s3 + $0x2f0] sm:$0xff]  ;;  %v1142_v50 = vld [vmem:[%s6964_s3 + $0x2e8] sm:$0xff] }
  0x11   :  { %v1128_v42 = vld [vmem:[%s6964_s3 + $0x278] sm:$0xff]  ;;  %3339 = vmatprep.subr.mxu1 %v1080_v41  ;;  %v1127_v48 = vld [vmem:[%s6964_s3 + $0x270] sm:$0xff]  ;;  %v1077_v51 = vld [vmem:[%s6964_s3 + $0xe0] sm:$0xff] }
  0x12   :  { %3912 = vmatmul.mubr.msk.f32.gmra.mxu0 %vm78_vm0, %v43_v9  ;;  %v1064_v43 = vld [vmem:[%s6964_s3 + $0x78] sm:$0xff]  ;;  %v1126_v52 = vld [vmem:[%s6964_s3 + $0x268] sm:$0xff]  ;;  %v1061_v53 = vld [vmem:[%s6964_s3 + $0x60] sm:$0xff] }
  0x13   :  { %3914 = vmatprep.mubr.msk.f32.mxu0 %vm78_vm0, %v44_v10  ;;  %3410 = vmatpush3.msra.mxu0 %v1128_v42  ;;  %v1141_v54 = vld [vmem:[%s6964_s3 + $0x2e0] sm:$0xff]  ;;  %v1076_v55 = vld [vmem:[%s6964_s3 + $0xd8] sm:$0xff]  ;;  %v1075_v59 = vld [vmem:[%s6964_s3 + $0xd0] sm:$0xff] }
  0x14   :  { %3340 = vmatpush3.msra.mxu1 %v1064_v43  ;;  %3411 = vmatprep.subr.mxu0 %v1143_v46  ;;  %v1125_v56 = vld [vmem:[%s6964_s3 + $0x260] sm:$0xff]  ;;  %v1060_v57 = vld [vmem:[%s6964_s3 + $0x58] sm:$0xff]  ;;  %v1059_v61 = vld [vmem:[%s6964_s3 + $0x50] sm:$0xff] }
  0x15   :  { %3341 = vmatprep.subr.mxu1 %v1079_v44  ;;  %3412 = vmatpush3.msra.mxu0 %v1127_v48  ;;  %v1140_v58 = vld [vmem:[%s6964_s3 + $0x2d8] sm:$0xff]  ;;  %v1139_v62 = vld [vmem:[%s6964_s3 + $0x2d0] sm:$0xff]  ;;  %v1074_v63 = vld [vmem:[%s6964_s3 + $0xc8] sm:$0xff] }
  0x16   :  { %3915 = vmatmul.mubr.msk.f32.gmra.mxu0 %vm78_vm0, %v45_v11  ;;  %3342 = vmatpush3.msra.mxu1 %v1063_v45  ;;  %v1124_v60 = vld [vmem:[%s6964_s3 + $0x258] sm:$0xff]  ;;  %v1123_v0 = vld [vmem:[%s6964_s3 + $0x250] sm:$0xff]  ;;  %v1058_v1 = vld [vmem:[%s6964_s3 + $0x48] sm:$0xff] }
  0x17   :  { %3917 = vmatprep.mubr.msk.f32.mxu0 %vm78_vm0, %v46_v12  ;;  %3343 = vmatprep.subr.mxu1 %v1078_v47  ;;  %v1138_v2 = vld [vmem:[%s6964_s3 + $0x2c8] sm:$0xff]  ;;  %v1073_v3 = vld [vmem:[%s6964_s3 + $0xc0] sm:$0xff]  ;;  %v1072_v7 = vld [vmem:[%s6964_s3 + $0xb8] sm:$0xff] }
  0x18   :  { %3344 = vmatpush3.msra.mxu1 %v1062_v49  ;;  %3413 = vmatprep.subr.mxu0 %v1142_v50  ;;  %v1122_v4 = vld [vmem:[%s6964_s3 + $0x248] sm:$0xff]  ;;  %v1057_v5 = vld [vmem:[%s6964_s3 + $0x40] sm:$0xff]  ;;  %v1056_v9 = vld [vmem:[%s6964_s3 + $0x38] sm:$0xff] }
  0x19   :  { %3345 = vmatprep.subr.mxu1 %v1077_v51  ;;  %3414 = vmatpush3.msra.mxu0 %v1126_v52  ;;  %v1137_v6 = vld [vmem:[%s6964_s3 + $0x2c0] sm:$0xff]  ;;  %v1136_v10 = vld [vmem:[%s6964_s3 + $0x2b8] sm:$0xff]  ;;  %v1071_v11 = vld [vmem:[%s6964_s3 + $0xb0] sm:$0xff] }
  0x1a   :  { %3918 = vmatmul.mubr.msk.f32.gmra.mxu0 %vm78_vm0, %v47_v13  ;;  %3346 = vmatpush3.msra.mxu1 %v1061_v53  ;;  %v1121_v8 = vld [vmem:[%s6964_s3 + $0x240] sm:$0xff]  ;;  %v1120_v12 = vld [vmem:[%s6964_s3 + $0x238] sm:$0xff]  ;;  %v1055_v13 = vld [vmem:[%s6964_s3 + $0x30] sm:$0xff] }
  0x1b   :  { %3920 = vmatprep.mubr.msk.f32.mxu0 %vm78_vm0, %v48_v14  ;;  %3415 = vmatprep.subr.mxu0 %v1141_v54  ;;  %v1135_v14 = vld [vmem:[%s6964_s3 + $0x2b0] sm:$0xff]  ;;  %v1113_v40 = vld [vmem:[%s6964_s3 + $0x200] sm:$0xff]  ;;  %v1208_v41 = vld [vmem:[%s6964_s3 + $0x4f8] sm:$0xff] }
  0x1c   :  { %3347 = vmatprep.subr.mxu1 %v1076_v55  ;;  %3416 = vmatpush3.msra.mxu0 %v1125_v56 }
  0x1d   :  { %3348 = vmatpush3.msra.mxu1 %v1060_v57  ;;  %3417 = vmatprep.subr.mxu0 %v1140_v58 }
  0x1e   :  { %3921 = vmatmul.mubr.msk.f32.gmra.mxu0 %vm78_vm0, %v49_v15  ;;  %3349 = vmatprep.subr.mxu1 %v1075_v59  ;;  %v1070_v15 = vld [vmem:[%s6964_s3 + $0xa8] sm:$0xff] }
  0x1f   :  { %3923 = vmatprep.mubr.msk.f32.mxu0 %vm78_vm0, %v50_v16  ;;  %3418 = vmatpush3.msra.mxu0 %v1124_v60  ;;  %v1119_v16 = vld [vmem:[%s6964_s3 + $0x230] sm:$0xff] }
  0x20   :  { %3350 = vmatpush3.msra.mxu1 %v1059_v61  ;;  %3419 = vmatprep.subr.mxu0 %v1139_v62 }
  0x21   :  { %3351 = vmatprep.subr.mxu1 %v1074_v63  ;;  %3420 = vmatpush3.msra.mxu0 %v1123_v0 }
  0x22   :  { %3924 = vmatmul.mubr.msk.f32.gmra.mxu0 %vm78_vm0, %v51_v17  ;;  %3352 = vmatpush3.msra.mxu1 %v1058_v1  ;;  %v1054_v17 = vld [vmem:[%s6964_s3 + $0x28] sm:$0xff] }
  0x23   :  { %3926 = vmatprep.mubr.msk.f32.mxu0 %vm78_vm0, %v52_v18  ;;  %3421 = vmatprep.subr.mxu0 %v1138_v2  ;;  %v1134_v18 = vld [vmem:[%s6964_s3 + $0x2a8] sm:$0xff] }
  0x24   :  { %3353 = vmatprep.subr.mxu1 %v1073_v3  ;;  %3422 = vmatpush3.msra.mxu0 %v1122_v4 }
  0x25   :  { %3354 = vmatpush3.msra.mxu1 %v1057_v5  ;;  %3423 = vmatprep.subr.mxu0 %v1137_v6  ;;  %v4521_v6 = vld [vmem:[%s6965_s2] ss:$0 sm:$0xff] }
  0x26   :  { %3927 = vmatmul.mubr.msk.f32.gmra.mxu0 %vm78_vm0, %v53_v19  ;;  %3355 = vmatprep.subr.mxu1 %v1072_v7  ;;  %v1069_v19 = vld [vmem:[%s6964_s3 + $0xa0] sm:$0xff] }
  0x27   :  { %3929 = vmatprep.mubr.msk.f32.mxu0 %vm78_vm0, %v54_v20  ;;  %3424 = vmatpush3.msra.mxu0 %v1121_v8  ;;  %v1118_v20 = vld [vmem:[%s6964_s3 + $0x228] sm:$0xff] }
  0x28   :  { %3356 = vmatpush3.msra.mxu1 %v1056_v9  ;;  %3425 = vmatprep.subr.mxu0 %v1136_v10 }
  0x29   :  { %3357 = vmatprep.subr.mxu1 %v1071_v11  ;;  %3426 = vmatpush3.msra.mxu0 %v1120_v12 }
  0x2a   :  { %3930 = vmatmul.mubr.msk.f32.gmra.mxu0 %vm78_vm0, %v55_v21  ;;  %3358 = vmatpush3.msra.mxu1 %v1055_v13  ;;  %v1053_v21 = vld [vmem:[%s6964_s3 + $0x20] sm:$0xff] }
  0x2b   :  { %3932 = vmatprep.mubr.msk.f32.mxu0 %vm78_vm0, %v56_v22  ;;  %3427 = vmatprep.subr.mxu0 %v1135_v14  ;;  %v1133_v22 = vld [vmem:[%s6964_s3 + $0x2a0] sm:$0xff] }
  0x2c   :  { %3359 = vmatprep.subr.mxu1 %v1070_v15  ;;  %3428 = vmatpush3.msra.mxu0 %v1119_v16 }
  0x2d   :  { %3360 = vmatpush3.msra.mxu1 %v1054_v17  ;;  %3429 = vmatprep.subr.mxu0 %v1134_v18 }
  0x2e   :  { %3933 = vmatmul.mubr.msk.f32.gmra.mxu0 %vm78_vm0, %v57_v23  ;;  %3361 = vmatprep.subr.mxu1 %v1069_v19  ;;  %v1068_v23 = vld [vmem:[%s6964_s3 + $0x98] sm:$0xff] }
  0x2f   :  { %3935 = vmatprep.mubr.msk.f32.mxu0 %vm78_vm0, %v58_v24  ;;  %3430 = vmatpush3.msra.mxu0 %v1118_v20  ;;  %v1117_v24 = vld [vmem:[%s6964_s3 + $0x220] sm:$0xff] }
  0x30   :  { %3362 = vmatpush3.msra.mxu1 %v1053_v21  ;;  %3431 = vmatprep.subr.mxu0 %v1133_v22 }
  0x31   :  { %3363 = vmatprep.subr.mxu1 %v1068_v23  ;;  %3432 = vmatpush3.msra.mxu0 %v1117_v24 }
  0x32   :  { %3936 = vmatmul.mubr.msk.f32.gmra.mxu0 %vm78_vm0, %v59_v25  ;;  %v1052_v25 = vld [vmem:[%s6964_s3 + $0x18] sm:$0xff] }
  0x33   :  { %3938 = vmatprep.mubr.msk.f32.mxu0 %vm78_vm0, %v60_v26  ;;  %v1132_v26 = vld [vmem:[%s6964_s3 + $0x298] sm:$0xff]  ;;  %3364 = vmatpush3.msra.mxu1 %v1052_v25 }
  0x34   :  { %3433 = vmatprep.subr.mxu0 %v1132_v26 }
  0x36   :  { %3939 = vmatmul.mubr.msk.f32.gmra.mxu0 %vm78_vm0, %v61_v27  ;;  %v1067_v27 = vld [vmem:[%s6964_s3 + $0x90] sm:$0xff] }
  0x37   :  { %3941 = vmatprep.mubr.msk.f32.mxu0 %vm78_vm0, %v62_v28  ;;  %v1116_v28 = vld [vmem:[%s6964_s3 + $0x218] sm:$0xff]  ;;  %3365 = vmatprep.subr.mxu1 %v1067_v27 }
  0x38   :  { %3434 = vmatpush3.msra.mxu0 %v1116_v28 }
  0x3a   :  { %3942 = vmatmul.mubr.msk.f32.gmra.mxu0 %vm78_vm0, %v63_v29  ;;  %v1051_v29 = vld [vmem:[%s6964_s3 + $0x10] sm:$0xff] }
  0x3b   :  { %3944 = vmatprep.mubr.msk.f32.mxu0 %vm78_vm0, %v64_v30  ;;  %v1131_v30 = vld [vmem:[%s6964_s3 + $0x290] sm:$0xff]  ;;  %3366 = vmatpush3.msra.mxu1 %v1051_v29 }
  0x3c   :  { %3435 = vmatprep.subr.mxu0 %v1131_v30 }
  0x3e   :  { %3945 = vmatmul.mubr.msk.f32.gmra.mxu0 %vm78_vm0, %v65_v31  ;;  %v1066_v31 = vld [vmem:[%s6964_s3 + $0x88] sm:$0xff] }
  0x3f   :  { %3947 = vmatprep.mubr.msk.f32.mxu0 %vm78_vm0, %v66_v32  ;;  %v1115_v32 = vld [vmem:[%s6964_s3 + $0x210] sm:$0xff]  ;;  %3367 = vmatprep.subr.mxu1 %v1066_v31 }
  0x40   :  { %3436 = vmatpush3.msra.mxu0 %v1115_v32 }
  0x42   :  { %3948 = vmatmul.mubr.msk.f32.gmra.mxu0 %vm78_vm0, %v67_v33  ;;  %v1050_v33 = vld [vmem:[%s6964_s3 + $0x8] sm:$0xff] }
  0x43   :  { %3950 = vmatprep.mubr.msk.f32.mxu0 %vm78_vm0, %v68_v34  ;;  %v1130_v34 = vld [vmem:[%s6964_s3 + $0x288] sm:$0xff]  ;;  %3368 = vmatpush3.msra.mxu1 %v1050_v33 }
  0x44   :  { %3437 = vmatprep.subr.mxu0 %v1130_v34 }
  0x46   :  { %3951 = vmatmul.mubr.msk.f32.gmra.mxu0 %vm78_vm0, %v69_v35  ;;  %v1065_v35 = vld [vmem:[%s6964_s3 + $0x80] sm:$0xff] }
  0x47   :  { %3953 = vmatprep.mubr.msk.f32.mxu0 %vm78_vm0, %v70_v36  ;;  %v1114_v36 = vld [vmem:[%s6964_s3 + $0x208] sm:$0xff]  ;;  %3369 = vmatprep.subr.mxu1 %v1065_v35 }
  0x48   :  { %3438 = vmatpush3.msra.mxu0 %v1114_v36 }
  0x4a   :  { %3954 = vmatmul.mubr.msk.f32.gmra.mxu0 %vm78_vm0, %v71_v37  ;;  %v1049_v37 = vld [vmem:[%s6964_s3] sm:$0xff] }
  0x4b   :  { %3956 = vmatprep.mubr.msk.f32.mxu0 %vm78_vm0, %v72_v38  ;;  %3370 = vmatpush3.msra.mxu1 %v1049_v37  ;;  %v1129_v38 = vld [vmem:[%s6964_s3 + $0x280] sm:$0xff] }
  0x4c   :  { %3439 = vmatprep.subr.mxu0 %v1129_v38 }
  0x4d   :  { %3440 = vmatpush3.msra.mxu0 %v1113_v40 }
  0x4e   :  { %3957 = vmatmul.mubr.msk.f32.gmra.mxu0 %vm78_vm0, %v73_v39  ;;  %v1112_v39 = vld [vmem:[%s6964_s3 + $0x1f8] sm:$0xff]  ;;  %3479 = vmatprep.subr.mxu0 %v1208_v41 }
  0x4f   :  { %3374 = vmatprep.subr.mxu1 %v1112_v39 }
  0xca   :  { %v3907_v42 = vpop.f32.mrf.mxu0 }
  0xcc   :  { %v253_v43 = vpop.f32.mrf.mxu0 }
  0xce   :  { %v3910_v44 = vpop.f32.mrf.mxu0 }
  0xd0   :  { %v263_v45 = vpop.f32.mrf.mxu0 }
  0xd2   :  { %v3913_v46 = vpop.f32.mrf.mxu0 }
  0xd3   :  { %v444_v3 = vrot.slane %v3913_v46, 4 }
  0xd4   :  { %v273_v47 = vpop.f32.mrf.mxu0 }
  0xd5   :  { %v443_v1 = vrot.slane %v273_v47, 4 }
  0xd6   :  { %v3916_v48 = vpop.f32.mrf.mxu0 }
  0xd7   :  { %v448_v52 = vrot.slane %v3916_v48, 4  ;;  %v445_v8 = vsel %vm442_vm1, %v443_v1, %v444_v3 }
  0xd8   :  { %v283_v49 = vpop.f32.mrf.mxu0  ;;  %v471_v15 = vmax.f32 %v253_v43, %v445_v8 }
  0xd9   :  { %v446_v5 = vrot.slane %v283_v49, 4 }
  0xda   :  { %v3919_v50 = vpop.f32.mrf.mxu0 }
  0xdb   :  { %v447_v16 = vsel %vm442_vm1, %v444_v3, %v446_v5  ;;  %v449_v19 = vsel %vm442_vm1, %v446_v5, %v448_v52  ;;  %v481_v26 = vmax.f32 %v471_v15, %v3919_v50 }
  0xdc   :  { %v293_v51 = vpop.f32.mrf.mxu0  ;;  %v472_v24 = vmax.f32 %v3907_v42, %v447_v16  ;;  %v473_v27 = vmax.f32 %v263_v45, %v449_v19 }
  0xdd   :  { %v450_v53 = vrot.slane %v293_v51, 4 }
  0xde   :  { %v3922_v54 = vpop.f32.mrf.mxu0 }
  0xdf   :  { %v475_v55 = vmax.f32 %v273_v47, %v450_v53  ;;  %v451_v56 = vsel %vm442_vm1, %v448_v52, %v450_v53  ;;  %v483_v35 = vmax.f32 %v473_v27, %v3922_v54 }
  0xe0   :  { %v303_v57 = vpop.f32.mrf.mxu0  ;;  %v474_v58 = vmax.f32 %v3910_v44, %v451_v56 }
  0xe1   :  { %v482_v30 = vmax.f32 %v472_v24, %v303_v57 }
  0xe2   :  { %v3925_v59 = vpop.f32.mrf.mxu0 }
  0xe3   :  { %v485_v60 = vmax.f32 %v475_v55, %v3925_v59  ;;  %v501_v20 = vrot.slane %v3925_v59, 4 }
  0xe4   :  { %v313_v61 = vpop.f32.mrf.mxu0 }
  0xe5   :  { %v484_v62 = vmax.f32 %v474_v58, %v313_v61 }
  0xe6   :  { %v3928_v63 = vpop.f32.mrf.mxu0 }
  0xe7   :  { %v504_v21 = vrot.slane %v3928_v63, 4 }
  0xe8   :  { %v323_v0 = vpop.f32.mrf.mxu0 }
  0xe9   :  { %v502_v12 = vrot.slane %v323_v0, 4 }
  0xea   :  { %v3931_v2 = vpop.f32.mrf.mxu0 }
  0xeb   :  { %v508_v4 = vrot.slane %v3931_v2, 4  ;;  %v503_v25 = vsel %vm442_vm1, %v501_v20, %v502_v12  ;;  %v505_v28 = vsel %vm442_vm1, %v502_v12, %v504_v21 }
  0xec   :  { %v333_v7 = vpop.f32.mrf.mxu0  ;;  %v529_v31 = vmax.f32 %v481_v26, %v503_v25  ;;  %v530_v33 = vmax.f32 %v482_v30, %v505_v28 }
  0xed   :  { %v533_v9 = vmax.f32 %v485_v60, %v508_v4  ;;  %v506_v10 = vrot.slane %v333_v7, 4 }
  0xee   :  { %v4524_v11 = vpop.f32.mrf.mxu0  ;;  %v546_v37 = vadd.f32 %v4521_v6, %v529_v31  ;;  %v547_v40 = vadd.f32 %v4521_v6, %v530_v33 }
  0xef   :  { %v550_v13 = vadd.f32 %v4521_v6, %v533_v9  ;;  %v509_v14 = vsel %vm442_vm1, %v506_v10, %v508_v4  ;;  %v507_v34 = vsel %vm442_vm1, %v504_v21, %v506_v10 }
  0xf0   :  { %v532_v17 = vmax.f32 %v484_v62, %v509_v14  ;;  %v4529_v18 = vpop.f32.mrf.mxu0  ;;  %v531_v38 = vmax.f32 %v483_v35, %v507_v34  ;;  %v4540_v42 = vmax.f32 %v546_v37, 0.0  ;;  %v4543_v45 = vmax.f32 %v547_v40, 0.0 }
  0xf1   :  { %v4545_v49 = vmax.f32 %v550_v13, 0.0 }
  0xf2   :  { %v549_v22 = vadd.f32 %v4521_v6, %v532_v17  ;;  %v3937_v23 = vpop.f32.mrf.mxu0  ;;  %v548_v43 = vadd.f32 %v4521_v6, %v531_v38  ;;  %v4552_v52 = vrot.slane %v4540_v42, 1  ;;  %v4558_v56 = vrot.slane %v4543_v45, 1 }
  0xf3   :  { %v587_v59 = vrot.slane %v4540_v42, 6  ;;  %v4562_v60 = vrot.slane %v4543_v45, 6  ;;  %v715_v61 = vrot.slane %v4543_v45, 3  ;;  %v579_v0 = vrot.slane %v4540_v42, 3 }
  0xf4   :  { %v4535_v29 = vpop.f32.mrf.mxu0  ;;  %v4547_v50 = vmax.f32 %v548_v43, 0.0  ;;  %v4567_v1 = vrot.slane %v4543_v45, 4  ;;  %v4569_v2 = vmax.f32 %v549_v22, 0.0  ;;  %v4572_v4 = vrot.slane %v4543_v45, 2 }
  0xf5   :  { %v4583_v10 = vrot.slane %v4543_v45, 7  ;;  %v888_v14 = vrot.slane %v4558_v56, 1  ;;  %v899_v15 = vrot.slane %v4562_v60, 1  ;;  %v4592_v16 = vrot.slane %v715_v61, 1 }
  0xf6   :  { %v3940_v32 = vpop.f32.mrf.mxu0  ;;  %v4575_v5 = vrot.slane %v4547_v50, 2  ;;  %v4578_v7 = vrot.slane %v4547_v50, 1  ;;  %v4586_v12 = vrot.slane %v4547_v50, 7  ;;  %v583_v17 = vrot.slane %v4540_v42, 4 }
  0xf7   :  { %v453_v62 = vrot.slane %v3940_v32, 4  ;;  %v896_v21 = vrot.slane %v4567_v1, 1  ;;  %v575_v22 = vrot.slane %v4540_v42, 2  ;;  %v890_v26 = vrot.slane %v4572_v4, 1 }
  0xf8   :  { %v363_v36 = vpop.f32.mrf.mxu0  ;;  %v909_v25 = vrot.slane %v4575_v5, 1  ;;  %v907_v27 = vrot.slane %v4578_v7, 1  ;;  %v921_v30 = vrot.slane %v4586_v12, 1  ;;  %v591_v31 = vrot.slane %v4540_v42, 7 }
  0xf9   :  { %v452_v53 = vrot.slane %v363_v36, 4  ;;  %v902_v32 = vrot.slane %v4583_v10, 1  ;;  %v727_v35 = vrot.slane %v4547_v50, 5  ;;  %v724_v40 = vrot.slane %v4547_v50, 4 }
  0xfa   :  { %v3943_v39 = vpop.f32.mrf.mxu0 }
  0xfb   :  { %v457_v47 = vrot.slane %v3943_v39, 4  ;;  %v454_v8 = vsel %vm442_vm1, %v452_v53, %v453_v62 }
  0xfc   :  { %v373_v41 = vpop.f32.mrf.mxu0 }
  0xfd   :  { %v455_v63 = vrot.slane %v373_v41, 4 }
  0xfe   :  { %v3946_v44 = vpop.f32.mrf.mxu0 }
  0xff   :  { %v456_v19 = vsel %vm442_vm1, %v453_v62, %v455_v63  ;;  %v458_v28 = vsel %vm442_vm1, %v455_v63, %v457_v47 }
 0x100   :  { %v383_v46 = vpop.f32.mrf.mxu0  ;;  %v477_v33 = vmax.f32 %v4524_v11, %v456_v19  ;;  %v478_v43 = vmax.f32 %v4535_v29, %v458_v28  ;;  %v4615_v11 = vrot.slane %v4569_v2, 2  ;;  %v4624_v29 = vrot.slane %v727_v35, 1 }
 0x101   :  { %v459_v48 = vrot.slane %v383_v46, 4 }
 0x102   :  { %v4549_v51 = vpop.f32.mrf.mxu0  ;;  %v926_v28 = vrot.slane %v4615_v11, 1 }
 0x103   :  { %v4554_v54 = vmax.f32 %v363_v36, %v459_v48  ;;  %v460_v55 = vsel %vm442_vm1, %v457_v47, %v459_v48  ;;  %v730_v36 = vrot.slane %v4547_v50, 6  ;;  %v488_v19 = vmax.f32 %v478_v43, %v4549_v51 }
 0x104   :  { %v393_v57 = vpop.f32.mrf.mxu0  ;;  %v479_v58 = vmax.f32 %v3937_v23, %v460_v55  ;;  %v476_v23 = vmax.f32 %v4529_v18, %v454_v8  ;;  %v611_v18 = vrot.slane %v4543_v45, 5  ;;  %v4620_v55 = vrot.slane %v4569_v2, 1 }
 0x105   :  { %v487_v46 = vmax.f32 %v477_v33, %v393_v57  ;;  %v4627_v57 = vrot.slane %v4569_v2, 6  ;;  %v4631_v8 = vrot.slane %v730_v36, 1 }
 0x106   :  { %v3952_v3 = vpop.f32.mrf.mxu0  ;;  %v486_v41 = vmax.f32 %v476_v23, %v3946_v44 }
 0x107   :  { %v490_v9 = vmax.f32 %v4554_v54, %v3952_v3  ;;  %v510_v37 = vrot.slane %v3952_v3, 4 }
 0x108   :  { %v403_v13 = vpop.f32.mrf.mxu0 }
 0x109   :  { %v4596_v20 = vmax.f32 %v479_v58, %v403_v13  ;;  %v4635_v13 = vrot.slane %v724_v40, 1 }
 0x10a   :  { %v3955_v24 = vpop.f32.mrf.mxu0 }
 0x10b   :  { %v513_v38 = vrot.slane %v3955_v24, 4 }
 0x10c   :  { %v413_v34 = vpop.f32.mrf.mxu0 }
 0x10d   :  { %v511_v39 = vrot.slane %v413_v34, 4 }
 0x10e   :  { %v3958_v47 = vpop.f32.mrf.mxu0 }
 0x10f   :  { %v512_v48 = vsel %vm442_vm1, %v510_v37, %v511_v39  ;;  %v514_v53 = vsel %vm442_vm1, %v511_v39, %v513_v38  ;;  %v517_v54 = vrot.slane %v3958_v47, 4 }
 0x110   :  { %v534_v58 = vmax.f32 %v486_v41, %v512_v48  ;;  %v535_v62 = vmax.f32 %v487_v46, %v514_v53  ;;  %v423_v44 = vpop.f32.mrf.mxu0  ;;  %v4655_v53 = vrot.slane %v4569_v2, 5 }
 0x111   :  { %v538_v63 = vmax.f32 %v490_v9, %v517_v54  ;;  %v515_v3 = vrot.slane %v423_v44, 4 }
 0x112   :  { %v551_v23 = vadd.f32 %v4521_v6, %v534_v58  ;;  %v552_v24 = vadd.f32 %v4521_v6, %v535_v62 }
 0x113   :  { %v555_v9 = vadd.f32 %v4521_v6, %v538_v63  ;;  %v516_v33 = vsel %vm442_vm1, %v513_v38, %v515_v3  ;;  %v518_v34 = vsel %vm442_vm1, %v515_v3, %v517_v54 }
 0x114   :  { %v4645_v39 = vmax.f32 %v551_v23, 0.0  ;;  %v4647_v41 = vmax.f32 %v552_v24, 0.0  ;;  %v536_v46 = vmax.f32 %v488_v19, %v516_v33  ;;  %v537_v51 = vmax.f32 %v4596_v20, %v518_v34 }
 0x115   :  { %v4650_v43 = vmax.f32 %v555_v9, 0.0 }
 0x116   :  { %v553_v38 = vadd.f32 %v4521_v6, %v536_v46  ;;  %v554_v54 = vadd.f32 %v4521_v6, %v537_v51  ;;  %v573_v58 = vsel %vm569_vm2, %v4645_v39, %v4552_v52  ;;  %v4663_v62 = vrot.slane %v4647_v41, 1 }
 0x117   :  { %v675_v20 = vsel %vm673_vm3, %v4645_v39, %v4552_v52  ;;  %v713_v44 = vsel %vm711_vm4, %v4645_v39, %v4552_v52  ;;  %v568_v63 = vrot.slane %v4645_v39, 7  ;;  %v588_v3 = vrot.slane %v4645_v39, 5 }
 0x118   :  { %v4673_v6 = vmax.f32 %v553_v38, 0.0  ;;  %v4675_v19 = vmax.f32 %v554_v54, 0.0  ;;  %v786_v23 = vrot.slane %v675_v20, 7  ;;  %v836_v24 = vrot.slane %v713_v44, 2 }
 0x119   :  { %v889_v9 = vsel %vm885_vm5, %v888_v14, %v4663_v62  ;;  %v570_v33 = vsel %vm569_vm2, %v568_v63, %v4540_v42  ;;  %v674_v34 = vsel %vm673_vm3, %v568_v63, %v4540_v42  ;;  %v712_v46 = vsel %vm711_vm4, %v568_v63, %v4540_v42 }
 0x11a   :  { %v974_v51 = vsel %vm972_vm6, %v573_v58, %v786_v23  ;;  %v785_v38 = vrot.slane %v674_v34, 7  ;;  %v835_v54 = vrot.slane %v712_v46, 2  ;;  %v886_v20 = vrot.slane %v568_v63, 1  ;;  %v1096_v34 = vld [vmem:[%s6964_s3 + $0x178] sm:$0xff] }
 0x11b   :  { %v999_v44 = vsel %vm442_vm1, %v974_v51, %v836_v24  ;;  %v589_v14 = vsel %vm569_vm2, %v588_v3, %v587_v59  ;;  %v4693_v48 = vrot.slane %v4647_v41, 5  ;;  %v679_v47 = vsel %vm673_vm3, %v588_v3, %v587_v59 }
 0x11c   :  { %v1025_v37 = vsel %vm1023_vm7, %v999_v44, %v889_v9  ;;  %v887_v58 = vsel %vm885_vm5, %v4552_v52, %v886_v20  ;;  %v973_v63 = vsel %vm972_vm6, %v570_v33, %v785_v38  ;;  %v790_v23 = vrot.slane %v679_v47, 7  ;;  %v1095_v44 = vld [vmem:[%s6964_s3 + $0x170] sm:$0xff] }
 0x11d   :  { %1513 = vmatprep.mubr.f32.mxu1 %v1025_v37  ;;  %v998_v24 = vsel %vm442_vm1, %v973_v63, %v835_v54  ;;  %v719_v46 = vsel %vm711_vm4, %v4693_v48, %v4562_v60  ;;  %v900_v59 = vrot.slane %v4693_v48, 1  ;;  %v580_v3 = vrot.slane %v4645_v39, 2  ;;  %v1111_v37 = vld [vmem:[%s6964_s3 + $0x1f0] sm:$0xff] }
 0x11e   :  { %v1024_v52 = vsel %vm1023_vm7, %v998_v24, %v887_v58  ;;  %v840_v9 = vrot.slane %v719_v46, 2  ;;  %v978_v47 = vsel %vm972_vm6, %v589_v14, %v790_v23  ;;  %v716_v33 = vrot.slane %v4647_v41, 2  ;;  %v1110_v23 = vld [vmem:[%s6964_s3 + $0x1e8] sm:$0xff] }
 0x11f   :  { %1514 = vmatmul.mubr.f32.vlgmr.msra.gmra.mxu1 %v1024_v52  ;;  %v901_v51 = vsel %vm885_vm5, %v899_v15, %v900_v59  ;;  %v581_v38 = vsel %vm569_vm2, %v580_v3, %v579_v0  ;;  %v677_v54 = vsel %vm673_vm3, %v580_v3, %v579_v0  ;;  %v584_v20 = vrot.slane %v4645_v39, 3 }
 0x120   :  { %3375 = vmatpush3.msra.mxu1 %v1096_v34  ;;  %v1003_v14 = vsel %vm442_vm1, %v978_v47, %v840_v9  ;;  %v717_v15 = vsel %vm711_vm4, %v716_v33, %v715_v61  ;;  %v788_v58 = vrot.slane %v677_v54, 7  ;;  %v894_v63 = vrot.slane %v716_v33, 1  ;;  %v1094_v61 = vld [vmem:[%s6964_s3 + $0x168] sm:$0xff]  ;;  %v1109_v47 = vld [vmem:[%s6964_s3 + $0x1e0] sm:$0xff] }
 0x121   :  { %v1029_v0 = vsel %vm1023_vm7, %v1003_v14, %v901_v51  ;;  %3376 = vmatprep.subr.mxu1 %v1111_v37  ;;  %v838_v24 = vrot.slane %v717_v15, 2  ;;  %v585_v34 = vsel %vm569_vm2, %v584_v20, %v583_v17  ;;  %v4742_v46 = vrot.slane %v4647_v41, 3  ;;  %v1108_v14 = vld [vmem:[%s6964_s3 + $0x1d8] sm:$0xff] }
 0x122   :  { %1653 = vmatprep.mubr.f32.mxu0 %v1029_v0  ;;  %v895_v59 = vsel %vm885_vm5, %v4592_v16, %v894_v63  ;;  %v976_v3 = vsel %vm972_vm6, %v581_v38, %v788_v58  ;;  %v678_v52 = vsel %vm673_vm3, %v584_v20, %v583_v17  ;;  %3377 = vmatpush3.msra.mxu1 %v1095_v44  ;;  %v4754_v9 = vrot.slane %v4673_v6, 1  ;;  %v1093_v17 = vld [vmem:[%s6964_s3 + $0x160] sm:$0xff]  ;;  %v1092_v0 = vld [vmem:[%s6964_s3 + $0x158] sm:$0xff] }
 0x123   :  { %v1001_v37 = vsel %vm442_vm1, %v976_v3, %v838_v24  ;;  %v718_v16 = vsel %vm711_vm4, %v4742_v46, %v4567_v1  ;;  %v789_v33 = vrot.slane %v678_v52, 7  ;;  %v897_v51 = vrot.slane %v4742_v46, 1  ;;  %3378 = vmatprep.subr.mxu1 %v1110_v23 }
 0x124   :  { %v1027_v38 = vsel %vm1023_vm7, %v1001_v37, %v895_v59  ;;  %v839_v54 = vrot.slane %v718_v16, 2  ;;  %v605_v20 = vsel %vm569_vm2, %v4663_v62, %v4572_v4  ;;  %v683_v44 = vsel %vm673_vm3, %v4663_v62, %v4572_v4  ;;  %3379 = vmatpush3.msra.mxu1 %v1094_v61  ;;  %v1192_v61 = vld [vmem:[%s6964_s3 + $0x478] sm:$0xff] }
 0x125   :  { %1583 = vmatprep.mubr.f32.mxu1 %v1027_v38  ;;  %v898_v15 = vsel %vm885_vm5, %v896_v21, %v897_v51  ;;  %v977_v58 = vsel %vm972_vm6, %v585_v34, %v789_v33  ;;  %v723_v63 = vsel %vm711_vm4, %v4754_v9, %v4575_v5  ;;  %v794_v23 = vrot.slane %v683_v44, 7  ;;  %3380 = vmatprep.subr.mxu1 %v1109_v47  ;;  %v1107_v34 = vld [vmem:[%s6964_s3 + $0x1d0] sm:$0xff] }
 0x126   :  { %v1002_v24 = vsel %vm442_vm1, %v977_v58, %v839_v54  ;;  %v844_v59 = vrot.slane %v723_v63, 2  ;;  %v910_v21 = vrot.slane %v4754_v9, 1  ;;  %3381 = vmatpush3.msra.mxu1 %v1093_v17  ;;  %v576_v3 = vrot.slane %v4645_v39, 1  ;;  %v1207_v47 = vld [vmem:[%s6964_s3 + $0x4f0] sm:$0xff] }
 0x127   :  { %v1028_v52 = vsel %vm1023_vm7, %v1002_v24, %v898_v15  ;;  %v982_v37 = vsel %vm972_vm6, %v605_v20, %v794_v23  ;;  %3382 = vmatprep.subr.mxu1 %v1108_v14  ;;  %v714_v16 = vsel %vm711_vm4, %v4663_v62, %v4572_v4  ;;  %v891_v33 = vrot.slane %v4663_v62, 1  ;;  %v1191_v51 = vld [vmem:[%s6964_s3 + $0x470] sm:$0xff]  ;;  %v1206_v14 = vld [vmem:[%s6964_s3 + $0x4e8] sm:$0xff] }
 0x128   :  { %1654 = vmatmul.mubr.f32.vlgmr.msra.gmra.mxu0 %v1028_v52  ;;  %v911_v17 = vsel %vm885_vm5, %v909_v25, %v910_v21  ;;  %v1007_v38 = vsel %vm442_vm1, %v982_v37, %v844_v59  ;;  %3383 = vmatpush3.msra.mxu1 %v1092_v0  ;;  %v1091_v54 = vld [vmem:[%s6964_s3 + $0x150] sm:$0xff]  ;;  %v577_v62 = vsel %vm569_vm2, %v576_v3, %v575_v22  ;;  %v837_v20 = vrot.slane %v714_v16, 2  ;;  %v1106_v25 = vld [vmem:[%s6964_s3 + $0x1c8] sm:$0xff]  ;;  %v1105_v59 = vld [vmem:[%s6964_s3 + $0x1c0] sm:$0xff] }
 0x129   :  { %3480 = vmatpush3.msra.mxu0 %v1192_v61  ;;  %v1033_v44 = vsel %vm1023_vm7, %v1007_v38, %v911_v17  ;;  %3384 = vmatprep.subr.mxu1 %v1107_v34  ;;  %v676_v15 = vsel %vm673_vm3, %v576_v3, %v575_v22  ;;  %v892_v58 = vsel %vm885_vm5, %v890_v26, %v891_v33  ;;  %v597_v63 = vrot.slane %v4647_v41, 7  ;;  %v1190_v23 = vld [vmem:[%s6964_s3 + $0x468] sm:$0xff]  ;;  %v1205_v61 = vld [vmem:[%s6964_s3 + $0x4e0] sm:$0xff]  ;;  %v1204_v38 = vld [vmem:[%s6964_s3 + $0x4d8] sm:$0xff] }
 0x12a   :  { %3481 = vmatprep.subr.mxu0 %v1207_v47  ;;  %1793 = vmatprep.mubr.f32.mxu0 %v1033_v44  ;;  %v1090_v0 = vld [vmem:[%s6964_s3 + $0x148] sm:$0xff]  ;;  %v787_v24 = vrot.slane %v676_v15, 7  ;;  %v601_v22 = vsel %vm569_vm2, %v4647_v41, %v4558_v56  ;;  %v682_v4 = vsel %vm673_vm3, %v4647_v41, %v4558_v56  ;;  %v722_v26 = vsel %vm711_vm4, %v4647_v41, %v4558_v56  ;;  %v1189_v47 = vld [vmem:[%s6964_s3 + $0x460] sm:$0xff]  ;;  %v1188_v15 = vld [vmem:[%s6964_s3 + $0x458] sm:$0xff] }
 0x12b   :  { %3482 = vmatpush3.msra.mxu0 %v1191_v51  ;;  %3385 = vmatpush3.msra.mxu1 %v1091_v54  ;;  %v598_v21 = vsel %vm569_vm2, %v597_v63, %v4543_v45  ;;  %v681_v34 = vsel %vm673_vm3, %v597_v63, %v4543_v45  ;;  %v721_v3 = vsel %vm711_vm4, %v597_v63, %v4543_v45  ;;  %v905_v52 = vrot.slane %v597_v63, 1  ;;  %v1089_v37 = vld [vmem:[%s6964_s3 + $0x140] sm:$0xff]  ;;  %v1104_v54 = vld [vmem:[%s6964_s3 + $0x1b8] sm:$0xff] }
 0x12c   :  { %3483 = vmatprep.subr.mxu0 %v1206_v14  ;;  %3386 = vmatprep.subr.mxu1 %v1106_v25  ;;  %v975_v16 = vsel %vm972_vm6, %v577_v62, %v787_v24  ;;  %v792_v33 = vrot.slane %v681_v34, 7  ;;  %v842_v51 = vrot.slane %v721_v3, 2  ;;  %v793_v17 = vrot.slane %v682_v4, 7  ;;  %v1088_v63 = vld [vmem:[%s6964_s3 + $0x138] sm:$0xff]  ;;  %v1103_v24 = vld [vmem:[%s6964_s3 + $0x1b0] sm:$0xff] }
 0x12d   :  { %3484 = vmatpush3.msra.mxu0 %v1190_v23  ;;  %3387 = vmatpush3.msra.mxu1 %v1090_v0  ;;  %v1000_v44 = vsel %vm442_vm1, %v975_v16, %v837_v20  ;;  %v906_v14 = vsel %vm885_vm5, %v4558_v56, %v905_v52  ;;  %v843_v25 = vrot.slane %v722_v26, 2  ;;  %v908_v62 = vsel %vm885_vm5, %v907_v27, %v4754_v9  ;;  %v1203_v27 = vld [vmem:[%s6964_s3 + $0x4d0] sm:$0xff]  ;;  %v1202_v52 = vld [vmem:[%s6964_s3 + $0x4c8] sm:$0xff] }
 0x12e   :  { %3485 = vmatprep.subr.mxu0 %v1205_v61  ;;  %3388 = vmatprep.subr.mxu1 %v1105_v59  ;;  %v4886_v20 = vsel %vm1023_vm7, %v1000_v44, %v892_v58  ;;  %v980_v56 = vsel %vm972_vm6, %v598_v21, %v792_v33  ;;  %v981_v23 = vsel %vm972_vm6, %v601_v22, %v793_v17  ;;  %v620_v0 = vrot.slane %v4647_v41, 6  ;;  %v1187_v61 = vld [vmem:[%s6964_s3 + $0x450] sm:$0xff]  ;;  %v1186_v17 = vld [vmem:[%s6964_s3 + $0x448] sm:$0xff] }
 0x12f   :  { %3486 = vmatpush3.msra.mxu0 %v1189_v47  ;;  %3389 = vmatpush3.msra.mxu1 %v1089_v37  ;;  %v1005_v58 = vsel %vm442_vm1, %v980_v56, %v842_v51  ;;  %v1006_v4 = vsel %vm442_vm1, %v981_v23, %v843_v25  ;;  %v688_v26 = vrot.slane %v4673_v6, 6  ;;  %v592_v22 = vrot.slane %v4645_v39, 6  ;;  %v1087_v59 = vld [vmem:[%s6964_s3 + $0x130] sm:$0xff]  ;;  %v1102_v47 = vld [vmem:[%s6964_s3 + $0x1a8] sm:$0xff]  ;;  %v1101_v25 = vld [vmem:[%s6964_s3 + $0x1a0] sm:$0xff] }
 0x130   :  { %3487 = vmatprep.subr.mxu0 %v1204_v38  ;;  %3390 = vmatprep.subr.mxu1 %v1104_v54  ;;  %v4908_v21 = vsel %vm1023_vm7, %v1005_v58, %v906_v14  ;;  %v4911_v34 = vsel %vm1023_vm7, %v1006_v4, %v908_v62  ;;  %v621_v39 = vsel %vm569_vm2, %v620_v0, %v4583_v10  ;;  %v903_v3 = vrot.slane %v620_v0, 1  ;;  %v1086_v38 = vld [vmem:[%s6964_s3 + $0x128] sm:$0xff]  ;;  %v1185_v23 = vld [vmem:[%s6964_s3 + $0x440] sm:$0xff] }
 0x131   :  { %3488 = vmatpush3.msra.mxu0 %v1188_v15  ;;  %3391 = vmatpush3.msra.mxu1 %v1088_v63  ;;  %v689_v37 = vsel %vm673_vm3, %v688_v26, %v4586_v12  ;;  %v733_v16 = vsel %vm711_vm4, %v688_v26, %v4586_v12  ;;  %v922_v33 = vrot.slane %v688_v26, 1  ;;  %v593_v51 = vsel %vm569_vm2, %v592_v22, %v591_v31  ;;  %v1201_v31 = vld [vmem:[%s6964_s3 + $0x4c0] sm:$0xff]  ;;  %v1184_v22 = vld [vmem:[%s6964_s3 + $0x438] sm:$0xff] }
 0x132   :  { %3489 = vmatprep.subr.mxu0 %v1203_v27  ;;  %3392 = vmatprep.subr.mxu1 %v1103_v24  ;;  %v798_v54 = vrot.slane %v689_v37, 7  ;;  %v848_v44 = vrot.slane %v733_v16, 2  ;;  %v680_v14 = vsel %vm673_vm3, %v620_v0, %v4583_v10  ;;  %v720_v42 = vsel %vm711_vm4, %v620_v0, %v4583_v10  ;;  %v1085_v0 = vld [vmem:[%s6964_s3 + $0x120] sm:$0xff]  ;;  %v1100_v24 = vld [vmem:[%s6964_s3 + $0x198] sm:$0xff] }
 0x133   :  { %3490 = vmatpush3.msra.mxu0 %v1187_v61  ;;  %3393 = vmatpush3.msra.mxu1 %v1087_v59  ;;  %v923_v62 = vsel %vm885_vm5, %v921_v30, %v922_v33  ;;  %v791_v15 = vrot.slane %v680_v14, 7  ;;  %v841_v63 = vrot.slane %v720_v42, 2  ;;  %v904_v56 = vsel %vm885_vm5, %v902_v32, %v903_v3  ;;  %v1200_v32 = vld [vmem:[%s6964_s3 + $0x4b8] sm:$0xff]  ;;  %v1199_v3 = vld [vmem:[%s6964_s3 + $0x4b0] sm:$0xff] }
 0x134   :  { %3491 = vmatprep.subr.mxu0 %v1202_v52  ;;  %3394 = vmatprep.subr.mxu1 %v1102_v47  ;;  %v986_v12 = vsel %vm972_vm6, %v621_v39, %v798_v54  ;;  %v612_v30 = vrot.slane %v4647_v41, 4  ;;  %v728_v27 = vrot.slane %v4673_v6, 4  ;;  %v617_v10 = vsel %vm569_vm2, %v4693_v48, %v4562_v60  ;;  %v1084_v61 = vld [vmem:[%s6964_s3 + $0x118] sm:$0xff]  ;;  %v1099_v52 = vld [vmem:[%s6964_s3 + $0x190] sm:$0xff] }
 0x135   :  { %3492 = vmatpush3.msra.mxu0 %v1186_v17  ;;  %3395 = vmatpush3.msra.mxu1 %v1086_v38  ;;  %v1011_v58 = vsel %vm442_vm1, %v986_v12, %v848_v44  ;;  %v979_v41 = vsel %vm972_vm6, %v593_v51, %v791_v15  ;;  %v686_v4 = vsel %vm673_vm3, %v4693_v48, %v4562_v60  ;;  %v731_v26 = vrot.slane %v4673_v6, 5  ;;  %v1183_v51 = vld [vmem:[%s6964_s3 + $0x430] sm:$0xff]  ;;  %v1098_v44 = vld [vmem:[%s6964_s3 + $0x188] sm:$0xff] }
 0x136   :  { %3493 = vmatprep.subr.mxu0 %v1201_v31  ;;  %3396 = vmatprep.subr.mxu1 %v1101_v25  ;;  %v4981_v59 = vsel %vm1023_vm7, %v1011_v58, %v923_v62  ;;  %v1004_v39 = vsel %vm442_vm1, %v979_v41, %v841_v63  ;;  %v613_v60 = vsel %vm569_vm2, %v612_v30, %v611_v18  ;;  %v916_v48 = vrot.slane %v728_v27, 1  ;;  %v1083_v17 = vld [vmem:[%s6964_s3 + $0x110] sm:$0xff]  ;;  %v1082_v25 = vld [vmem:[%s6964_s3 + $0x108] sm:$0xff] }
 0x137   :  { %3494 = vmatpush3.msra.mxu0 %v1185_v23  ;;  %3397 = vmatpush3.msra.mxu1 %v1085_v0  ;;  %v4994_v47 = vsel %vm1023_vm7, %v1004_v39, %v904_v56  ;;  %v685_v37 = vsel %vm673_vm3, %v612_v30, %v611_v18  ;;  %v729_v16 = vsel %vm711_vm4, %v728_v27, %v727_v35  ;;  %v797_v33 = vrot.slane %v686_v4, 7  ;;  %v1198_v35 = vld [vmem:[%s6964_s3 + $0x4a8] sm:$0xff]  ;;  %v1197_v23 = vld [vmem:[%s6964_s3 + $0x4a0] sm:$0xff] }
 0x138   :  { %3495 = vmatprep.subr.mxu0 %v1200_v32  ;;  %3398 = vmatprep.subr.mxu1 %v1100_v24  ;;  %v796_v38 = vrot.slane %v685_v37, 7  ;;  %v846_v54 = vrot.slane %v729_v16, 2  ;;  %v917_v45 = vsel %vm885_vm5, %v4624_v29, %v916_v48  ;;  %v732_v18 = vsel %vm711_vm4, %v731_v26, %v730_v36  ;;  %v1182_v36 = vld [vmem:[%s6964_s3 + $0x428] sm:$0xff]  ;;  %v1097_v0 = vld [vmem:[%s6964_s3 + $0x180] sm:$0xff]  ;;  %v1180_v48 = vld [vmem:[%s6964_s3 + $0x418] sm:$0xff] }
 0x139   :  { %3496 = vmatpush3.msra.mxu0 %v1184_v22  ;;  %3399 = vmatpush3.msra.mxu1 %v1084_v61  ;;  %v847_v14 = vrot.slane %v732_v18, 2  ;;  %v919_v42 = vrot.slane %v731_v26, 1  ;;  %v985_v31 = vsel %vm972_vm6, %v617_v10, %v797_v33  ;;  %v635_v29 = vsel %vm632_vm8, %v4673_v6, %v4578_v7  ;;  %v1181_v32 = vld [vmem:[%s6964_s3 + $0x420] sm:$0xff]  ;;  %v1196_v26 = vld [vmem:[%s6964_s3 + $0x498] sm:$0xff] }
 0x13a   :  { %3497 = vmatprep.subr.mxu0 %v1199_v3  ;;  %3400 = vmatprep.subr.mxu1 %v1099_v52  ;;  %v984_v62 = vsel %vm972_vm6, %v613_v60, %v796_v38  ;;  %v656_v15 = vrot.slane %v635_v29, 3  ;;  %v694_v63 = vsel %vm692_vm9, %v4673_v6, %v4578_v7  ;;  %v739_v56 = vsel %vm673_vm3, %v4675_v19, %v4620_v55  ;;  %v1081_v24 = vld [vmem:[%s6964_s3 + $0x100] sm:$0xff]  ;;  %v1176_v3 = vld [vmem:[%s6964_s3 + $0x3f8] sm:$0xff] }
 0x13b   :  { %3498 = vmatpush3.msra.mxu0 %v1183_v51  ;;  %3401 = vmatpush3.msra.mxu1 %v1083_v17  ;;  %v1009_v12 = vsel %vm442_vm1, %v984_v62, %v846_v54  ;;  %v920_v30 = vsel %vm885_vm5, %v4631_v8, %v919_v42  ;;  %v1010_v27 = vsel %vm442_vm1, %v985_v31, %v847_v14  ;;  %v3271_v10 = vrot.slane %v694_v63, 10  ;;  %v1194_v42 = vld [vmem:[%s6964_s3 + $0x488] sm:$0xff]  ;;  %v1175_v31 = vld [vmem:[%s6964_s3 + $0x3f0] sm:$0xff] }
 0x13c   :  { %3499 = vmatprep.subr.mxu0 %v1198_v35  ;;  %3402 = vmatprep.subr.mxu1 %v1098_v44  ;;  %v5053_v58 = vsel %vm1023_vm7, %v1009_v12, %v917_v45  ;;  %v5056_v41 = vsel %vm1023_vm7, %v1010_v27, %v920_v30  ;;  %v766_v8 = vsel %vm764_vm10, %v4675_v19, %v4620_v55  ;;  %v3280_v4 = vrot.slane %v739_v56, 5  ;;  %v1179_v45 = vld [vmem:[%s6964_s3 + $0x410] sm:$0xff]  ;;  %v1174_v12 = vld [vmem:[%s6964_s3 + $0x3e8] sm:$0xff] }
 0x13d   :  { %3500 = vmatpush3.msra.mxu0 %v1182_v36  ;;  %3403 = vmatpush3.msra.mxu1 %v1082_v25  ;;  %v3289_v22 = vrot.slane %v766_v8, 4  ;;  %v990_v61 = vsel %vm972_vm6, %v656_v15, %v3271_v10  ;;  %v609_v39 = vsel %vm569_vm2, %v4742_v46, %v4567_v1  ;;  %v684_v60 = vsel %vm673_vm3, %v4742_v46, %v4567_v1  ;;  %v1195_v1 = vld [vmem:[%s6964_s3 + $0x490] sm:$0xff]  ;;  %v1160_v46 = vld [vmem:[%s6964_s3 + $0x378] sm:$0xff]  ;;  %v1178_v25 = vld [vmem:[%s6964_s3 + $0x408] sm:$0xff] }
 0x13e   :  { %3501 = vmatprep.subr.mxu0 %v1197_v23  ;;  %3404 = vmatprep.subr.mxu1 %v1097_v0  ;;  %v1015_v52 = vsel %vm442_vm1, %v990_v61, %v3280_v4  ;;  %v725_v37 = vrot.slane %v4673_v6, 3  ;;  %v795_v16 = vrot.slane %v684_v60, 7  ;;  %v630_v33 = vsel %vm569_vm2, %v4754_v9, %v4575_v5  ;;  %v1159_v62 = vld [vmem:[%s6964_s3 + $0x370] sm:$0xff]  ;;  %v1193_v0 = vld [vmem:[%s6964_s3 + $0x480] sm:$0xff] }
 0x13f   :  { %3502 = vmatpush3.msra.mxu0 %v1181_v32  ;;  %3405 = vmatpush3.msra.mxu1 %v1081_v24  ;;  %v5089_v51 = vsel %vm1023_vm7, %v1015_v52, %v3289_v22  ;;  %v691_v17 = vsel %vm673_vm3, %v4754_v9, %v4575_v5  ;;  %v5095_v38 = vrot.slane %v4675_v19, 1  ;;  %v5098_v54 = vrot.slane %v4673_v6, 7  ;;  %v1158_v32 = vld [vmem:[%s6964_s3 + $0x368] sm:$0xff] }
 0x140   :  { %3503 = vmatprep.subr.mxu0 %v1196_v26  ;;  %1584 = vmatmul.mubr.f32.vlgmr.msra.gmra.mxu1 %v4886_v20  ;;  %v726_v18 = vsel %vm711_vm4, %v725_v37, %v724_v40  ;;  %v913_v35 = vrot.slane %v725_v37, 1  ;;  %v983_v44 = vsel %vm972_vm6, %v609_v39, %v795_v16  ;;  %v800_v14 = vrot.slane %v691_v17, 7  ;;  %v1272_v26 = vld [vmem:[%s6964_s3 + $0x6f8] sm:$0xff] }
 0x141   :  { %3504 = vmatpush3.msra.mxu0 %v1180_v48  ;;  %3444 = vmatprep.subr.mxu1 %v1176_v3  ;;  %v845_v29 = vrot.slane %v726_v18, 2  ;;  %v737_v20 = vsel %vm711_vm4, %v5095_v38, %v4615_v11  ;;  %v927_v40 = vrot.slane %v5095_v38, 1  ;;  %v633_v36 = vsel %vm632_vm8, %v5098_v54, %v4547_v50  ;;  %v1256_v48 = vld [vmem:[%s6964_s3 + $0x678] sm:$0xff] }
 0x142   :  { %3505 = vmatprep.subr.mxu0 %v1195_v1  ;;  %3445 = vmatpush3.msra.mxu1 %v1160_v46  ;;  %v914_v15 = vsel %vm885_vm5, %v4635_v13, %v913_v35  ;;  %v850_v63 = vrot.slane %v737_v20, 2  ;;  %v988_v56 = vsel %vm972_vm6, %v630_v33, %v800_v14  ;;  %v5131_v23 = vrot.slane %v4675_v19, 7  ;;  %v1271_v33 = vld [vmem:[%s6964_s3 + $0x6f0] sm:$0xff]  ;;  %v1173_v1 = vld [vmem:[%s6964_s3 + $0x3e0] sm:$0xff]  ;;  %v1270_v20 = vld [vmem:[%s6964_s3 + $0x6e8] sm:$0xff] }
 0x143   :  { %3506 = vmatpush3.msra.mxu0 %v1179_v45  ;;  %1723 = vmatprep.mubr.f32.mxu1 %v4908_v21  ;;  %v1008_v30 = vsel %vm442_vm1, %v983_v44, %v845_v29  ;;  %v928_v13 = vsel %vm885_vm5, %v926_v28, %v927_v40  ;;  %v655_v27 = vrot.slane %v633_v36, 3  ;;  %v693_v10 = vsel %vm692_vm9, %v5098_v54, %v4547_v50  ;;  %v1177_v21 = vld [vmem:[%s6964_s3 + $0x400] sm:$0xff]  ;;  %v1255_v35 = vld [vmem:[%s6964_s3 + $0x670] sm:$0xff]  ;;  %v1172_v40 = vld [vmem:[%s6964_s3 + $0x3d8] sm:$0xff] }
 0x144   :  { %3507 = vmatprep.subr.mxu0 %v1194_v42  ;;  %3446 = vmatprep.subr.mxu1 %v1175_v31  ;;  %v5154_v24 = vsel %vm1023_vm7, %v1008_v30, %v914_v15  ;;  %v1013_v28 = vsel %vm442_vm1, %v988_v56, %v850_v63  ;;  %v738_v8 = vsel %vm673_vm3, %v5131_v23, %v4569_v2  ;;  %v3270_v4 = vrot.slane %v693_v10, 10  ;;  %v1157_v44 = vld [vmem:[%s6964_s3 + $0x360] sm:$0xff]  ;;  %v1156_v15 = vld [vmem:[%s6964_s3 + $0x358] sm:$0xff] }
 0x145   :  { %3508 = vmatpush3.msra.mxu0 %v1178_v25  ;;  %3447 = vmatpush3.msra.mxu1 %v1159_v62  ;;  %v5164_v22 = vsel %vm1023_vm7, %v1013_v28, %v928_v13  ;;  %v765_v61 = vsel %vm764_vm10, %v5131_v23, %v4569_v2  ;;  %v3279_v39 = vrot.slane %v738_v8, 5  ;;  %v646_v60 = vrot.slane %v4675_v19, 5  ;;  %v1269_v30 = vld [vmem:[%s6964_s3 + $0x6e0] sm:$0xff]  ;;  %v1171_v13 = vld [vmem:[%s6964_s3 + $0x3d0] sm:$0xff] }
 0x146   :  { %3509 = vmatprep.subr.mxu0 %v1193_v0  ;;  %3448 = vmatprep.subr.mxu1 %v1174_v12  ;;  %v3288_v3 = vrot.slane %v765_v61, 4  ;;  %v989_v52 = vsel %vm972_vm6, %v655_v27, %v3270_v4  ;;  %v771_v37 = vrot.slane %v4650_v43, 5  ;;  %v626_v16 = vsel %vm569_vm2, %v5098_v54, %v4547_v50  ;;  %v1268_v61 = vld [vmem:[%s6964_s3 + $0x6d8] sm:$0xff] }
 0x147   :  { %3510 = vmatpush3.msra.mxu0 %v1177_v21  ;;  %3449 = vmatpush3.msra.mxu1 %v1158_v32  ;;  %v1014_v46 = vsel %vm442_vm1, %v989_v52, %v3279_v39  ;;  %v647_v17 = vsel %vm632_vm8, %v646_v60, %v4627_v57  ;;  %v698_v45 = vsel %vm692_vm9, %v646_v60, %v4627_v57  ;;  %v924_v18 = vrot.slane %v5098_v54, 1  ;;  %v1170_v39 = vld [vmem:[%s6964_s3 + $0x3c8] sm:$0xff] }
 0x148   :  { %1794 = vmatmul.mubr.f32.vlgmr.msra.gmra.mxu0 %v4911_v34  ;;  %3549 = vmatprep.subr.mxu0 %v1272_v26  ;;  %v5198_v14 = vsel %vm1023_vm7, %v1014_v46, %v3288_v3  ;;  %v660_v42 = vrot.slane %v647_v17, 3  ;;  %v745_v31 = vsel %vm673_vm3, %v646_v60, %v4627_v57  ;;  %v6974_v29 = vrot.slane %v4545_v49, 6 }
 0x149   :  { %3550 = vmatpush3.msra.mxu0 %v1256_v48  ;;  %1933 = vmatprep.mubr.f32.mxu0 %v4981_v59  ;;  %v3275_v36 = vrot.slane %v698_v45, 10  ;;  %v3284_v25 = vrot.slane %v745_v31, 5  ;;  %v690_v57 = vsel %vm673_vm3, %v5098_v54, %v4547_v50  ;;  %v1254_v59 = vld [vmem:[%s6964_s3 + $0x668] sm:$0xff]  ;;  %v734_v63 = vsel %vm711_vm4, %v5098_v54, %v4547_v50 }
 0x14a   :  { %v772_v34 = vsel %vm764_vm10, %v771_v37, %v6974_v29  ;;  %3551 = vmatprep.subr.mxu0 %v1271_v33  ;;  %3450 = vmatprep.subr.mxu1 %v1173_v1  ;;  %v799_v56 = vrot.slane %v690_v57, 7  ;;  %v925_v0 = vsel %vm885_vm5, %v4578_v7, %v924_v18  ;;  %v638_v12 = vrot.slane %v4673_v6, 2  ;;  %v1253_v7 = vld [vmem:[%s6964_s3 + $0x660] sm:$0xff]  ;;  %v1155_v6 = vld [vmem:[%s6964_s3 + $0x350] sm:$0xff]  ;;  %v1154_v33 = vld [vmem:[%s6964_s3 + $0x348] sm:$0xff] }
 0x14b   :  { %v3293_v62 = vrot.slane %v772_v34, 4  ;;  %3552 = vmatpush3.msra.mxu0 %v1255_v35  ;;  %3451 = vmatpush3.msra.mxu1 %v1157_v44  ;;  %v994_v27 = vsel %vm972_vm6, %v660_v42, %v3275_v36  ;;  %v849_v10 = vrot.slane %v734_v63, 2  ;;  %v742_v54 = vrot.slane %v4675_v19, 2  ;;  %v1267_v35 = vld [vmem:[%s6964_s3 + $0x6d0] sm:$0xff]  ;;  %v1169_v44 = vld [vmem:[%s6964_s3 + $0x3c0] sm:$0xff] }
 0x14c   :  { %v643_v21 = vrot.slane %v4675_v19, 4  ;;  %3553 = vmatprep.subr.mxu0 %v1270_v20  ;;  %3452 = vmatprep.subr.mxu1 %v1172_v40  ;;  %v1019_v32 = vsel %vm442_vm1, %v994_v27, %v3284_v25  ;;  %v987_v28 = vsel %vm972_vm6, %v626_v16, %v799_v56  ;;  %v6975_v8 = vrot.slane %v4547_v50, 3  ;;  %v1252_v16 = vld [vmem:[%s6964_s3 + $0x658] sm:$0xff]  ;;  %v1251_v20 = vld [vmem:[%s6964_s3 + $0x650] sm:$0xff]  ;;  %v1153_v40 = vld [vmem:[%s6964_s3 + $0x340] sm:$0xff] }
 0x14d   :  { %v753_v26 = vrot.slane %v4545_v49, 1  ;;  %3554 = vmatpush3.msra.mxu0 %v1254_v59  ;;  %3453 = vmatpush3.msra.mxu1 %v1156_v15  ;;  %v5255_v60 = vsel %vm1023_vm7, %v1019_v32, %v3293_v62  ;;  %v1012_v48 = vsel %vm442_vm1, %v987_v28, %v849_v10  ;;  %v6977_v46 = vrot.slane %v4569_v2, 3  ;;  %v1266_v59 = vld [vmem:[%s6964_s3 + $0x6c8] sm:$0xff]  ;;  %v1168_v15 = vld [vmem:[%s6964_s3 + $0x3b8] sm:$0xff] }
 0x14e   :  { %v639_v4 = vsel %vm632_vm8, %v638_v12, %v6975_v8  ;;  %v6976_v52 = vmov %v6975_v8  ;;  %3555 = vmatprep.subr.mxu0 %v1269_v30  ;;  %3454 = vmatprep.subr.mxu1 %v1171_v13  ;;  %v5268_v1 = vsel %vm1023_vm7, %v1012_v48, %v925_v0  ;;  %v644_v29 = vsel %vm632_vm8, %v643_v21, %v4655_v53  ;;  %v1152_v30 = vld [vmem:[%s6964_s3 + $0x338] sm:$0xff]  ;;  %v1151_v8 = vld [vmem:[%s6964_s3 + $0x330] sm:$0xff] }
 0x14f   :  { %v658_v3 = vrot.slane %v639_v4, 3  ;;  %v696_v37 = vsel %vm692_vm9, %v638_v12, %v6976_v52  ;;  %v743_v17 = vsel %vm673_vm3, %v742_v54, %v6977_v46  ;;  %v6978_v50 = vmov %v6977_v46  ;;  %3556 = vmatpush3.msra.mxu0 %v1253_v7  ;;  %3455 = vmatpush3.msra.mxu1 %v1155_v6  ;;  %v1167_v7 = vld [vmem:[%s6964_s3 + $0x3b0] sm:$0xff]  ;;  %v1150_v46 = vld [vmem:[%s6964_s3 + $0x328] sm:$0xff] }
 0x150   :  { %v768_v45 = vsel %vm764_vm10, %v742_v54, %v6978_v50  ;;  %v3273_v18 = vrot.slane %v696_v37, 10  ;;  %v3282_v42 = vrot.slane %v743_v17, 5  ;;  %v697_v34 = vsel %vm692_vm9, %v643_v21, %v4655_v53  ;;  %3557 = vmatprep.subr.mxu0 %v1268_v61  ;;  %3456 = vmatprep.subr.mxu1 %v1170_v39 }
 0x151   :  { %v3291_v31 = vrot.slane %v768_v45, 4  ;;  %v659_v25 = vrot.slane %v644_v29, 3  ;;  %v744_v62 = vsel %vm673_vm3, %v643_v21, %v4655_v53  ;;  %v769_v57 = vsel %vm764_vm10, %v643_v21, %v4655_v53  ;;  %3558 = vmatpush3.msra.mxu0 %v1252_v16  ;;  %3457 = vmatpush3.msra.mxu1 %v1154_v33  ;;  %v1250_v53 = vld [vmem:[%s6964_s3 + $0x648] sm:$0xff]  ;;  %v1265_v21 = vld [vmem:[%s6964_s3 + $0x6c0] sm:$0xff]  ;;  %v1248_v33 = vld [vmem:[%s6964_s3 + $0x638] sm:$0xff] }
 0x152   :  { %v992_v36 = vsel %vm972_vm6, %v658_v3, %v3273_v18  ;;  %v3274_v56 = vrot.slane %v697_v34, 10  ;;  %v3283_v0 = vrot.slane %v744_v62, 5  ;;  %v648_v12 = vrot.slane %v4569_v2, 7  ;;  %3559 = vmatprep.subr.mxu0 %v1267_v35  ;;  %3458 = vmatprep.subr.mxu1 %v1169_v44  ;;  %v1263_v18 = vld [vmem:[%s6964_s3 + $0x6b0] sm:$0xff]  ;;  %v1165_v35 = vld [vmem:[%s6964_s3 + $0x3a0] sm:$0xff] }
 0x153   :  { %v1017_v63 = vsel %vm442_vm1, %v992_v36, %v3282_v42  ;;  %v3292_v27 = vrot.slane %v769_v57, 4  ;;  %v636_v10 = vsel %vm632_vm8, %v4754_v9, %v4575_v5  ;;  %v695_v54 = vsel %vm692_vm9, %v4754_v9, %v4575_v5  ;;  %3560 = vmatpush3.msra.mxu0 %v1251_v20  ;;  %3459 = vmatpush3.msra.mxu1 %v1153_v40  ;;  %v1249_v9 = vld [vmem:[%s6964_s3 + $0x640] sm:$0xff]  ;;  %v1247_v34 = vld [vmem:[%s6964_s3 + $0x630] sm:$0xff]  ;;  %v1262_v57 = vld [vmem:[%s6964_s3 + $0x6a8] sm:$0xff] }
 0x154   :  { %v5312_v13 = vsel %vm1023_vm7, %v1017_v63, %v3291_v31  ;;  %v993_v6 = vsel %vm972_vm6, %v659_v25, %v3274_v56  ;;  %v657_v32 = vrot.slane %v636_v10, 3  ;;  %v740_v28 = vsel %vm673_vm3, %v5095_v38, %v4615_v11  ;;  %3561 = vmatprep.subr.mxu0 %v1266_v59  ;;  %3460 = vmatprep.subr.mxu1 %v1168_v15  ;;  %v1149_v20 = vld [vmem:[%s6964_s3 + $0x320] sm:$0xff]  ;;  %v1164_v59 = vld [vmem:[%s6964_s3 + $0x398] sm:$0xff] }
 0x155   :  { %v767_v5 = vsel %vm764_vm10, %v5095_v38, %v4615_v11  ;;  %v1018_v4 = vsel %vm442_vm1, %v993_v6, %v3283_v0  ;;  %v3272_v61 = vrot.slane %v695_v54, 10  ;;  %v3281_v39 = vrot.slane %v740_v28, 5  ;;  %3562 = vmatpush3.msra.mxu0 %v1250_v53  ;;  %3461 = vmatpush3.msra.mxu1 %v1152_v30  ;;  %v1264_v11 = vld [vmem:[%s6964_s3 + $0x6b8] sm:$0xff]  ;;  %v1166_v38 = vld [vmem:[%s6964_s3 + $0x3a8] sm:$0xff]  ;;  %v1147_v28 = vld [vmem:[%s6964_s3 + $0x310] sm:$0xff] }
 0x156   :  { %v3290_v48 = vrot.slane %v767_v5, 4  ;;  %v5347_v3 = vsel %vm1023_vm7, %v1018_v4, %v3292_v27  ;;  %v652_v52 = vsel %vm632_vm8, %v5131_v23, %v4569_v2  ;;  %v700_v37 = vsel %vm692_vm9, %v5131_v23, %v4569_v2  ;;  %3563 = vmatprep.subr.mxu0 %v1265_v21  ;;  %3462 = vmatprep.subr.mxu1 %v1167_v7  ;;  %v1246_v53 = vld [vmem:[%s6964_s3 + $0x628] sm:$0xff]  ;;  %v1260_v2 = vld [vmem:[%s6964_s3 + $0x698] sm:$0xff] }
 0x157   :  { %v751_v16 = vrot.slane %v4650_v43, 7  ;;  %v991_v17 = vsel %vm972_vm6, %v657_v32, %v3272_v61  ;;  %v662_v50 = vrot.slane %v652_v52, 3  ;;  %v3277_v45 = vrot.slane %v700_v37, 10  ;;  %3564 = vmatpush3.msra.mxu0 %v1249_v9  ;;  %3463 = vmatpush3.msra.mxu1 %v1151_v8  ;;  %v1245_v32 = vld [vmem:[%s6964_s3 + $0x620] sm:$0xff] }
 0x158   :  { %v654_v23 = vsel %vm632_vm8, %v4675_v19, %v4620_v55  ;;  %v1016_v44 = vsel %vm442_vm1, %v991_v17, %v3281_v39  ;;  %3565 = vmatprep.subr.mxu0 %v1264_v11  ;;  %3464 = vmatprep.subr.mxu1 %v1166_v38  ;;  %v701_v15 = vsel %vm692_vm9, %v4675_v19, %v4620_v55  ;;  %v649_v0 = vrot.slane %v4675_v19, 6  ;;  %v1148_v55 = vld [vmem:[%s6964_s3 + $0x318] sm:$0xff]  ;;  %v1261_v19 = vld [vmem:[%s6964_s3 + $0x6a0] sm:$0xff]  ;;  %v1146_v11 = vld [vmem:[%s6964_s3 + $0x308] sm:$0xff] }
 0x159   :  { %v752_v42 = vsel %vm673_vm3, %v751_v16, %v4545_v49  ;;  %v774_v31 = vsel %vm764_vm10, %v751_v16, %v4545_v49  ;;  %v663_v29 = vrot.slane %v654_v23, 3  ;;  %v5384_v40 = vsel %vm1023_vm7, %v1016_v44, %v3290_v48  ;;  %3566 = vmatpush3.msra.mxu0 %v1248_v33  ;;  %3465 = vmatpush3.msra.mxu1 %v1150_v46  ;;  %v1244_v48 = vld [vmem:[%s6964_s3 + $0x618] sm:$0xff]  ;;  %v1259_v16 = vld [vmem:[%s6964_s3 + $0x690] sm:$0xff]  ;;  %v1161_v33 = vld [vmem:[%s6964_s3 + $0x380] sm:$0xff] }
 0x15a   :  { %v3286_v36 = vrot.slane %v752_v42, 5  ;;  %v3295_v25 = vrot.slane %v774_v31, 4  ;;  %v996_v62 = vsel %vm972_vm6, %v662_v50, %v3277_v45  ;;  %v754_v63 = vsel %vm673_vm3, %v4650_v43, %v753_v26  ;;  %3567 = vmatprep.subr.mxu0 %v1263_v18  ;;  %3466 = vmatprep.subr.mxu1 %v1165_v35  ;;  %v1243_v17 = vld [vmem:[%s6964_s3 + $0x610] sm:$0xff]  ;;  %v1145_v50 = vld [vmem:[%s6964_s3 + $0x300] sm:$0xff]  ;;  %v1258_v23 = vld [vmem:[%s6964_s3 + $0x688] sm:$0xff] }
 0x15b   :  { %v775_v56 = vsel %vm764_vm10, %v4650_v43, %v753_v26  ;;  %v3278_v27 = vrot.slane %v701_v15, 10  ;;  %v3287_v10 = vrot.slane %v754_v63, 5  ;;  %v748_v54 = vrot.slane %v4545_v49, 7  ;;  %3568 = vmatpush3.msra.mxu0 %v1247_v34  ;;  %3467 = vmatpush3.msra.mxu1 %v1149_v20  ;;  %v1163_v26 = vld [vmem:[%s6964_s3 + $0x390] sm:$0xff]  ;;  %v1242_v35 = vld [vmem:[%s6964_s3 + $0x608] sm:$0xff]  ;;  %v1240_v44 = vld [vmem:[%s6964_s3 + $0x5f8] sm:$0xff] }
 0x15c   :  { %v1021_v30 = vsel %vm442_vm1, %v996_v62, %v3286_v36  ;;  %v650_v7 = vsel %vm632_vm8, %v649_v0, %v648_v12  ;;  %v699_v49 = vsel %vm692_vm9, %v649_v0, %v648_v12  ;;  %v749_v6 = vrot.slane %v4650_v43, 6  ;;  %3569 = vmatprep.subr.mxu0 %v1262_v57  ;;  %3468 = vmatprep.subr.mxu1 %v1164_v59  ;;  %v1162_v43 = vld [vmem:[%s6964_s3 + $0x388] sm:$0xff]  ;;  %v1257_v42 = vld [vmem:[%s6964_s3 + $0x680] sm:$0xff]  ;;  %v1224_v31 = vld [vmem:[%s6964_s3 + $0x578] sm:$0xff] }
 0x15d   :  { %v5420_v21 = vsel %vm1023_vm7, %v1021_v30, %v3295_v25  ;;  %v3296_v5 = vrot.slane %v775_v56, 4  ;;  %v997_v9 = vsel %vm972_vm6, %v663_v29, %v3278_v27  ;;  %v661_v8 = vrot.slane %v650_v7, 3  ;;  %3570 = vmatpush3.msra.mxu0 %v1246_v53  ;;  %3469 = vmatpush3.msra.mxu1 %v1148_v55  ;;  %v1241_v29 = vld [vmem:[%s6964_s3 + $0x600] sm:$0xff]  ;;  %v1336_v34 = vld [vmem:[%s6964_s3 + $0x8f8] sm:$0xff]  ;;  %v1239_v20 = vld [vmem:[%s6964_s3 + $0x5f0] sm:$0xff] }
 0x15e   :  { %v3276_v4 = vrot.slane %v699_v49, 10  ;;  %v1022_v12 = vsel %vm442_vm1, %v997_v9, %v3287_v10  ;;  %v750_v61 = vsel %vm673_vm3, %v749_v6, %v748_v54  ;;  %v773_v39 = vsel %vm764_vm10, %v749_v6, %v748_v54  ;;  %3571 = vmatprep.subr.mxu0 %v1261_v19  ;;  %3470 = vmatprep.subr.mxu1 %v1163_v26  ;;  %v1223_v36 = vld [vmem:[%s6964_s3 + $0x570] sm:$0xff]  ;;  %v1238_v62 = vld [vmem:[%s6964_s3 + $0x5e8] sm:$0xff]  ;;  %v1237_v59 = vld [vmem:[%s6964_s3 + $0x5e0] sm:$0xff] }
 0x15f   :  { %v5452_v38 = vsel %vm1023_vm7, %v1022_v12, %v3296_v5  ;;  %v3285_v52 = vrot.slane %v750_v61, 5  ;;  %3572 = vmatpush3.msra.mxu0 %v1245_v32  ;;  %3471 = vmatpush3.msra.mxu1 %v1147_v28  ;;  %v3294_v46 = vrot.slane %v773_v39, 4  ;;  %v1335_v25 = vld [vmem:[%s6964_s3 + $0x8f0] sm:$0xff]  ;;  %v1222_v57 = vld [vmem:[%s6964_s3 + $0x568] sm:$0xff]  ;;  %v1221_v63 = vld [vmem:[%s6964_s3 + $0x560] sm:$0xff] }
 0x160   :  { %v995_v37 = vsel %vm972_vm6, %v661_v8, %v3276_v4  ;;  %3573 = vmatprep.subr.mxu0 %v1260_v2  ;;  %3472 = vmatprep.subr.mxu1 %v1162_v43  ;;  %v1318_v15 = vld [vmem:[%s6964_s3 + $0x868] sm:$0xff]  ;;  %v1236_v56 = vld [vmem:[%s6964_s3 + $0x5d8] sm:$0xff]  ;;  %v1317_v0 = vld [vmem:[%s6964_s3 + $0x860] sm:$0xff] }
 0x161   :  { %v1020_v45 = vsel %vm442_vm1, %v995_v37, %v3285_v52  ;;  %3574 = vmatpush3.msra.mxu0 %v1244_v48  ;;  %3473 = vmatpush3.msra.mxu1 %v1146_v11  ;;  %v1220_v53 = vld [vmem:[%s6964_s3 + $0x558] sm:$0xff]  ;;  %v1235_v30 = vld [vmem:[%s6964_s3 + $0x5d0] sm:$0xff]  ;;  %v1234_v19 = vld [vmem:[%s6964_s3 + $0x5c8] sm:$0xff] }
 0x162   :  { %v5472_v18 = vsel %vm1023_vm7, %v1020_v45, %v3294_v46  ;;  %3575 = vmatprep.subr.mxu0 %v1259_v16  ;;  %3474 = vmatprep.subr.mxu1 %v1161_v33  ;;  %v1332_v55 = vld [vmem:[%s6964_s3 + $0x8d8] sm:$0xff]  ;;  %v1219_v10 = vld [vmem:[%s6964_s3 + $0x550] sm:$0xff]  ;;  %v1218_v7 = vld [vmem:[%s6964_s3 + $0x548] sm:$0xff] }
 0x163   :  { %3576 = vmatpush3.msra.mxu0 %v1243_v17  ;;  %3475 = vmatpush3.msra.mxu1 %v1145_v50  ;;  %v1316_v27 = vld [vmem:[%s6964_s3 + $0x858] sm:$0xff]  ;;  %v1331_v54 = vld [vmem:[%s6964_s3 + $0x8d0] sm:$0xff]  ;;  %v1330_v49 = vld [vmem:[%s6964_s3 + $0x8c8] sm:$0xff] }
 0x164   :  { %3577 = vmatprep.subr.mxu0 %v1258_v23  ;;  %1724 = vmatmul.mubr.f32.vlgmr.msra.gmra.mxu1 %v4994_v47  ;;  %v1320_v47 = vld [vmem:[%s6964_s3 + $0x878] sm:$0xff]  ;;  %v1315_v26 = vld [vmem:[%s6964_s3 + $0x850] sm:$0xff]  ;;  %v1233_v6 = vld [vmem:[%s6964_s3 + $0x5c0] sm:$0xff] }
 0x165   :  { %3578 = vmatpush3.msra.mxu0 %v1242_v35  ;;  %3514 = vmatprep.subr.mxu1 %v1240_v44  ;;  %v1314_v32 = vld [vmem:[%s6964_s3 + $0x848] sm:$0xff]  ;;  %v1217_v28 = vld [vmem:[%s6964_s3 + $0x540] sm:$0xff]  ;;  %v1232_v9 = vld [vmem:[%s6964_s3 + $0x5b8] sm:$0xff] }
 0x166   :  { %3579 = vmatprep.subr.mxu0 %v1257_v42  ;;  %3515 = vmatpush3.msra.mxu1 %v1224_v31  ;;  %v1329_v5 = vld [vmem:[%s6964_s3 + $0x8c0] sm:$0xff]  ;;  %v1216_v4 = vld [vmem:[%s6964_s3 + $0x538] sm:$0xff]  ;;  %v1231_v43 = vld [vmem:[%s6964_s3 + $0x5b0] sm:$0xff] }
 0x167   :  { %3580 = vmatpush3.msra.mxu0 %v1241_v29  ;;  %1863 = vmatprep.mubr.f32.mxu1 %v5053_v58  ;;  %v1319_v58 = vld [vmem:[%s6964_s3 + $0x870] sm:$0xff]  ;;  %v1313_v8 = vld [vmem:[%s6964_s3 + $0x840] sm:$0xff]  ;;  %v1328_v2 = vld [vmem:[%s6964_s3 + $0x8b8] sm:$0xff] }
 0x168   :  { %1934 = vmatmul.mubr.f32.vlgmr.msra.gmra.mxu0 %v5056_v41  ;;  %3619 = vmatprep.subr.mxu0 %v1336_v34  ;;  %v1334_v41 = vld [vmem:[%s6964_s3 + $0x8e8] sm:$0xff]  ;;  %v1312_v12 = vld [vmem:[%s6964_s3 + $0x838] sm:$0xff]  ;;  %v1215_v61 = vld [vmem:[%s6964_s3 + $0x530] sm:$0xff] }
 0x169   :  { %3516 = vmatprep.subr.mxu1 %v1239_v20  ;;  %3620 = vmatpush3.msra.mxu0 %v1320_v47  ;;  %v1327_v39 = vld [vmem:[%s6964_s3 + $0x8b0] sm:$0xff]  ;;  %v1230_v48 = vld [vmem:[%s6964_s3 + $0x5a8] sm:$0xff]  ;;  %v1229_v16 = vld [vmem:[%s6964_s3 + $0x5a0] sm:$0xff] }
 0x16a   :  { %2073 = vmatprep.mubr.f32.mxu0 %v5089_v51  ;;  %3517 = vmatpush3.msra.mxu1 %v1223_v36  ;;  %v1333_v51 = vld [vmem:[%s6964_s3 + $0x8e0] sm:$0xff]  ;;  %v1311_v11 = vld [vmem:[%s6964_s3 + $0x830] sm:$0xff]  ;;  %v1214_v52 = vld [vmem:[%s6964_s3 + $0x528] sm:$0xff] }
 0x16b   :  { %3621 = vmatprep.subr.mxu0 %v1335_v25  ;;  %3518 = vmatprep.subr.mxu1 %v1238_v62  ;;  %v1326_v37 = vld [vmem:[%s6964_s3 + $0x8a8] sm:$0xff]  ;;  %v1213_v46 = vld [vmem:[%s6964_s3 + $0x520] sm:$0xff]  ;;  %v1228_v50 = vld [vmem:[%s6964_s3 + $0x598] sm:$0xff] }
 0x16c   :  { %3622 = vmatpush3.msra.mxu0 %v1319_v58  ;;  %3519 = vmatpush3.msra.mxu1 %v1222_v57  ;;  %v1310_v33 = vld [vmem:[%s6964_s3 + $0x828] sm:$0xff]  ;;  %v1325_v17 = vld [vmem:[%s6964_s3 + $0x8a0] sm:$0xff]  ;;  %v1212_v23 = vld [vmem:[%s6964_s3 + $0x518] sm:$0xff] }
 0x16d   :  { %3623 = vmatprep.subr.mxu0 %v1334_v41  ;;  %3520 = vmatprep.subr.mxu1 %v1237_v59  ;;  %v1309_v45 = vld [vmem:[%s6964_s3 + $0x820] sm:$0xff]  ;;  %v1324_v35 = vld [vmem:[%s6964_s3 + $0x898] sm:$0xff]  ;;  %v1227_v44 = vld [vmem:[%s6964_s3 + $0x590] sm:$0xff] }
 0x16e   :  { %3624 = vmatpush3.msra.mxu0 %v1318_v15  ;;  %3521 = vmatpush3.msra.mxu1 %v1221_v63  ;;  %v1308_v42 = vld [vmem:[%s6964_s3 + $0x818] sm:$0xff]  ;;  %v1211_v31 = vld [vmem:[%s6964_s3 + $0x510] sm:$0xff]  ;;  %v1226_v34 = vld [vmem:[%s6964_s3 + $0x588] sm:$0xff] }
 0x16f   :  { %3625 = vmatprep.subr.mxu0 %v1333_v51  ;;  %3522 = vmatprep.subr.mxu1 %v1236_v56  ;;  %v1323_v29 = vld [vmem:[%s6964_s3 + $0x890] sm:$0xff]  ;;  %v1210_v47 = vld [vmem:[%s6964_s3 + $0x508] sm:$0xff]  ;;  %v1225_v25 = vld [vmem:[%s6964_s3 + $0x580] sm:$0xff] }
 0x170   :  { %3626 = vmatpush3.msra.mxu0 %v1317_v0  ;;  %3523 = vmatpush3.msra.mxu1 %v1220_v53  ;;  %v1307_v20 = vld [vmem:[%s6964_s3 + $0x810] sm:$0xff]  ;;  %v1322_v36 = vld [vmem:[%s6964_s3 + $0x888] sm:$0xff]  ;;  %v1209_v58 = vld [vmem:[%s6964_s3 + $0x500] sm:$0xff] }
 0x171   :  { %3627 = vmatprep.subr.mxu0 %v1332_v55  ;;  %3524 = vmatprep.subr.mxu1 %v1235_v30  ;;  %v1306_v62 = vld [vmem:[%s6964_s3 + $0x808] sm:$0xff]  ;;  %v1321_v57 = vld [vmem:[%s6964_s3 + $0x880] sm:$0xff]  ;;  %v1304_v41 = vld [vmem:[%s6964_s3 + $0x7f8] sm:$0xff] }
 0x172   :  { %3628 = vmatpush3.msra.mxu0 %v1316_v27  ;;  %3525 = vmatpush3.msra.mxu1 %v1219_v10  ;;  %v1305_v59 = vld [vmem:[%s6964_s3 + $0x800] sm:$0xff]  ;;  %v1288_v15 = vld [vmem:[%s6964_s3 + $0x778] sm:$0xff]  ;;  %v1303_v51 = vld [vmem:[%s6964_s3 + $0x7f0] sm:$0xff] }
 0x173   :  { %3629 = vmatprep.subr.mxu0 %v1331_v54  ;;  %3526 = vmatprep.subr.mxu1 %v1234_v19  ;;  %v1400_v63 = vld [vmem:[%s6964_s3 + $0xaf8] sm:$0xff]  ;;  %v1399_v0 = vld [vmem:[%s6964_s3 + $0xaf0] sm:$0xff]  ;;  %v1302_v53 = vld [vmem:[%s6964_s3 + $0x7e8] sm:$0xff] }
 0x174   :  { %3630 = vmatpush3.msra.mxu0 %v1315_v26  ;;  %3527 = vmatpush3.msra.mxu1 %v1218_v7  ;;  %v1384_v56 = vld [vmem:[%s6964_s3 + $0xa78] sm:$0xff]  ;;  %v1286_v55 = vld [vmem:[%s6964_s3 + $0x768] sm:$0xff]  ;;  %v1301_v30 = vld [vmem:[%s6964_s3 + $0x7e0] sm:$0xff] }
 0x175   :  { %3631 = vmatprep.subr.mxu0 %v1330_v49  ;;  %3528 = vmatprep.subr.mxu1 %v1233_v6  ;;  %v1382_v27 = vld [vmem:[%s6964_s3 + $0xa68] sm:$0xff]  ;;  %v1285_v10 = vld [vmem:[%s6964_s3 + $0x760] sm:$0xff]  ;;  %v1300_v54 = vld [vmem:[%s6964_s3 + $0x7d8] sm:$0xff] }
 0x176   :  { %3632 = vmatpush3.msra.mxu0 %v1314_v32  ;;  %3529 = vmatpush3.msra.mxu1 %v1217_v28  ;;  %v1381_v19 = vld [vmem:[%s6964_s3 + $0xa60] sm:$0xff]  ;;  %v1284_v26 = vld [vmem:[%s6964_s3 + $0x758] sm:$0xff]  ;;  %v1299_v49 = vld [vmem:[%s6964_s3 + $0x7d0] sm:$0xff] }
 0x177   :  { %3633 = vmatprep.subr.mxu0 %v1329_v5  ;;  %3530 = vmatprep.subr.mxu1 %v1232_v9  ;;  %v1396_v7 = vld [vmem:[%s6964_s3 + $0xad8] sm:$0xff]  ;;  %v1283_v32 = vld [vmem:[%s6964_s3 + $0x750] sm:$0xff]  ;;  %v1298_v5 = vld [vmem:[%s6964_s3 + $0x7c8] sm:$0xff] }
 0x178   :  { %3634 = vmatpush3.msra.mxu0 %v1313_v8  ;;  %3531 = vmatpush3.msra.mxu1 %v1216_v4  ;;  %v1380_v6 = vld [vmem:[%s6964_s3 + $0xa58] sm:$0xff]  ;;  %v1395_v28 = vld [vmem:[%s6964_s3 + $0xad0] sm:$0xff]  ;;  %v1282_v8 = vld [vmem:[%s6964_s3 + $0x748] sm:$0xff] }
 0x179   :  { %3635 = vmatprep.subr.mxu0 %v1328_v2  ;;  %3532 = vmatprep.subr.mxu1 %v1231_v43  ;;  %v1379_v9 = vld [vmem:[%s6964_s3 + $0xa50] sm:$0xff]  ;;  %v1394_v4 = vld [vmem:[%s6964_s3 + $0xac8] sm:$0xff]  ;;  %v1297_v2 = vld [vmem:[%s6964_s3 + $0x7c0] sm:$0xff] }
 0x17a   :  { %3636 = vmatpush3.msra.mxu0 %v1312_v12  ;;  %3533 = vmatpush3.msra.mxu1 %v1215_v61  ;;  %v1378_v43 = vld [vmem:[%s6964_s3 + $0xa48] sm:$0xff]  ;;  %v1281_v12 = vld [vmem:[%s6964_s3 + $0x740] sm:$0xff] }
 0x17b   :  { %3637 = vmatprep.subr.mxu0 %v1327_v39  ;;  %3534 = vmatprep.subr.mxu1 %v1230_v48  ;;  %v1393_v61 = vld [vmem:[%s6964_s3 + $0xac0] sm:$0xff]  ;;  %v1296_v39 = vld [vmem:[%s6964_s3 + $0x7b8] sm:$0xff] }
 0x17c   :  { %3638 = vmatpush3.msra.mxu0 %v1311_v11  ;;  %3535 = vmatpush3.msra.mxu1 %v1214_v52  ;;  %v1377_v48 = vld [vmem:[%s6964_s3 + $0xa40] sm:$0xff]  ;;  %v1280_v11 = vld [vmem:[%s6964_s3 + $0x738] sm:$0xff] }
 0x17d   :  { %3639 = vmatprep.subr.mxu0 %v1326_v37  ;;  %3536 = vmatprep.subr.mxu1 %v1229_v16  ;;  %v1392_v52 = vld [vmem:[%s6964_s3 + $0xab8] sm:$0xff]  ;;  %v1295_v37 = vld [vmem:[%s6964_s3 + $0x7b0] sm:$0xff] }
 0x17e   :  { %3640 = vmatpush3.msra.mxu0 %v1310_v33  ;;  %3537 = vmatpush3.msra.mxu1 %v1213_v46  ;;  %v1376_v16 = vld [vmem:[%s6964_s3 + $0xa38] sm:$0xff]  ;;  %v1279_v33 = vld [vmem:[%s6964_s3 + $0x730] sm:$0xff] }
 0x17f   :  { %3641 = vmatprep.subr.mxu0 %v1325_v17  ;;  %3538 = vmatprep.subr.mxu1 %v1228_v50  ;;  %v1391_v46 = vld [vmem:[%s6964_s3 + $0xab0] sm:$0xff]  ;;  %v1294_v17 = vld [vmem:[%s6964_s3 + $0x7a8] sm:$0xff] }
 0x180   :  { %3642 = vmatpush3.msra.mxu0 %v1309_v45  ;;  %3539 = vmatpush3.msra.mxu1 %v1212_v23  ;;  %v1375_v50 = vld [vmem:[%s6964_s3 + $0xa30] sm:$0xff]  ;;  %v1278_v45 = vld [vmem:[%s6964_s3 + $0x728] sm:$0xff] }
 0x181   :  { %3643 = vmatprep.subr.mxu0 %v1324_v35  ;;  %3540 = vmatprep.subr.mxu1 %v1227_v44  ;;  %v1390_v23 = vld [vmem:[%s6964_s3 + $0xaa8] sm:$0xff]  ;;  %v1293_v35 = vld [vmem:[%s6964_s3 + $0x7a0] sm:$0xff] }
 0x182   :  { %3644 = vmatpush3.msra.mxu0 %v1308_v42  ;;  %3541 = vmatpush3.msra.mxu1 %v1211_v31  ;;  %v1374_v44 = vld [vmem:[%s6964_s3 + $0xa28] sm:$0xff]  ;;  %v1277_v42 = vld [vmem:[%s6964_s3 + $0x720] sm:$0xff] }
 0x183   :  { %3645 = vmatprep.subr.mxu0 %v1323_v29  ;;  %3542 = vmatprep.subr.mxu1 %v1226_v34  ;;  %v1389_v31 = vld [vmem:[%s6964_s3 + $0xaa0] sm:$0xff]  ;;  %v1292_v29 = vld [vmem:[%s6964_s3 + $0x798] sm:$0xff] }
 0x184   :  { %3646 = vmatpush3.msra.mxu0 %v1307_v20  ;;  %3543 = vmatpush3.msra.mxu1 %v1210_v47  ;;  %v1373_v34 = vld [vmem:[%s6964_s3 + $0xa20] sm:$0xff]  ;;  %v1276_v20 = vld [vmem:[%s6964_s3 + $0x718] sm:$0xff] }
 0x185   :  { %3647 = vmatprep.subr.mxu0 %v1322_v36  ;;  %3544 = vmatprep.subr.mxu1 %v1225_v25  ;;  %v1388_v47 = vld [vmem:[%s6964_s3 + $0xa98] sm:$0xff]  ;;  %v1291_v36 = vld [vmem:[%s6964_s3 + $0x790] sm:$0xff] }
 0x186   :  { %3648 = vmatpush3.msra.mxu0 %v1306_v62  ;;  %3545 = vmatpush3.msra.mxu1 %v1209_v58  ;;  %v1372_v25 = vld [vmem:[%s6964_s3 + $0xa18] sm:$0xff]  ;;  %v1275_v62 = vld [vmem:[%s6964_s3 + $0x710] sm:$0xff] }
 0x187   :  { %3649 = vmatprep.subr.mxu0 %v1321_v57  ;;  %1864 = vmatmul.mubr.f32.vlgmr.msra.gmra.mxu1 %v5154_v24  ;;  %v1287_v24 = vld [vmem:[%s6964_s3 + $0x770] sm:$0xff]  ;;  %v1290_v57 = vld [vmem:[%s6964_s3 + $0x788] sm:$0xff] }
 0x188   :  { %3584 = vmatprep.subr.mxu1 %v1304_v41  ;;  %3650 = vmatpush3.msra.mxu0 %v1305_v59  ;;  %v1387_v58 = vld [vmem:[%s6964_s3 + $0xa90] sm:$0xff]  ;;  %v1274_v59 = vld [vmem:[%s6964_s3 + $0x708] sm:$0xff] }
 0x189   :  { %3585 = vmatpush3.msra.mxu1 %v1288_v15  ;;  %2003 = vmatprep.mubr.f32.mxu1 %v5164_v22  ;;  %v1383_v22 = vld [vmem:[%s6964_s3 + $0xa70] sm:$0xff]  ;;  %v1386_v15 = vld [vmem:[%s6964_s3 + $0xa88] sm:$0xff] }
 0x18a   :  { %2074 = vmatmul.mubr.f32.vlgmr.msra.gmra.mxu0 %v5198_v14  ;;  %3689 = vmatprep.subr.mxu0 %v1400_v63  ;;  %v1398_v14 = vld [vmem:[%s6964_s3 + $0xae8] sm:$0xff]  ;;  %v1371_v41 = vld [vmem:[%s6964_s3 + $0xa10] sm:$0xff]  ;;  %v1289_v63 = vld [vmem:[%s6964_s3 + $0x780] sm:$0xff] }
 0x18b   :  { %3586 = vmatprep.subr.mxu1 %v1303_v51  ;;  %3690 = vmatpush3.msra.mxu0 %v1384_v56  ;;  %v1370_v51 = vld [vmem:[%s6964_s3 + $0xa08] sm:$0xff]  ;;  %v1273_v56 = vld [vmem:[%s6964_s3 + $0x700] sm:$0xff] }
 0x18c   :  { %2213 = vmatprep.mubr.f32.mxu0 %v5255_v60  ;;  %3587 = vmatpush3.msra.mxu1 %v1287_v24  ;;  %v1397_v60 = vld [vmem:[%s6964_s3 + $0xae0] sm:$0xff] }
 0x18d   :  { %3691 = vmatprep.subr.mxu0 %v1399_v0  ;;  %3588 = vmatprep.subr.mxu1 %v1302_v53  ;;  %v1385_v24 = vld [vmem:[%s6964_s3 + $0xa80] sm:$0xff]  ;;  %v1368_v0 = vld [vmem:[%s6964_s3 + $0x9f8] sm:$0xff] }
 0x18e   :  { %3692 = vmatpush3.msra.mxu0 %v1383_v22  ;;  %3589 = vmatpush3.msra.mxu1 %v1286_v55  ;;  %v1369_v53 = vld [vmem:[%s6964_s3 + $0xa00] sm:$0xff]  ;;  %v1352_v22 = vld [vmem:[%s6964_s3 + $0x978] sm:$0xff]  ;;  %v1367_v55 = vld [vmem:[%s6964_s3 + $0x9f0] sm:$0xff] }
 0x18f   :  { %3693 = vmatprep.subr.mxu0 %v1398_v14  ;;  %3590 = vmatprep.subr.mxu1 %v1301_v30  ;;  %v1448_v14 = vld [vmem:[%s6964_s3 + $0xc78] sm:$0xff]  ;;  %v1351_v30 = vld [vmem:[%s6964_s3 + $0x970] sm:$0xff] }
 0x190   :  { %3694 = vmatpush3.msra.mxu0 %v1382_v27  ;;  %3591 = vmatpush3.msra.mxu1 %v1285_v10  ;;  %v1366_v27 = vld [vmem:[%s6964_s3 + $0x9e8] sm:$0xff]  ;;  %v1447_v10 = vld [vmem:[%s6964_s3 + $0xc70] sm:$0xff] }
 0x191   :  { %3695 = vmatprep.subr.mxu0 %v1397_v60  ;;  %3592 = vmatprep.subr.mxu1 %v1300_v54  ;;  %v1446_v60 = vld [vmem:[%s6964_s3 + $0xc68] sm:$0xff]  ;;  %v1349_v54 = vld [vmem:[%s6964_s3 + $0x960] sm:$0xff] }
 0x192   :  { %3696 = vmatpush3.msra.mxu0 %v1381_v19  ;;  %3593 = vmatpush3.msra.mxu1 %v1284_v26  ;;  %v1364_v19 = vld [vmem:[%s6964_s3 + $0x9d8] sm:$0xff]  ;;  %v1445_v26 = vld [vmem:[%s6964_s3 + $0xc60] sm:$0xff] }
 0x193   :  { %3697 = vmatprep.subr.mxu0 %v1396_v7  ;;  %3594 = vmatprep.subr.mxu1 %v1299_v49  ;;  %v1348_v7 = vld [vmem:[%s6964_s3 + $0x958] sm:$0xff]  ;;  %v1363_v49 = vld [vmem:[%s6964_s3 + $0x9d0] sm:$0xff] }
 0x194   :  { %3698 = vmatpush3.msra.mxu0 %v1380_v6  ;;  %3595 = vmatpush3.msra.mxu1 %v1283_v32  ;;  %v1444_v6 = vld [vmem:[%s6964_s3 + $0xc58] sm:$0xff]  ;;  %v1347_v32 = vld [vmem:[%s6964_s3 + $0x950] sm:$0xff] }
 0x195   :  { %3699 = vmatprep.subr.mxu0 %v1395_v28  ;;  %3596 = vmatprep.subr.mxu1 %v1298_v5  ;;  %v1362_v28 = vld [vmem:[%s6964_s3 + $0x9c8] sm:$0xff]  ;;  %v1443_v5 = vld [vmem:[%s6964_s3 + $0xc50] sm:$0xff] }
 0x196   :  { %3700 = vmatpush3.msra.mxu0 %v1379_v9  ;;  %3597 = vmatpush3.msra.mxu1 %v1282_v8  ;;  %v1346_v9 = vld [vmem:[%s6964_s3 + $0x948] sm:$0xff]  ;;  %v1361_v8 = vld [vmem:[%s6964_s3 + $0x9c0] sm:$0xff] }
 0x197   :  { %3701 = vmatprep.subr.mxu0 %v1394_v4  ;;  %3598 = vmatprep.subr.mxu1 %v1297_v2  ;;  %v1442_v4 = vld [vmem:[%s6964_s3 + $0xc48] sm:$0xff]  ;;  %v1345_v2 = vld [vmem:[%s6964_s3 + $0x940] sm:$0xff] }
 0x198   :  { %3702 = vmatpush3.msra.mxu0 %v1378_v43  ;;  %3599 = vmatpush3.msra.mxu1 %v1281_v12  ;;  %v1360_v43 = vld [vmem:[%s6964_s3 + $0x9b8] sm:$0xff]  ;;  %v1441_v12 = vld [vmem:[%s6964_s3 + $0xc40] sm:$0xff] }
 0x199   :  { %3703 = vmatprep.subr.mxu0 %v1393_v61  ;;  %3600 = vmatprep.subr.mxu1 %v1296_v39  ;;  %v1344_v61 = vld [vmem:[%s6964_s3 + $0x938] sm:$0xff]  ;;  %v1359_v39 = vld [vmem:[%s6964_s3 + $0x9b0] sm:$0xff] }
 0x19a   :  { %3704 = vmatpush3.msra.mxu0 %v1377_v48  ;;  %3601 = vmatpush3.msra.mxu1 %v1280_v11  ;;  %v1440_v48 = vld [vmem:[%s6964_s3 + $0xc38] sm:$0xff]  ;;  %v1343_v11 = vld [vmem:[%s6964_s3 + $0x930] sm:$0xff] }
 0x19b   :  { %3705 = vmatprep.subr.mxu0 %v1392_v52  ;;  %3602 = vmatprep.subr.mxu1 %v1295_v37  ;;  %v1358_v52 = vld [vmem:[%s6964_s3 + $0x9a8] sm:$0xff]  ;;  %v1439_v37 = vld [vmem:[%s6964_s3 + $0xc30] sm:$0xff] }
 0x19c   :  { %3706 = vmatpush3.msra.mxu0 %v1376_v16  ;;  %3603 = vmatpush3.msra.mxu1 %v1279_v33  ;;  %v1342_v16 = vld [vmem:[%s6964_s3 + $0x928] sm:$0xff]  ;;  %v1357_v33 = vld [vmem:[%s6964_s3 + $0x9a0] sm:$0xff] }
 0x19d   :  { %3707 = vmatprep.subr.mxu0 %v1391_v46  ;;  %3604 = vmatprep.subr.mxu1 %v1294_v17  ;;  %v1438_v46 = vld [vmem:[%s6964_s3 + $0xc28] sm:$0xff]  ;;  %v1341_v17 = vld [vmem:[%s6964_s3 + $0x920] sm:$0xff] }
 0x19e   :  { %3708 = vmatpush3.msra.mxu0 %v1375_v50  ;;  %3605 = vmatpush3.msra.mxu1 %v1278_v45  ;;  %v1356_v50 = vld [vmem:[%s6964_s3 + $0x998] sm:$0xff]  ;;  %v1437_v45 = vld [vmem:[%s6964_s3 + $0xc20] sm:$0xff] }
 0x19f   :  { %3709 = vmatprep.subr.mxu0 %v1390_v23  ;;  %3606 = vmatprep.subr.mxu1 %v1293_v35  ;;  %v1340_v23 = vld [vmem:[%s6964_s3 + $0x918] sm:$0xff]  ;;  %v1355_v35 = vld [vmem:[%s6964_s3 + $0x990] sm:$0xff] }
 0x1a0   :  { %3710 = vmatpush3.msra.mxu0 %v1374_v44  ;;  %3607 = vmatpush3.msra.mxu1 %v1277_v42  ;;  %v1436_v44 = vld [vmem:[%s6964_s3 + $0xc18] sm:$0xff]  ;;  %v1339_v42 = vld [vmem:[%s6964_s3 + $0x910] sm:$0xff] }
 0x1a1   :  { %3711 = vmatprep.subr.mxu0 %v1389_v31  ;;  %3608 = vmatprep.subr.mxu1 %v1292_v29  ;;  %v1354_v31 = vld [vmem:[%s6964_s3 + $0x988] sm:$0xff]  ;;  %v1435_v29 = vld [vmem:[%s6964_s3 + $0xc10] sm:$0xff] }
 0x1a2   :  { %3712 = vmatpush3.msra.mxu0 %v1373_v34  ;;  %3609 = vmatpush3.msra.mxu1 %v1276_v20  ;;  %v1338_v34 = vld [vmem:[%s6964_s3 + $0x908] sm:$0xff]  ;;  %v1353_v20 = vld [vmem:[%s6964_s3 + $0x980] sm:$0xff] }
 0x1a3   :  { %3713 = vmatprep.subr.mxu0 %v1388_v47  ;;  %3610 = vmatprep.subr.mxu1 %v1291_v36  ;;  %v1434_v47 = vld [vmem:[%s6964_s3 + $0xc08] sm:$0xff]  ;;  %v1337_v36 = vld [vmem:[%s6964_s3 + $0x900] sm:$0xff] }
 0x1a4   :  { %3714 = vmatpush3.msra.mxu0 %v1372_v25  ;;  %3611 = vmatpush3.msra.mxu1 %v1275_v62  ;;  %v1432_v25 = vld [vmem:[%s6964_s3 + $0xbf8] sm:$0xff]  ;;  %v1433_v62 = vld [vmem:[%s6964_s3 + $0xc00] sm:$0xff] }
 0x1a5   :  { %3715 = vmatprep.subr.mxu0 %v1387_v58  ;;  %3612 = vmatprep.subr.mxu1 %v1290_v57  ;;  %v1416_v58 = vld [vmem:[%s6964_s3 + $0xb78] sm:$0xff]  ;;  %v1431_v57 = vld [vmem:[%s6964_s3 + $0xbf0] sm:$0xff] }
 0x1a6   :  { %3716 = vmatpush3.msra.mxu0 %v1371_v41  ;;  %3613 = vmatpush3.msra.mxu1 %v1274_v59  ;;  %v1415_v41 = vld [vmem:[%s6964_s3 + $0xb70] sm:$0xff]  ;;  %v1414_v59 = vld [vmem:[%s6964_s3 + $0xb68] sm:$0xff] }
 0x1a7   :  { %3717 = vmatprep.subr.mxu0 %v1386_v15  ;;  %3614 = vmatprep.subr.mxu1 %v1289_v63  ;;  %v1429_v15 = vld [vmem:[%s6964_s3 + $0xbe0] sm:$0xff]  ;;  %v1412_v63 = vld [vmem:[%s6964_s3 + $0xb58] sm:$0xff] }
 0x1a8   :  { %3718 = vmatpush3.msra.mxu0 %v1370_v51  ;;  %3615 = vmatpush3.msra.mxu1 %v1273_v56  ;;  %v1427_v51 = vld [vmem:[%s6964_s3 + $0xbd0] sm:$0xff] }
 0x1a9   :  { %3719 = vmatprep.subr.mxu0 %v1385_v24  ;;  %2004 = vmatmul.mubr.f32.vlgmr.msra.gmra.mxu1 %v5268_v1  ;;  %v4101_v1 = vmov 0.0   ;;  %v1411_v56 = vld [vmem:[%s6964_s3 + $0xb50] sm:$0xff]  ;;  %v1426_v24 = vld [vmem:[%s6964_s3 + $0xbc8] sm:$0xff] }
 0x1aa   :  { %3654 = vmatprep.subr.mxu1 %v1368_v0  ;;  %3720 = vmatpush3.msra.mxu0 %v1369_v53  ;;  %v1410_v0 = vld [vmem:[%s6964_s3 + $0xb48] sm:$0xff]  ;;  %v1425_v53 = vld [vmem:[%s6964_s3 + $0xbc0] sm:$0xff] }
 0x1ab   :  { %3655 = vmatpush3.msra.mxu1 %v1352_v22  ;;  %2143 = vmatprep.mubr.f32.mxu1 %v5312_v13  ;;  %v1350_v13 = vld [vmem:[%s6964_s3 + $0x968] sm:$0xff]  ;;  %v1409_v22 = vld [vmem:[%s6964_s3 + $0xb40] sm:$0xff] }
 0x1ac   :  { %2214 = vmatmul.mubr.f32.vlgmr.msra.gmra.mxu0 %v5347_v3  ;;  %3959 = vmatprep.subr.mxu0 %v4101_v1  ;;  %v1365_v3 = vld [vmem:[%s6964_s3 + $0x9e0] sm:$0xff] }
 0x1ad   :  { %3656 = vmatprep.subr.mxu1 %v1367_v55  ;;  %3960 = vmatpush3.msra.mxu0 %v1448_v14  ;;  %v1424_v55 = vld [vmem:[%s6964_s3 + $0xbb8] sm:$0xff] }
 0x1ae   :  { %3657 = vmatpush3.msra.mxu1 %v1351_v30  ;;  %3961 = vmatprep.subr.mxu0 %v4101_v1  ;;  %v1408_v14 = vld [vmem:[%s6964_s3 + $0xb38] sm:$0xff]  ;;  %v1423_v30 = vld [vmem:[%s6964_s3 + $0xbb0] sm:$0xff] }
 0x1af   :  { %3658 = vmatprep.subr.mxu1 %v1366_v27  ;;  %3962 = vmatpush3.msra.mxu0 %v1447_v10  ;;  %v1407_v27 = vld [vmem:[%s6964_s3 + $0xb30] sm:$0xff]  ;;  %v1422_v10 = vld [vmem:[%s6964_s3 + $0xba8] sm:$0xff] }
 0x1b0   :  { %3659 = vmatpush3.msra.mxu1 %v1350_v13  ;;  %3963 = vmatprep.subr.mxu0 %v4101_v1  ;;  %v1406_v13 = vld [vmem:[%s6964_s3 + $0xb28] sm:$0xff] }
 0x1b1   :  { %3660 = vmatprep.subr.mxu1 %v1365_v3  ;;  %3964 = vmatpush3.msra.mxu0 %v1446_v60  ;;  %v1421_v3 = vld [vmem:[%s6964_s3 + $0xba0] sm:$0xff] }
 0x1b2   :  { %3661 = vmatpush3.msra.mxu1 %v1349_v54  ;;  %3965 = vmatprep.subr.mxu0 %v4101_v1  ;;  %v1405_v60 = vld [vmem:[%s6964_s3 + $0xb20] sm:$0xff]  ;;  %v1420_v54 = vld [vmem:[%s6964_s3 + $0xb98] sm:$0xff] }
 0x1b3   :  { %3662 = vmatprep.subr.mxu1 %v1364_v19  ;;  %3966 = vmatpush3.msra.mxu0 %v1445_v26  ;;  %v1404_v19 = vld [vmem:[%s6964_s3 + $0xb18] sm:$0xff]  ;;  %v1419_v26 = vld [vmem:[%s6964_s3 + $0xb90] sm:$0xff] }
 0x1b4   :  { %3663 = vmatpush3.msra.mxu1 %v1348_v7  ;;  %3967 = vmatprep.subr.mxu0 %v4101_v1  ;;  %v1403_v7 = vld [vmem:[%s6964_s3 + $0xb10] sm:$0xff] }
 0x1b5   :  { %3664 = vmatprep.subr.mxu1 %v1363_v49  ;;  %3968 = vmatpush3.msra.mxu0 %v1444_v6  ;;  %v1418_v49 = vld [vmem:[%s6964_s3 + $0xb88] sm:$0xff] }
 0x1b6   :  { %3665 = vmatpush3.msra.mxu1 %v1347_v32  ;;  %3969 = vmatprep.subr.mxu0 %v4101_v1  ;;  %v1402_v6 = vld [vmem:[%s6964_s3 + $0xb08] sm:$0xff]  ;;  %v1417_v32 = vld [vmem:[%s6964_s3 + $0xb80] sm:$0xff] }
 0x1b7   :  { %3666 = vmatprep.subr.mxu1 %v1362_v28  ;;  %3970 = vmatpush3.msra.mxu0 %v1443_v5  ;;  %v1401_v28 = vld [vmem:[%s6964_s3 + $0xb00] sm:$0xff]  ;;  %v2424_v5 = vld [vmem:[%s6966_s5 + $0x170] sm:$0xff] }
 0x1b8   :  { %3667 = vmatpush3.msra.mxu1 %v1346_v9  ;;  %3971 = vmatprep.subr.mxu0 %v4101_v1  ;;  %v2423_v9 = vld [vmem:[%s6966_s5 + $0x168] sm:$0xff] }
 0x1b9   :  { %3668 = vmatprep.subr.mxu1 %v1361_v8  ;;  %3972 = vmatpush3.msra.mxu0 %v1442_v4  ;;  %v2425_v8 = vld [vmem:[%s6966_s5 + $0x178] sm:$0xff]  ;;  %v2420_v4 = vld [vmem:[%s6966_s5 + $0x150] sm:$0xff] }
 0x1ba   :  { %3669 = vmatpush3.msra.mxu1 %v1345_v2  ;;  %3973 = vmatprep.subr.mxu0 %v4101_v1  ;;  %v2422_v2 = vld [vmem:[%s6966_s5 + $0x160] sm:$0xff] }
 0x1bb   :  { %3670 = vmatprep.subr.mxu1 %v1360_v43  ;;  %3974 = vmatpush3.msra.mxu0 %v1441_v12  ;;  %v2418_v43 = vld [vmem:[%s6966_s5 + $0x140] sm:$0xff]  ;;  %v2419_v12 = vld [vmem:[%s6966_s5 + $0x148] sm:$0xff] }
 0x1bc   :  { %3671 = vmatpush3.msra.mxu1 %v1344_v61  ;;  %3975 = vmatprep.subr.mxu0 %v4101_v1  ;;  %v2417_v61 = vld [vmem:[%s6966_s5 + $0x138] sm:$0xff] }
 0x1bd   :  { %3672 = vmatprep.subr.mxu1 %v1359_v39  ;;  %3976 = vmatpush3.msra.mxu0 %v1440_v48  ;;  %v2415_v39 = vld [vmem:[%s6966_s5 + $0x128] sm:$0xff]  ;;  %v2416_v48 = vld [vmem:[%s6966_s5 + $0x130] sm:$0xff] }
 0x1be   :  { %3673 = vmatpush3.msra.mxu1 %v1343_v11  ;;  %3977 = vmatprep.subr.mxu0 %v4101_v1  ;;  %v2414_v11 = vld [vmem:[%s6966_s5 + $0x120] sm:$0xff] }
 0x1bf   :  { %3674 = vmatprep.subr.mxu1 %v1358_v52  ;;  %3978 = vmatpush3.msra.mxu0 %v1439_v37  ;;  %v2412_v52 = vld [vmem:[%s6966_s5 + $0x110] sm:$0xff]  ;;  %v2413_v37 = vld [vmem:[%s6966_s5 + $0x118] sm:$0xff] }
 0x1c0   :  { %3675 = vmatpush3.msra.mxu1 %v1342_v16  ;;  %3979 = vmatprep.subr.mxu0 %v4101_v1  ;;  %v2411_v16 = vld [vmem:[%s6966_s5 + $0x108] sm:$0xff] }
 0x1c1   :  { %3676 = vmatprep.subr.mxu1 %v1357_v33  ;;  %3980 = vmatpush3.msra.mxu0 %v1438_v46  ;;  %v2409_v33 = vld [vmem:[%s6966_s5 + $0xf8] sm:$0xff]  ;;  %v2408_v46 = vld [vmem:[%s6966_s5 + $0xf0] sm:$0xff] }
 0x1c2   :  { %3677 = vmatpush3.msra.mxu1 %v1341_v17  ;;  %3981 = vmatprep.subr.mxu0 %v4101_v1  ;;  %v2410_v17 = vld [vmem:[%s6966_s5 + $0x100] sm:$0xff] }
 0x1c3   :  { %3678 = vmatprep.subr.mxu1 %v1356_v50  ;;  %3982 = vmatpush3.msra.mxu0 %v1437_v45  ;;  %v2406_v50 = vld [vmem:[%s6966_s5 + $0xe0] sm:$0xff]  ;;  %v2405_v45 = vld [vmem:[%s6966_s5 + $0xd8] sm:$0xff] }
 0x1c4   :  { %3679 = vmatpush3.msra.mxu1 %v1340_v23  ;;  %3983 = vmatprep.subr.mxu0 %v4101_v1  ;;  %v2407_v23 = vld [vmem:[%s6966_s5 + $0xe8] sm:$0xff] }
 0x1c5   :  { %3680 = vmatprep.subr.mxu1 %v1355_v35  ;;  %3984 = vmatpush3.msra.mxu0 %v1436_v44  ;;  %v2403_v35 = vld [vmem:[%s6966_s5 + $0xc8] sm:$0xff]  ;;  %v2402_v44 = vld [vmem:[%s6966_s5 + $0xc0] sm:$0xff] }
 0x1c6   :  { %3681 = vmatpush3.msra.mxu1 %v1339_v42  ;;  %3985 = vmatprep.subr.mxu0 %v4101_v1  ;;  %v2404_v42 = vld [vmem:[%s6966_s5 + $0xd0] sm:$0xff] }
 0x1c7   :  { %3682 = vmatprep.subr.mxu1 %v1354_v31  ;;  %3986 = vmatpush3.msra.mxu0 %v1435_v29  ;;  %v2400_v31 = vld [vmem:[%s6966_s5 + $0xb0] sm:$0xff]  ;;  %v2399_v29 = vld [vmem:[%s6966_s5 + $0xa8] sm:$0xff] }
 0x1c8   :  { %3683 = vmatpush3.msra.mxu1 %v1338_v34  ;;  %3987 = vmatprep.subr.mxu0 %v4101_v1  ;;  %v2401_v34 = vld [vmem:[%s6966_s5 + $0xb8] sm:$0xff] }
 0x1c9   :  { %3684 = vmatprep.subr.mxu1 %v1353_v20  ;;  %3988 = vmatpush3.msra.mxu0 %v1434_v47  ;;  %v2397_v20 = vld [vmem:[%s6966_s5 + $0x98] sm:$0xff]  ;;  %v2396_v47 = vld [vmem:[%s6966_s5 + $0x90] sm:$0xff] }
 0x1ca   :  { %3685 = vmatpush3.msra.mxu1 %v1337_v36  ;;  %3989 = vmatprep.subr.mxu0 %v4101_v1  ;;  %v2398_v36 = vld [vmem:[%s6966_s5 + $0xa0] sm:$0xff] }
 0x1cb   :  { %2144 = vmatmul.mubr.f32.vlgmr.msra.gmra.mxu1 %v5384_v40  ;;  %3724 = vmatprep.subr.mxu1 %v1432_v25  ;;  %v1430_v40 = vld [vmem:[%s6964_s3 + $0xbe8] sm:$0xff]  ;;  %v2394_v25 = vld [vmem:[%s6966_s5 + $0x80] sm:$0xff] }
 0x1cc   :  { %3990 = vmatpush3.msra.mxu0 %v1433_v62  ;;  %3991 = vmatprep.mubr.msk.f32.mxu0 %vm4102_vm11, %v4101_v1  ;;  %v2393_v62 = vld [vmem:[%s6966_s5 + $0x78] sm:$0xff] }
 0x1cd   :  { %3725 = vmatpush3.msra.mxu1 %v1416_v58  ;;  %2283 = vmatprep.mubr.f32.mxu1 %v5420_v21  ;;  %v1413_v21 = vld [vmem:[%s6964_s3 + $0xb60] sm:$0xff]  ;;  %v2395_v58 = vld [vmem:[%s6966_s5 + $0x88] sm:$0xff] }
 0x1ce   :  { %3992 = vmatmul.mubr.f32.vlgmr.msra.gmra.mxu0 %v5452_v38  ;;  %3726 = vmatprep.subr.mxu1 %v1431_v57  ;;  %v1428_v38 = vld [vmem:[%s6964_s3 + $0xbd8] sm:$0xff]  ;;  %v2391_v57 = vld [vmem:[%s6966_s5 + $0x68] sm:$0xff] }
 0x1cf   :  { %3727 = vmatpush3.msra.mxu1 %v1415_v41  ;;  %3994 = vmatprep.subr.mxu0 %v4101_v1  ;;  %v2390_v41 = vld [vmem:[%s6966_s5 + $0x60] sm:$0xff] }
 0x1d0   :  { %3728 = vmatprep.subr.mxu1 %v1430_v40  ;;  %4026 = vmatprep.mubr.msk.f32.mxu0 %vm4102_vm11, %v4101_v1  ;;  %v2392_v40 = vld [vmem:[%s6966_s5 + $0x70] sm:$0xff] }
 0x1d1   :  { %3729 = vmatpush3.msra.mxu1 %v1414_v59  ;;  %3995 = vmatpush3.msra.mxu0 %v2425_v8  ;;  %v2388_v59 = vld [vmem:[%s6966_s5 + $0x50] sm:$0xff] }
 0x1d2   :  { %3730 = vmatprep.subr.mxu1 %v1429_v15  ;;  %3996 = vmatprep.subr.mxu0 %v4101_v1  ;;  %v2387_v15 = vld [vmem:[%s6966_s5 + $0x48] sm:$0xff] }
 0x1d3   :  { %3731 = vmatpush3.msra.mxu1 %v1413_v21  ;;  %3997 = vmatpush3.msra.mxu0 %v2422_v2  ;;  %v2389_v21 = vld [vmem:[%s6966_s5 + $0x58] sm:$0xff] }
 0x1d4   :  { %3732 = vmatprep.subr.mxu1 %v1428_v38  ;;  %3998 = vmatprep.subr.mxu0 %v4101_v1  ;;  %v2385_v38 = vld [vmem:[%s6966_s5 + $0x38] sm:$0xff] }
 0x1d5   :  { %3733 = vmatpush3.msra.mxu1 %v1412_v63  ;;  %3999 = vmatpush3.msra.mxu0 %v2419_v12  ;;  %v2384_v63 = vld [vmem:[%s6966_s5 + $0x30] sm:$0xff] }
 0x1d6   :  { %3734 = vmatprep.subr.mxu1 %v1427_v51  ;;  %4000 = vmatprep.subr.mxu0 %v4101_v1  ;;  %v2386_v51 = vld [vmem:[%s6966_s5 + $0x40] sm:$0xff] }
 0x1d7   :  { %3735 = vmatpush3.msra.mxu1 %v1411_v56  ;;  %4001 = vmatpush3.msra.mxu0 %v2416_v48  ;;  %v2382_v56 = vld [vmem:[%s6966_s5 + $0x20] sm:$0xff] }
 0x1d8   :  { %3736 = vmatprep.subr.mxu1 %v1426_v24  ;;  %4002 = vmatprep.subr.mxu0 %v4101_v1  ;;  %v2381_v24 = vld [vmem:[%s6966_s5 + $0x18] sm:$0xff] }
 0x1d9   :  { %3737 = vmatpush3.msra.mxu1 %v1410_v0  ;;  %4003 = vmatpush3.msra.mxu0 %v2413_v37  ;;  %v2383_v0 = vld [vmem:[%s6966_s5 + $0x28] sm:$0xff] }
 0x1da   :  { %3738 = vmatprep.subr.mxu1 %v1425_v53  ;;  %4004 = vmatprep.subr.mxu0 %v4101_v1  ;;  %v2379_v53 = vld [vmem:[%s6966_s5 + $0x8] sm:$0xff] }
 0x1db   :  { %3739 = vmatpush3.msra.mxu1 %v1409_v22  ;;  %4005 = vmatpush3.msra.mxu0 %v2410_v17  ;;  %v2378_v22 = vld [vmem:[%s6966_s5] sm:$0xff] }
 0x1dc   :  { %3740 = vmatprep.subr.mxu1 %v1424_v55  ;;  %4006 = vmatprep.subr.mxu0 %v4101_v1  ;;  %v2380_v55 = vld [vmem:[%s6966_s5 + $0x10] sm:$0xff] }
 0x1dd   :  { %3741 = vmatpush3.msra.mxu1 %v1408_v14  ;;  %4007 = vmatpush3.msra.mxu0 %v2407_v23  ;;  %v2633_v14 = vld [vmem:[%s6967_s7 + $0x170] sm:$0xff] }
 0x1de   :  { %3742 = vmatprep.subr.mxu1 %v1423_v30  ;;  %4008 = vmatprep.subr.mxu0 %v4101_v1  ;;  %v2729_v30 = vld [vmem:[%s6967_s7 + $0x470] sm:$0xff] }
 0x1df   :  { %3743 = vmatpush3.msra.mxu1 %v1407_v27  ;;  %4009 = vmatpush3.msra.mxu0 %v2404_v42 }
 0x1e0   :  { %3744 = vmatprep.subr.mxu1 %v1422_v10  ;;  %4010 = vmatprep.subr.mxu0 %v4101_v1 }
 0x1e1   :  { %3745 = vmatpush3.msra.mxu1 %v1406_v13  ;;  %4011 = vmatpush3.msra.mxu0 %v2401_v34 }
 0x1e2   :  { %3746 = vmatprep.subr.mxu1 %v1421_v3  ;;  %4012 = vmatprep.subr.mxu0 %v4101_v1 }
 0x1e3   :  { %3747 = vmatpush3.msra.mxu1 %v1405_v60  ;;  %4013 = vmatpush3.msra.mxu0 %v2398_v36 }
 0x1e4   :  { %3748 = vmatprep.subr.mxu1 %v1420_v54  ;;  %4014 = vmatprep.subr.mxu0 %v4101_v1 }
 0x1e5   :  { %3749 = vmatpush3.msra.mxu1 %v1404_v19  ;;  %4015 = vmatpush3.msra.mxu0 %v2395_v58  ;;  %v3371_v19 = vpop.f32.mrf.mxu1 }
 0x1e6   :  { %3750 = vmatprep.subr.mxu1 %v1419_v26  ;;  %4016 = vmatprep.subr.mxu0 %v4101_v1 }
 0x1e7   :  { %3751 = vmatpush3.msra.mxu1 %v1403_v7  ;;  %4017 = vmatpush3.msra.mxu0 %v2392_v40  ;;  %v3372_v7 = vpop.f32.mrf.mxu1 }
 0x1e8   :  { %3752 = vmatprep.subr.mxu1 %v1418_v49  ;;  %4018 = vmatprep.subr.mxu0 %v4101_v1  ;;  %v3441_v27 = vpop.f32.mrf.mxu0  ;;  %v3373_v2 = vadd.f32 %v3372_v7, %v3371_v19  ;;  %v2624_v19 = vld [vmem:[%s6967_s7 + $0x128] sm:$0xff]  ;;  %v2623_v7 = vld [vmem:[%s6967_s7 + $0x120] sm:$0xff] }
 0x1e9   :  { %3753 = vmatpush3.msra.mxu1 %v1402_v6  ;;  %4019 = vmatpush3.msra.mxu0 %v2389_v21 }
 0x1ea   :  { %3754 = vmatprep.subr.mxu1 %v1417_v32  ;;  %4020 = vmatprep.subr.mxu0 %v4101_v1  ;;  %v3442_v10 = vpop.f32.mrf.mxu0 }
 0x1eb   :  { %3755 = vmatpush3.msra.mxu1 %v1401_v28  ;;  %4021 = vmatpush3.msra.mxu0 %v2386_v51 }
 0x1ec   :  { %2284 = vmatmul.mubr.f32.vlgmr.msra.gmra.mxu1 %v5472_v18  ;;  %2443 = vmatprep.subr.mxu1 %v2424_v5  ;;  %v2421_v18 = vld [vmem:[%s6966_s5 + $0x158] sm:$0xff] }
 0x1ed   :  { %2507 = vmatprep.mubr.f32.mxu1 %v4101_v1  ;;  %2444 = vmatpush1.msra.mxu1 %v2423_v9 }
 0x1ee   :  { %2445 = vmatprep.subr.mxu1 %v2421_v18  ;;  %4022 = vmatprep.subr.mxu0 %v4101_v1 }
 0x1ef   :  { %2446 = vmatpush1.msra.mxu1 %v2420_v4  ;;  %4023 = vmatpush3.msra.mxu0 %v2383_v0 }
 0x1f0   :  { %2447 = vmatprep.subr.mxu1 %v2418_v43  ;;  %4024 = vmatprep.subr.mxu0 %v4101_v1 }
 0x1f1   :  { %2448 = vmatpush1.msra.mxu1 %v2417_v61  ;;  %4025 = vmatpush3.msra.mxu0 %v2380_v55  ;;  %v2728_v55 = vld [vmem:[%s6967_s7 + $0x468] sm:$0xff] }
 0x1f2   :  { %2449 = vmatprep.subr.mxu1 %v2415_v39  ;;  %2819 = vmatprep.subr.mxu0 %v2729_v30  ;;  %v3443_v39 = vadd.f32 %v3442_v10, %v3441_v27  ;;  %v2726_v30 = vld [vmem:[%s6967_s7 + $0x458] sm:$0xff]  ;;  %v2629_v27 = vld [vmem:[%s6967_s7 + $0x150] sm:$0xff] }
 0x1f3   :  { %2450 = vmatpush1.msra.mxu1 %v2414_v11  ;;  %v2725_v10 = vld [vmem:[%s6967_s7 + $0x450] sm:$0xff] }
 0x1f4   :  { %2451 = vmatprep.subr.mxu1 %v2412_v52 }
 0x1f5   :  { %2452 = vmatpush1.msra.mxu1 %v2411_v16 }
 0x1f6   :  { %2453 = vmatprep.subr.mxu1 %v2409_v33 }
 0x1f7   :  { %2454 = vmatpush1.msra.mxu1 %v2408_v46 }
 0x1f8   :  { %2455 = vmatprep.subr.mxu1 %v2406_v50 }
 0x1f9   :  { %2456 = vmatpush1.msra.mxu1 %v2405_v45 }
 0x1fa   :  { %2457 = vmatprep.subr.mxu1 %v2403_v35 }
 0x1fb   :  { %2458 = vmatpush1.msra.mxu1 %v2402_v44 }
 0x1fc   :  { %2459 = vmatprep.subr.mxu1 %v2400_v31 }
 0x1fd   :  { %2460 = vmatpush1.msra.mxu1 %v2399_v29 }
 0x1fe   :  { %2461 = vmatprep.subr.mxu1 %v2397_v20 }
 0x1ff   :  { %2462 = vmatpush1.msra.mxu1 %v2396_v47 }
 0x200   :  { %2463 = vmatprep.subr.mxu1 %v2394_v25  ;;  %v3406_v6 = vpop.f32.mrf.mxu1 }
 0x201   :  { %2464 = vmatpush1.msra.mxu1 %v2393_v62 }
 0x202   :  { %2465 = vmatprep.subr.mxu1 %v2391_v57  ;;  %v3407_v28 = vpop.f32.mrf.mxu1 }
 0x203   :  { %2466 = vmatpush1.msra.mxu1 %v2390_v41  ;;  %v3408_v18 = vadd.f32 %v3407_v28, %v3406_v6  ;;  %v2621_v6 = vld [vmem:[%s6967_s7 + $0x110] sm:$0xff]  ;;  %v2620_v28 = vld [vmem:[%s6967_s7 + $0x108] sm:$0xff] }
 0x204   :  { %2467 = vmatprep.subr.mxu1 %v2388_v59 }
 0x205   :  { %2468 = vmatpush1.msra.mxu1 %v2387_v15  ;;  %v1586_v12 = vadd.f32 %v3408_v18, %v3373_v2  ;;  %v2617_v18 = vld [vmem:[%s6967_s7 + $0xf0] sm:$0xff]  ;;  %v2615_v2 = vld [vmem:[%s6967_s7 + $0xe0] sm:$0xff] }
 0x206   :  { %2469 = vmatprep.subr.mxu1 %v2385_v38 }
 0x207   :  { %2470 = vmatpush1.msra.mxu1 %v2384_v63  ;;  %v1656_v11 = vadd.f32 %v3443_v39, %v1586_v12  ;;  %v2614_v12 = vld [vmem:[%s6967_s7 + $0xd8] sm:$0xff]  ;;  %v2612_v39 = vld [vmem:[%s6967_s7 + $0xc8] sm:$0xff] }
 0x208   :  { %2471 = vmatprep.subr.mxu1 %v2382_v56  ;;  %v3511_v13 = vpop.f32.mrf.mxu0  ;;  %v3297_v56 = vld [vmem:[%s6968_s4] ss:$0 sm:$0xff] }
 0x209   :  { %2472 = vmatpush1.msra.mxu1 %v2381_v24 }
 0x20a   :  { %2473 = vmatprep.subr.mxu1 %v2379_v53  ;;  %v3512_v3 = vpop.f32.mrf.mxu0 }
 0x20b   :  { %2474 = vmatpush1.msra.mxu1 %v2378_v22  ;;  %v3513_v33 = vadd.f32 %v3512_v3, %v3511_v13  ;;  %v2632_v22 = vld [vmem:[%s6967_s7 + $0x168] sm:$0xff]  ;;  %v2627_v13 = vld [vmem:[%s6967_s7 + $0x140] sm:$0xff] }
 0x20c   :  { %2748 = vmatprep.subr.mxu1 %v2633_v14  ;;  %v2630_v14 = vld [vmem:[%s6967_s7 + $0x158] sm:$0xff]  ;;  %v2723_v3 = vld [vmem:[%s6967_s7 + $0x440] sm:$0xff] }
 0x224   :  { %v3476_v9 = vpop.f32.mrf.mxu1 }
 0x226   :  { %v3477_v43 = vpop.f32.mrf.mxu1 }
 0x227   :  { %v3478_v48 = vadd.f32 %v3477_v43, %v3476_v9  ;;  %v2618_v9 = vld [vmem:[%s6967_s7 + $0xf8] sm:$0xff]  ;;  %v2711_v43 = vld [vmem:[%s6967_s7 + $0x3e0] sm:$0xff] }
 0x228   :  { %v3581_v60 = vpop.f32.mrf.mxu0 }
 0x229   :  { %v1726_v37 = vadd.f32 %v3478_v48, %v1656_v11  ;;  %v2708_v48 = vld [vmem:[%s6967_s7 + $0x3c8] sm:$0xff]  ;;  %v2611_v11 = vld [vmem:[%s6967_s7 + $0xc0] sm:$0xff] }
 0x22a   :  { %v3582_v54 = vpop.f32.mrf.mxu0 }
 0x22b   :  { %v1796_v17 = vadd.f32 %v3513_v33, %v1726_v37  ;;  %v3583_v35 = vadd.f32 %v3582_v54, %v3581_v60  ;;  %v2626_v60 = vld [vmem:[%s6967_s7 + $0x138] sm:$0xff]  ;;  %v2609_v37 = vld [vmem:[%s6967_s7 + $0xb0] sm:$0xff]  ;;  %v2608_v33 = vld [vmem:[%s6967_s7 + $0xa8] sm:$0xff] }
 0x22c   :  { %v2722_v54 = vld [vmem:[%s6967_s7 + $0x438] sm:$0xff] }
 0x247   :  { %v3546_v61 = vpop.f32.mrf.mxu1 }
 0x249   :  { %v3547_v52 = vpop.f32.mrf.mxu1 }
 0x24a   :  { %v3651_v26 = vpop.f32.mrf.mxu0  ;;  %v3548_v46 = vadd.f32 %v3547_v52, %v3546_v61  ;;  %v2710_v61 = vld [vmem:[%s6967_s7 + $0x3d8] sm:$0xff]  ;;  %v2707_v52 = vld [vmem:[%s6967_s7 + $0x3c0] sm:$0xff] }
 0x24c   :  { %v3652_v49 = vpop.f32.mrf.mxu0  ;;  %v1866_v45 = vadd.f32 %v3548_v46, %v1796_v17  ;;  %v2704_v46 = vld [vmem:[%s6967_s7 + $0x3a8] sm:$0xff]  ;;  %v2606_v17 = vld [vmem:[%s6967_s7 + $0x98] sm:$0xff] }
 0x24d   :  { %v3653_v34 = vadd.f32 %v3652_v49, %v3651_v26  ;;  %v2720_v26 = vld [vmem:[%s6967_s7 + $0x428] sm:$0xff]  ;;  %v2719_v49 = vld [vmem:[%s6967_s7 + $0x420] sm:$0xff] }
 0x24e   :  { %v1936_v42 = vadd.f32 %v3583_v35, %v1866_v45  ;;  %v2605_v45 = vld [vmem:[%s6967_s7 + $0x90] sm:$0xff]  ;;  %v2603_v35 = vld [vmem:[%s6967_s7 + $0x80] sm:$0xff] }
 0x269   :  { %v3616_v16 = vpop.f32.mrf.mxu1 }
 0x26b   :  { %v3617_v50 = vpop.f32.mrf.mxu1 }
 0x26c   :  { %v3721_v32 = vpop.f32.mrf.mxu0  ;;  %v3618_v44 = vadd.f32 %v3617_v50, %v3616_v16  ;;  %v2705_v16 = vld [vmem:[%s6967_s7 + $0x3b0] sm:$0xff]  ;;  %v2702_v50 = vld [vmem:[%s6967_s7 + $0x398] sm:$0xff] }
 0x26e   :  { %v3722_v5 = vpop.f32.mrf.mxu0  ;;  %v2006_v29 = vadd.f32 %v3618_v44, %v1936_v42  ;;  %v2699_v44 = vld [vmem:[%s6967_s7 + $0x380] sm:$0xff]  ;;  %v2602_v42 = vld [vmem:[%s6967_s7 + $0x78] sm:$0xff] }
 0x26f   :  { %v3723_v62 = vadd.f32 %v3722_v5, %v3721_v32  ;;  %v2717_v32 = vld [vmem:[%s6967_s7 + $0x410] sm:$0xff]  ;;  %v2716_v5 = vld [vmem:[%s6967_s7 + $0x408] sm:$0xff] }
 0x270   :  { %v2076_v47 = vadd.f32 %v3653_v34, %v2006_v29  ;;  %v2600_v29 = vld [vmem:[%s6967_s7 + $0x68] sm:$0xff] }
 0x271   :  { %v2696_v34 = vld [vmem:[%s6967_s7 + $0x368] sm:$0xff] }
 0x28b   :  { %v3686_v23 = vpop.f32.mrf.mxu1 }
 0x28d   :  { %v3687_v31 = vpop.f32.mrf.mxu1 }
 0x28e   :  { %v2355_v8 = vpop.f32.mrf.mxu0  ;;  %v3688_v20 = vadd.f32 %v3687_v31, %v3686_v23  ;;  %v2701_v23 = vld [vmem:[%s6967_s7 + $0x390] sm:$0xff]  ;;  %v2698_v31 = vld [vmem:[%s6967_s7 + $0x378] sm:$0xff] }
 0x290   :  { %v3993_v4 = vpop.f32.mrf.mxu0  ;;  %v2146_v36 = vadd.f32 %v3688_v20, %v2076_v47  ;;  %v2599_v20 = vld [vmem:[%s6967_s7 + $0x60] sm:$0xff] }
 0x291   :  { %v2713_v4 = vld [vmem:[%s6967_s7 + $0x3f0] sm:$0xff]  ;;  %v2695_v47 = vld [vmem:[%s6967_s7 + $0x360] sm:$0xff] }
 0x292   :  { %v2216_v57 = vadd.f32 %v3723_v62, %v2146_v36  ;;  %v2597_v36 = vld [vmem:[%s6967_s7 + $0x50] sm:$0xff]  ;;  %v2596_v62 = vld [vmem:[%s6967_s7 + $0x48] sm:$0xff] }
 0x2ac   :  { %v3756_v25 = vpop.f32.mrf.mxu1 }
 0x2ae   :  { %v3757_v58 = vpop.f32.mrf.mxu1 }
 0x2af   :  { %v3758_v41 = vadd.f32 %v3757_v58, %v3756_v25  ;;  %v2693_v25 = vld [vmem:[%s6967_s7 + $0x350] sm:$0xff]  ;;  %v2692_v58 = vld [vmem:[%s6967_s7 + $0x348] sm:$0xff] }
 0x2b1   :  { %v2286_v40 = vadd.f32 %v3758_v41, %v2216_v57  ;;  %v2594_v57 = vld [vmem:[%s6967_s7 + $0x38] sm:$0xff] }
 0x2b2   :  { %v2690_v41 = vld [vmem:[%s6967_s7 + $0x338] sm:$0xff] }
 0x2b3   :  { %v2356_v59 = vadd.f32 %v2355_v8, %v2286_v40  ;;  %v2714_v8 = vld [vmem:[%s6967_s7 + $0x3f8] sm:$0xff]  ;;  %v2593_v40 = vld [vmem:[%s6967_s7 + $0x30] sm:$0xff] }
 0x2b5   :  { %v2360_v15 = vrot.slane %v2356_v59, 2  ;;  %v2363_v38 = vrot.slane %v2356_v59, 4  ;;  %v2366_v51 = vrot.slane %v2356_v59, 6 }
 0x2b7   :  { %v2362_v21 = vmax.f32 %v2356_v59, %v2360_v15  ;;  %v2689_v59 = vld [vmem:[%s6967_s7 + $0x330] sm:$0xff]  ;;  %v2591_v15 = vld [vmem:[%s6967_s7 + $0x20] sm:$0xff] }
 0x2b9   :  { %v2365_v63 = vmax.f32 %v2362_v21, %v2363_v38  ;;  %v2590_v21 = vld [vmem:[%s6967_s7 + $0x18] sm:$0xff]  ;;  %v2588_v38 = vld [vmem:[%s6967_s7 + $0x8] sm:$0xff] }
 0x2bb   :  { %v2368_v24 = vmax.f32 %v2365_v63, %v2366_v51  ;;  %v2587_v63 = vld [vmem:[%s6967_s7] sm:$0xff]  ;;  %v2681_v51 = vld [vmem:[%s6967_s7 + $0x2f0] sm:$0xff] }
 0x2bd   :  { %v2376_v0 = vadd.f32 %v3297_v56, %v2368_v24  ;;  %v2680_v56 = vld [vmem:[%s6967_s7 + $0x2e8] sm:$0xff]  ;;  %v2678_v24 = vld [vmem:[%s6967_s7 + $0x2d8] sm:$0xff] }
 0x2bf   :  { %v2377_v53 = vmax.f32 %v2376_v0, 0.0  ;;  %v2677_v0 = vld [vmem:[%s6967_s7 + $0x2d0] sm:$0xff] }
 0x2c1   :  { %2508 = vmatmul.mubr.f32.vlgmr.msra.gmra.mxu1 %v2377_v53  ;;  %4027 = vmatmul.mubr.f32.vlgmr.msra.gmra.mxu0 %v2377_v53  ;;  %v2675_v53 = vld [vmem:[%s6967_s7 + $0x2c0] sm:$0xff] }
 0x2c2   :  { %2749 = vmatpush1.msra.mxu1 %v2632_v22  ;;  %2820 = vmatpush1.msra.mxu0 %v2728_v55  ;;  %v2674_v22 = vld [vmem:[%s6967_s7 + $0x2b8] sm:$0xff]  ;;  %v2672_v55 = vld [vmem:[%s6967_s7 + $0x2a8] sm:$0xff] }
 0x2c3   :  { %2750 = vmatprep.subr.mxu1 %v2630_v14  ;;  %2821 = vmatprep.subr.mxu0 %v2726_v30  ;;  %v2671_v14 = vld [vmem:[%s6967_s7 + $0x2a0] sm:$0xff]  ;;  %v2669_v30 = vld [vmem:[%s6967_s7 + $0x290] sm:$0xff] }
 0x2c4   :  { %2751 = vmatpush1.msra.mxu1 %v2629_v27  ;;  %2822 = vmatpush1.msra.mxu0 %v2725_v10  ;;  %v2668_v27 = vld [vmem:[%s6967_s7 + $0x288] sm:$0xff]  ;;  %v2666_v10 = vld [vmem:[%s6967_s7 + $0x278] sm:$0xff] }
 0x2c5   :  { %2752 = vmatprep.subr.mxu1 %v2627_v13  ;;  %2823 = vmatprep.subr.mxu0 %v2723_v3  ;;  %v2665_v13 = vld [vmem:[%s6967_s7 + $0x270] sm:$0xff]  ;;  %v2663_v3 = vld [vmem:[%s6967_s7 + $0x260] sm:$0xff] }
 0x2c6   :  { %2753 = vmatpush1.msra.mxu1 %v2626_v60  ;;  %2824 = vmatpush1.msra.mxu0 %v2722_v54  ;;  %v2662_v60 = vld [vmem:[%s6967_s7 + $0x258] sm:$0xff]  ;;  %v2660_v54 = vld [vmem:[%s6967_s7 + $0x248] sm:$0xff] }
 0x2c7   :  { %2754 = vmatprep.subr.mxu1 %v2624_v19  ;;  %2825 = vmatprep.subr.mxu0 %v2720_v26  ;;  %v2659_v19 = vld [vmem:[%s6967_s7 + $0x240] sm:$0xff]  ;;  %v2657_v26 = vld [vmem:[%s6967_s7 + $0x230] sm:$0xff] }
 0x2c8   :  { %2755 = vmatpush1.msra.mxu1 %v2623_v7  ;;  %2826 = vmatpush1.msra.mxu0 %v2719_v49  ;;  %v2656_v7 = vld [vmem:[%s6967_s7 + $0x228] sm:$0xff]  ;;  %v2654_v49 = vld [vmem:[%s6967_s7 + $0x218] sm:$0xff] }
 0x2c9   :  { %2756 = vmatprep.subr.mxu1 %v2621_v6  ;;  %2827 = vmatprep.subr.mxu0 %v2717_v32  ;;  %v2653_v6 = vld [vmem:[%s6967_s7 + $0x210] sm:$0xff]  ;;  %v2651_v32 = vld [vmem:[%s6967_s7 + $0x200] sm:$0xff] }
 0x2ca   :  { %2757 = vmatpush1.msra.mxu1 %v2620_v28  ;;  %2828 = vmatpush1.msra.mxu0 %v2716_v5  ;;  %v2650_v28 = vld [vmem:[%s6967_s7 + $0x1f8] sm:$0xff]  ;;  %v2648_v5 = vld [vmem:[%s6967_s7 + $0x1e8] sm:$0xff] }
 0x2cb   :  { %2758 = vmatprep.subr.mxu1 %v2618_v9  ;;  %2829 = vmatprep.subr.mxu0 %v2714_v8  ;;  %v2647_v9 = vld [vmem:[%s6967_s7 + $0x1e0] sm:$0xff]  ;;  %v2645_v8 = vld [vmem:[%s6967_s7 + $0x1d0] sm:$0xff] }
 0x2cc   :  { %2759 = vmatpush1.msra.mxu1 %v2617_v18  ;;  %2830 = vmatpush1.msra.mxu0 %v2713_v4  ;;  %v2644_v18 = vld [vmem:[%s6967_s7 + $0x1c8] sm:$0xff]  ;;  %v2687_v4 = vld [vmem:[%s6967_s7 + $0x320] sm:$0xff] }
 0x2cd   :  { %2760 = vmatprep.subr.mxu1 %v2615_v2  ;;  %2831 = vmatprep.subr.mxu0 %v2711_v43  ;;  %v2642_v2 = vld [vmem:[%s6967_s7 + $0x1b8] sm:$0xff] }
 0x2ce   :  { %2761 = vmatpush1.msra.mxu1 %v2614_v12  ;;  %2832 = vmatpush1.msra.mxu0 %v2710_v61  ;;  %v2686_v43 = vld [vmem:[%s6967_s7 + $0x318] sm:$0xff]  ;;  %v2641_v12 = vld [vmem:[%s6967_s7 + $0x1b0] sm:$0xff]  ;;  %v2684_v61 = vld [vmem:[%s6967_s7 + $0x308] sm:$0xff] }
 0x2cf   :  { %2762 = vmatprep.subr.mxu1 %v2612_v39  ;;  %2833 = vmatprep.subr.mxu0 %v2708_v48  ;;  %v2639_v39 = vld [vmem:[%s6967_s7 + $0x1a0] sm:$0xff] }
 0x2d0   :  { %2763 = vmatpush1.msra.mxu1 %v2611_v11  ;;  %2834 = vmatpush1.msra.mxu0 %v2707_v52  ;;  %v2683_v48 = vld [vmem:[%s6967_s7 + $0x300] sm:$0xff]  ;;  %v2638_v11 = vld [vmem:[%s6967_s7 + $0x198] sm:$0xff] }
 0x2d1   :  { %2764 = vmatprep.subr.mxu1 %v2609_v37  ;;  %2835 = vmatprep.subr.mxu0 %v2705_v16  ;;  %v2682_v52 = vld [vmem:[%s6967_s7 + $0x2f8] sm:$0xff]  ;;  %v2636_v37 = vld [vmem:[%s6967_s7 + $0x188] sm:$0xff]  ;;  %v2635_v16 = vld [vmem:[%s6967_s7 + $0x180] sm:$0xff] }
 0x2d2   :  { %2765 = vmatpush1.msra.mxu1 %v2608_v33  ;;  %2836 = vmatpush1.msra.mxu0 %v2704_v46  ;;  %v2428_v33 = vlaneseq }
 0x2d3   :  { %2766 = vmatprep.subr.mxu1 %v2606_v17  ;;  %2837 = vmatprep.subr.mxu0 %v2702_v50  ;;  %v2426_v50 = vld [vmem:[%s6969_s6] sm:$0x7] }
 0x2d4   :  { %2767 = vmatpush1.msra.mxu1 %v2605_v45  ;;  %2838 = vmatpush1.msra.mxu0 %v2701_v23  ;;  %v6599_v46 = vshrl.u32 %v2428_v33, 7  ;;  %v2589_v33 = vld [vmem:[%s6967_s7 + $0x10] sm:$0xff] }
 0x2d5   :  { %2768 = vmatprep.subr.mxu1 %v2603_v35  ;;  %2839 = vmatprep.subr.mxu0 %v2699_v44 }
 0x2d6   :  { %2769 = vmatpush1.msra.mxu1 %v2602_v42  ;;  %2840 = vmatpush1.msra.mxu0 %v2698_v31  ;;  %v2438_v17 = vsub.s32 2, %v6599_v46  ;;  %v2430_v45 = vsub.s32 0, %v6599_v46  ;;  %v2434_v23 = vsub.s32 1, %v6599_v46 }
 0x2d7   :  { %2770 = vmatprep.subr.mxu1 %v2600_v29  ;;  %2841 = vmatprep.subr.mxu0 %v2696_v34 }
 0x2d8   :  { %2771 = vmatpush1.msra.mxu1 %v2599_v20  ;;  %2842 = vmatpush1.msra.mxu0 %v2695_v47  ;;  %v2439_v35 = vrot.slane %v2426_v50, %v2438_v17  ;;  %v2431_v44 = vrot.slane %v2426_v50, %v2430_v45  ;;  %v2435_v42 = vrot.slane %v2426_v50, %v2434_v23  ;;  %v2688_v50 = vld [vmem:[%s6967_s7 + $0x328] sm:$0xff] }
 0x2d9   :  { %2772 = vmatprep.subr.mxu1 %v2597_v36  ;;  %2843 = vmatprep.subr.mxu0 %v2693_v25 }
 0x2da   :  { %2773 = vmatpush1.msra.mxu1 %v2596_v62  ;;  %2844 = vmatpush1.msra.mxu0 %v2692_v58  ;;  %v2634_v58 = vld [vmem:[%s6967_s7 + $0x178] sm:$0xff] }
 0x2db   :  { %2774 = vmatprep.subr.mxu1 %v2594_v57  ;;  %2845 = vmatprep.subr.mxu0 %v2690_v41  ;;  %v2679_v57 = vld [vmem:[%s6967_s7 + $0x2e0] sm:$0xff] }
 0x2dc   :  { %2775 = vmatpush1.msra.mxu1 %v2593_v40  ;;  %2846 = vmatpush1.msra.mxu0 %v2689_v59  ;;  %v2631_v40 = vld [vmem:[%s6967_s7 + $0x160] sm:$0xff]  ;;  %v2676_v59 = vld [vmem:[%s6967_s7 + $0x2c8] sm:$0xff] }
 0x2dd   :  { %2776 = vmatprep.subr.mxu1 %v2591_v15  ;;  %2883 = vmatprep.mubr.f32.mxu0 %v4101_v1 }
 0x2de   :  { %2777 = vmatpush1.msra.mxu1 %v2590_v21  ;;  %2847 = vmatprep.subr.mxu0 %v2687_v4  ;;  %v2730_v21 = vld [vmem:[%s6967_s7 + $0x478] sm:$0xff] }
 0x2df   :  { %2778 = vmatprep.subr.mxu1 %v2588_v38  ;;  %2848 = vmatpush1.msra.mxu0 %v2686_v43  ;;  %v2628_v38 = vld [vmem:[%s6967_s7 + $0x148] sm:$0xff]  ;;  %v2646_v4 = vld [vmem:[%s6967_s7 + $0x1d8] sm:$0xff] }
 0x2e0   :  { %2779 = vmatpush1.msra.mxu1 %v2587_v63  ;;  %2849 = vmatprep.subr.mxu0 %v2684_v61  ;;  %v2673_v63 = vld [vmem:[%s6967_s7 + $0x2b0] sm:$0xff]  ;;  %v2598_v43 = vld [vmem:[%s6967_s7 + $0x58] sm:$0xff] }
 0x2e1   :  { %2780 = vmatprep.subr.mxu1 %v2681_v51  ;;  %2850 = vmatpush1.msra.mxu0 %v2683_v48  ;;  %v2727_v51 = vld [vmem:[%s6967_s7 + $0x460] sm:$0xff]  ;;  %v2697_v61 = vld [vmem:[%s6967_s7 + $0x370] sm:$0xff]  ;;  %v2640_v48 = vld [vmem:[%s6967_s7 + $0x1a8] sm:$0xff] }
 0x2e2   :  { %2781 = vmatpush2.msra.mxu1 %v2680_v56  ;;  %3793 = vmatprep.subr.mxu0 %v2682_v52  ;;  %v2625_v56 = vld [vmem:[%s6967_s7 + $0x130] sm:$0xff]  ;;  %v2592_v52 = vld [vmem:[%s6967_s7 + $0x28] sm:$0xff] }
 0x2e3   :  { %2782 = vmatprep.subr.mxu1 %v2678_v24  ;;  %v2670_v24 = vld [vmem:[%s6967_s7 + $0x298] sm:$0xff] }
 0x2e4   :  { %2783 = vmatpush2.msra.mxu1 %v2677_v0  ;;  %v2724_v0 = vld [vmem:[%s6967_s7 + $0x448] sm:$0xff] }
 0x2e5   :  { %2784 = vmatprep.subr.mxu1 %v2675_v53  ;;  %v2622_v53 = vld [vmem:[%s6967_s7 + $0x118] sm:$0xff] }
 0x2e6   :  { %2785 = vmatpush2.msra.mxu1 %v2674_v22  ;;  %v2667_v22 = vld [vmem:[%s6967_s7 + $0x280] sm:$0xff] }
 0x2e7   :  { %2786 = vmatprep.subr.mxu1 %v2672_v55  ;;  %v2721_v55 = vld [vmem:[%s6967_s7 + $0x430] sm:$0xff] }
 0x2e8   :  { %2787 = vmatpush2.msra.mxu1 %v2671_v14  ;;  %v2619_v14 = vld [vmem:[%s6967_s7 + $0x100] sm:$0xff] }
 0x2e9   :  { %2788 = vmatprep.subr.mxu1 %v2669_v30  ;;  %v2664_v30 = vld [vmem:[%s6967_s7 + $0x268] sm:$0xff] }
 0x2ea   :  { %2789 = vmatpush2.msra.mxu1 %v2668_v27  ;;  %v2718_v27 = vld [vmem:[%s6967_s7 + $0x418] sm:$0xff] }
 0x2eb   :  { %2790 = vmatprep.subr.mxu1 %v2666_v10  ;;  %v2616_v10 = vld [vmem:[%s6967_s7 + $0xe8] sm:$0xff] }
 0x2ec   :  { %2791 = vmatpush2.msra.mxu1 %v2665_v13  ;;  %v2661_v13 = vld [vmem:[%s6967_s7 + $0x250] sm:$0xff] }
 0x2ed   :  { %2792 = vmatprep.subr.mxu1 %v2663_v3  ;;  %v2715_v3 = vld [vmem:[%s6967_s7 + $0x400] sm:$0xff] }
 0x2ee   :  { %2793 = vmatpush2.msra.mxu1 %v2662_v60  ;;  %v2613_v60 = vld [vmem:[%s6967_s7 + $0xd0] sm:$0xff] }
 0x2ef   :  { %2794 = vmatprep.subr.mxu1 %v2660_v54  ;;  %v2658_v54 = vld [vmem:[%s6967_s7 + $0x238] sm:$0xff] }
 0x2f0   :  { %2795 = vmatpush2.msra.mxu1 %v2659_v19  ;;  %v2712_v19 = vld [vmem:[%s6967_s7 + $0x3e8] sm:$0xff] }
 0x2f1   :  { %2796 = vmatprep.subr.mxu1 %v2657_v26  ;;  %v2610_v26 = vld [vmem:[%s6967_s7 + $0xb8] sm:$0xff] }
 0x2f2   :  { %2797 = vmatpush2.msra.mxu1 %v2656_v7  ;;  %v2655_v7 = vld [vmem:[%s6967_s7 + $0x220] sm:$0xff] }
 0x2f3   :  { %2798 = vmatprep.subr.mxu1 %v2654_v49  ;;  %v2709_v49 = vld [vmem:[%s6967_s7 + $0x3d0] sm:$0xff] }
 0x2f4   :  { %2799 = vmatpush2.msra.mxu1 %v2653_v6  ;;  %v2607_v6 = vld [vmem:[%s6967_s7 + $0xa0] sm:$0xff] }
 0x2f5   :  { %2800 = vmatprep.subr.mxu1 %v2651_v32  ;;  %v2652_v32 = vld [vmem:[%s6967_s7 + $0x208] sm:$0xff] }
 0x2f6   :  { %2801 = vmatpush2.msra.mxu1 %v2650_v28  ;;  %v2706_v28 = vld [vmem:[%s6967_s7 + $0x3b8] sm:$0xff] }
 0x2f7   :  { %2802 = vmatprep.subr.mxu1 %v2648_v5  ;;  %v2604_v5 = vld [vmem:[%s6967_s7 + $0x88] sm:$0xff] }
 0x2f8   :  { %2803 = vmatpush2.msra.mxu1 %v2647_v9  ;;  %v2649_v9 = vld [vmem:[%s6967_s7 + $0x1f0] sm:$0xff] }
 0x2f9   :  { %2804 = vmatprep.subr.mxu1 %v2645_v8  ;;  %v2703_v8 = vld [vmem:[%s6967_s7 + $0x3a0] sm:$0xff] }
 0x2fa   :  { %2805 = vmatpush2.msra.mxu1 %v2644_v18  ;;  %v2601_v18 = vld [vmem:[%s6967_s7 + $0x70] sm:$0xff] }
 0x2fb   :  { %2806 = vmatprep.subr.mxu1 %v2642_v2  ;;  %v2700_v2 = vld [vmem:[%s6967_s7 + $0x388] sm:$0xff] }
 0x2fc   :  { %2807 = vmatpush2.msra.mxu1 %v2641_v12  ;;  %v2643_v12 = vld [vmem:[%s6967_s7 + $0x1c0] sm:$0xff] }
 0x2fd   :  { %2808 = vmatprep.subr.mxu1 %v2639_v39  ;;  %v2595_v39 = vld [vmem:[%s6967_s7 + $0x40] sm:$0xff] }
 0x2fe   :  { %2809 = vmatpush2.msra.mxu1 %v2638_v11  ;;  %v2694_v11 = vld [vmem:[%s6967_s7 + $0x358] sm:$0xff] }
 0x2ff   :  { %2810 = vmatprep.subr.mxu1 %v2636_v37  ;;  %v2637_v37 = vld [vmem:[%s6967_s7 + $0x190] sm:$0xff] }
 0x300   :  { %2811 = vmatpush2.msra.mxu1 %v2635_v16  ;;  %v2691_v16 = vld [vmem:[%s6967_s7 + $0x340] sm:$0xff] }
 0x301   :  { %4029 = vmatprep.subr.mxu1 %v4101_v1 }
 0x381   :  { %v2509_v31 = vpop.f32.mrf.mxu1  ;;  %v2580_v29 = vpop.f32.mrf.mxu0 }
 0x382   :  { %v6613_v34 = vadd.f32 %v2580_v29, %v2439_v35  ;;  %v6615_v36 = vadd.f32 %v2509_v31, %v2431_v44  ;;  %v3064_v35 = vld [vmem:[%s6970_s9 + $0xf8] sm:$0xff]  ;;  %v2685_v44 = vld [vmem:[%s6967_s7 + $0x310] sm:$0xff] }
 0x383   :  { %v2511_v20 = vpop.f32.mrf.mxu1  ;;  %v4028_v47 = vpop.f32.mrf.mxu0  ;;  %v3063_v31 = vld [vmem:[%s6970_s9 + $0xf0] sm:$0xff] }
 0x384   :  { %v2586_v25 = vmax.f32 %v6613_v34, 0.0  ;;  %v2512_v62 = vadd.f32 %v2511_v20, %v2435_v42  ;;  %v2584_v15 = vmax.f32 %v6615_v36, 0.0  ;;  %v3048_v42 = vld [vmem:[%s6970_s9 + $0x78] sm:$0xff]  ;;  %v3047_v29 = vld [vmem:[%s6970_s9 + $0x70] sm:$0xff]  ;;  %v3062_v20 = vld [vmem:[%s6970_s9 + $0xe8] sm:$0xff] }
 0x385   :  { %v3046_v47 = vld [vmem:[%s6970_s9 + $0x68] sm:$0xff]  ;;  %v3061_v36 = vld [vmem:[%s6970_s9 + $0xe0] sm:$0xff]  ;;  %v3060_v34 = vld [vmem:[%s6970_s9 + $0xd8] sm:$0xff] }
 0x386   :  { %v2585_v41 = vmax.f32 %v2512_v62, 0.0  ;;  %2884 = vmatmul.mubr.f32.vlgmr.msra.gmra.mxu0 %v2586_v25  ;;  %v3045_v62 = vld [vmem:[%s6970_s9 + $0x60] sm:$0xff] }
 0x387   :  { %3794 = vmatpush3.msra.mxu0 %v2634_v58  ;;  %v3059_v58 = vld [vmem:[%s6970_s9 + $0xd0] sm:$0xff] }
 0x388   :  { %3795 = vmatprep.subr.mxu0 %v2679_v57  ;;  %2812 = vmatprep.mubr.f32.mxu1 %v2585_v41  ;;  %v3043_v57 = vld [vmem:[%s6970_s9 + $0x50] sm:$0xff] }
 0x389   :  { %3796 = vmatpush3.msra.mxu0 %v2631_v40  ;;  %2954 = vmatprep.mubr.f32.mxu0 %v2585_v41  ;;  %v3058_v41 = vld [vmem:[%s6970_s9 + $0xc8] sm:$0xff] }
 0x38a   :  { %2813 = vmatmul.mubr.f32.vlgmr.msra.gmra.mxu1 %v2584_v15  ;;  %3797 = vmatprep.subr.mxu0 %v2676_v59  ;;  %v3042_v40 = vld [vmem:[%s6970_s9 + $0x48] sm:$0xff]  ;;  %v3057_v59 = vld [vmem:[%s6970_s9 + $0xc0] sm:$0xff] }
 0x38b   :  { %4030 = vmatpush3.msra.mxu1 %v2730_v21  ;;  %3798 = vmatpush3.msra.mxu0 %v2628_v38  ;;  %v3056_v21 = vld [vmem:[%s6970_s9 + $0xb8] sm:$0xff] }
 0x38c   :  { %4031 = vmatprep.subr.mxu1 %v4101_v1  ;;  %3799 = vmatprep.subr.mxu0 %v2673_v63  ;;  %v3040_v38 = vld [vmem:[%s6970_s9 + $0x38] sm:$0xff]  ;;  %v3055_v63 = vld [vmem:[%s6970_s9 + $0xb0] sm:$0xff] }
 0x38d   :  { %4032 = vmatpush3.msra.mxu1 %v2727_v51  ;;  %3800 = vmatpush3.msra.mxu0 %v2625_v56  ;;  %v3039_v51 = vld [vmem:[%s6970_s9 + $0x30] sm:$0xff]  ;;  %v3054_v56 = vld [vmem:[%s6970_s9 + $0xa8] sm:$0xff] }
 0x38e   :  { %4033 = vmatprep.subr.mxu1 %v4101_v1  ;;  %3801 = vmatprep.subr.mxu0 %v2670_v24  ;;  %v3038_v24 = vld [vmem:[%s6970_s9 + $0x28] sm:$0xff] }
 0x38f   :  { %4034 = vmatpush3.msra.mxu1 %v2724_v0  ;;  %3802 = vmatpush3.msra.mxu0 %v2622_v53  ;;  %v3053_v0 = vld [vmem:[%s6970_s9 + $0xa0] sm:$0xff] }
 0x390   :  { %4035 = vmatprep.subr.mxu1 %v4101_v1  ;;  %3803 = vmatprep.subr.mxu0 %v2667_v22  ;;  %v3037_v53 = vld [vmem:[%s6970_s9 + $0x20] sm:$0xff]  ;;  %v3052_v22 = vld [vmem:[%s6970_s9 + $0x98] sm:$0xff] }
 0x391   :  { %4036 = vmatpush3.msra.mxu1 %v2721_v55  ;;  %3804 = vmatpush3.msra.mxu0 %v2619_v14  ;;  %v3036_v55 = vld [vmem:[%s6970_s9 + $0x18] sm:$0xff]  ;;  %v3051_v14 = vld [vmem:[%s6970_s9 + $0x90] sm:$0xff] }
 0x392   :  { %4037 = vmatprep.subr.mxu1 %v4101_v1  ;;  %3805 = vmatprep.subr.mxu0 %v2664_v30  ;;  %v3035_v30 = vld [vmem:[%s6970_s9 + $0x10] sm:$0xff] }
 0x393   :  { %4038 = vmatpush3.msra.mxu1 %v2718_v27  ;;  %3806 = vmatpush3.msra.mxu0 %v2616_v10  ;;  %v3050_v27 = vld [vmem:[%s6970_s9 + $0x88] sm:$0xff]  ;;  %v3080_v10 = vld [vmem:[%s6970_s9 + $0x178] sm:$0xff] }
 0x394   :  { %4039 = vmatprep.subr.mxu1 %v4101_v1  ;;  %3807 = vmatprep.subr.mxu0 %v2661_v13  ;;  %v3034_v13 = vld [vmem:[%s6970_s9 + $0x8] sm:$0xff] }
 0x395   :  { %4040 = vmatpush3.msra.mxu1 %v2715_v3  ;;  %3808 = vmatpush3.msra.mxu0 %v2613_v60  ;;  %v3079_v3 = vld [vmem:[%s6970_s9 + $0x170] sm:$0xff]  ;;  %v3049_v60 = vld [vmem:[%s6970_s9 + $0x80] sm:$0xff] }
 0x396   :  { %4041 = vmatprep.subr.mxu1 %v4101_v1  ;;  %3809 = vmatprep.subr.mxu0 %v2658_v54  ;;  %v3078_v54 = vld [vmem:[%s6970_s9 + $0x168] sm:$0xff] }
 0x397   :  { %4042 = vmatpush3.msra.mxu1 %v2712_v19  ;;  %3810 = vmatpush3.msra.mxu0 %v2610_v26  ;;  %v3033_v19 = vld [vmem:[%s6970_s9] sm:$0xff] }
 0x398   :  { %4043 = vmatprep.subr.mxu1 %v4101_v1  ;;  %3811 = vmatprep.subr.mxu0 %v2655_v7  ;;  %v3077_v26 = vld [vmem:[%s6970_s9 + $0x160] sm:$0xff]  ;;  %v3076_v7 = vld [vmem:[%s6970_s9 + $0x158] sm:$0xff] }
 0x399   :  { %4044 = vmatpush3.msra.mxu1 %v2709_v49  ;;  %3812 = vmatpush3.msra.mxu0 %v2607_v6  ;;  %v3075_v49 = vld [vmem:[%s6970_s9 + $0x150] sm:$0xff]  ;;  %v3074_v6 = vld [vmem:[%s6970_s9 + $0x148] sm:$0xff] }
 0x39a   :  { %4045 = vmatprep.subr.mxu1 %v4101_v1  ;;  %3813 = vmatprep.subr.mxu0 %v2652_v32  ;;  %v3073_v32 = vld [vmem:[%s6970_s9 + $0x140] sm:$0xff] }
 0x39b   :  { %4046 = vmatpush3.msra.mxu1 %v2706_v28  ;;  %3814 = vmatpush3.msra.mxu0 %v2604_v5  ;;  %v3072_v28 = vld [vmem:[%s6970_s9 + $0x138] sm:$0xff]  ;;  %v3071_v5 = vld [vmem:[%s6970_s9 + $0x130] sm:$0xff] }
 0x39c   :  { %4047 = vmatprep.subr.mxu1 %v4101_v1  ;;  %3815 = vmatprep.subr.mxu0 %v2649_v9  ;;  %v3070_v9 = vld [vmem:[%s6970_s9 + $0x128] sm:$0xff] }
 0x39d   :  { %4048 = vmatpush3.msra.mxu1 %v2703_v8  ;;  %3816 = vmatpush3.msra.mxu0 %v2601_v18  ;;  %v3069_v8 = vld [vmem:[%s6970_s9 + $0x120] sm:$0xff]  ;;  %v3068_v18 = vld [vmem:[%s6970_s9 + $0x118] sm:$0xff] }
 0x39e   :  { %4049 = vmatprep.subr.mxu1 %v4101_v1  ;;  %3817 = vmatprep.subr.mxu0 %v2646_v4  ;;  %v3067_v4 = vld [vmem:[%s6970_s9 + $0x110] sm:$0xff] }
 0x39f   :  { %4050 = vmatpush3.msra.mxu1 %v2700_v2  ;;  %3818 = vmatpush3.msra.mxu0 %v2598_v43  ;;  %v3066_v2 = vld [vmem:[%s6970_s9 + $0x108] sm:$0xff]  ;;  %v3065_v43 = vld [vmem:[%s6970_s9 + $0x100] sm:$0xff] }
 0x3a0   :  { %4051 = vmatprep.subr.mxu1 %v4101_v1  ;;  %3819 = vmatprep.subr.mxu0 %v2643_v12  ;;  %v2731_v12 = vld [vmem:[%s6971_s8] sm:$0x7] }
 0x3a1   :  { %4052 = vmatpush3.msra.mxu1 %v2697_v61  ;;  %3820 = vmatpush3.msra.mxu0 %v2595_v39  ;;  %v2736_v61 = vrot.slane %v2731_v12, %v2430_v45  ;;  %v2740_v39 = vrot.slane %v2731_v12, %v2434_v23 }
 0x3a2   :  { %4053 = vmatprep.subr.mxu1 %v4101_v1  ;;  %3821 = vmatprep.subr.mxu0 %v2640_v48 }
 0x3a3   :  { %4054 = vmatpush3.msra.mxu1 %v2694_v11  ;;  %3822 = vmatpush3.msra.mxu0 %v2592_v52 }
 0x3a4   :  { %4055 = vmatprep.subr.mxu1 %v4101_v1  ;;  %3823 = vmatprep.subr.mxu0 %v2637_v37 }
 0x3a5   :  { %4056 = vmatpush3.msra.mxu1 %v2691_v16  ;;  %3824 = vmatpush3.msra.mxu0 %v2589_v33 }
 0x3a6   :  { %4057 = vmatprep.subr.mxu1 %v4101_v1  ;;  %2955 = vmatmul.mubr.f32.vlgmr.msra.gmra.mxu0 %v2584_v15  ;;  %v3041_v15 = vld [vmem:[%s6970_s9 + $0x40] sm:$0xff] }
 0x3a7   :  { %4058 = vmatpush3.msra.mxu1 %v2688_v50  ;;  %4061 = vmatprep.mubr.msk.f32.mxu1 %vm4102_vm11, %v4101_v1 }
 0x3a8   :  { %4059 = vmatprep.subr.mxu1 %v4101_v1  ;;  %3845 = vmatprep.subr.mxu0 %v3064_v35 }
 0x3a9   :  { %4060 = vmatpush3.msra.mxu1 %v2685_v44  ;;  %3846 = vmatpush3.msra.mxu0 %v3048_v42 }
 0x3aa   :  { %4062 = vmatmul.mubr.f32.vlgmr.msra.gmra.mxu1 %v2586_v25  ;;  %3847 = vmatprep.subr.mxu0 %v3063_v31  ;;  %v3044_v25 = vld [vmem:[%s6970_s9 + $0x58] sm:$0xff]  ;;  %v2744_v31 = vrot.slane %v2731_v12, %v2438_v17 }
 0x3ab   :  { %3848 = vmatpush3.msra.mxu0 %v3047_v29  ;;  %4064 = vmatprep.subr.mxu1 %v4101_v1 }
 0x3ac   :  { %3849 = vmatprep.subr.mxu0 %v3062_v20  ;;  %4096 = vmatprep.mubr.msk.f32.mxu1 %vm4102_vm11, %v4101_v1 }
 0x3ad   :  { %3850 = vmatpush3.msra.mxu0 %v3046_v47  ;;  %4065 = vmatpush3.msra.mxu1 %v3080_v10 }
 0x3ae   :  { %3851 = vmatprep.subr.mxu0 %v3061_v36  ;;  %4066 = vmatprep.subr.mxu1 %v4101_v1 }
 0x3af   :  { %3852 = vmatpush3.msra.mxu0 %v3045_v62  ;;  %4067 = vmatpush3.msra.mxu1 %v3079_v3 }
 0x3b0   :  { %3853 = vmatprep.subr.mxu0 %v3060_v34  ;;  %4068 = vmatprep.subr.mxu1 %v4101_v1 }
 0x3b1   :  { %3854 = vmatpush3.msra.mxu0 %v3044_v25  ;;  %4069 = vmatpush3.msra.mxu1 %v3078_v54 }
 0x3b2   :  { %3855 = vmatprep.subr.mxu0 %v3059_v58  ;;  %4070 = vmatprep.subr.mxu1 %v4101_v1 }
 0x3b3   :  { %3856 = vmatpush3.msra.mxu0 %v3043_v57  ;;  %4071 = vmatpush3.msra.mxu1 %v3077_v26  ;;  %v3298_v57 = vld [vmem:[%s6972_s10] ss:$0 sm:$0xff] }
 0x3b4   :  { %3857 = vmatprep.subr.mxu0 %v3058_v41  ;;  %4072 = vmatprep.subr.mxu1 %v4101_v1 }
 0x3b5   :  { %3858 = vmatpush3.msra.mxu0 %v3042_v40  ;;  %4073 = vmatpush3.msra.mxu1 %v3076_v7 }
 0x3b6   :  { %3859 = vmatprep.subr.mxu0 %v3057_v59  ;;  %4074 = vmatprep.subr.mxu1 %v4101_v1 }
 0x3b7   :  { %3860 = vmatpush3.msra.mxu0 %v3041_v15  ;;  %4075 = vmatpush3.msra.mxu1 %v3075_v49 }
 0x3b8   :  { %3861 = vmatprep.subr.mxu0 %v3056_v21  ;;  %4076 = vmatprep.subr.mxu1 %v4101_v1 }
 0x3b9   :  { %3862 = vmatpush3.msra.mxu0 %v3040_v38  ;;  %4077 = vmatpush3.msra.mxu1 %v3074_v6 }
 0x3ba   :  { %3863 = vmatprep.subr.mxu0 %v3055_v63  ;;  %4078 = vmatprep.subr.mxu1 %v4101_v1 }
 0x3bb   :  { %3864 = vmatpush3.msra.mxu0 %v3039_v51  ;;  %4079 = vmatpush3.msra.mxu1 %v3073_v32 }
 0x3bc   :  { %3865 = vmatprep.subr.mxu0 %v3054_v56  ;;  %4080 = vmatprep.subr.mxu1 %v4101_v1 }
 0x3bd   :  { %3866 = vmatpush3.msra.mxu0 %v3038_v24  ;;  %4081 = vmatpush3.msra.mxu1 %v3072_v28 }
 0x3be   :  { %3867 = vmatprep.subr.mxu0 %v3053_v0  ;;  %4082 = vmatprep.subr.mxu1 %v4101_v1 }
 0x3bf   :  { %3868 = vmatpush3.msra.mxu0 %v3037_v53  ;;  %4083 = vmatpush3.msra.mxu1 %v3071_v5 }
 0x3c0   :  { %3869 = vmatprep.subr.mxu0 %v3052_v22  ;;  %4084 = vmatprep.subr.mxu1 %v4101_v1 }
 0x3c1   :  { %3870 = vmatpush3.msra.mxu0 %v3036_v55  ;;  %4085 = vmatpush3.msra.mxu1 %v3070_v9 }
 0x3c2   :  { %3871 = vmatprep.subr.mxu0 %v3051_v14  ;;  %4086 = vmatprep.subr.mxu1 %v4101_v1 }
 0x3c3   :  { %3872 = vmatpush3.msra.mxu0 %v3035_v30  ;;  %4087 = vmatpush3.msra.mxu1 %v3069_v8 }
 0x3c4   :  { %3873 = vmatprep.subr.mxu0 %v3050_v27  ;;  %4088 = vmatprep.subr.mxu1 %v4101_v1 }
 0x3c5   :  { %3874 = vmatpush3.msra.mxu0 %v3034_v13  ;;  %4089 = vmatpush3.msra.mxu1 %v3068_v18 }
 0x3c6   :  { %3875 = vmatprep.subr.mxu0 %v3049_v60  ;;  %4090 = vmatprep.subr.mxu1 %v4101_v1 }
 0x3c7   :  { %3876 = vmatpush3.msra.mxu0 %v3033_v19  ;;  %4091 = vmatpush3.msra.mxu1 %v3067_v4 }
 0x3c8   :  { %4092 = vmatprep.subr.mxu1 %v4101_v1 }
 0x3c9   :  { %4093 = vmatpush3.msra.mxu1 %v3066_v2 }
 0x3ca   :  { %4094 = vmatprep.subr.mxu1 %v4101_v1 }
 0x3cb   :  { %4095 = vmatpush3.msra.mxu1 %v3065_v43 }
 0x446   :  { %v2885_v48 = vpop.f32.mrf.mxu0 }
 0x448   :  { %v2887_v33 = vpop.f32.mrf.mxu0 }
 0x44a   :  { %v2814_v11 = vpop.f32.mrf.mxu1 }
 0x44b   :  { %v2815_v52 = vadd.f32 %v2814_v11, %v2736_v61 }
 0x44c   :  { %v2816_v37 = vpop.f32.mrf.mxu1 }
 0x44d   :  { %v2817_v16 = vadd.f32 %v2816_v37, %v2740_v39  ;;  %v2886_v50 = vadd.f32 %v2885_v48, %v2815_v52 }
 0x44f   :  { %v2888_v35 = vadd.f32 %v2887_v33, %v2817_v16  ;;  %v3030_v44 = vmax.f32 %v2886_v50, 0.0 }
 0x451   :  { %v3031_v1 = vmax.f32 %v2888_v35, 0.0 }
 0x453   :  { %3152 = vmatprep.mubr.f32.mxu0 %v3031_v1 }
 0x454   :  { %3153 = vmatmul.mubr.f32.vlgmr.msra.gmra.mxu0 %v3030_v44 }
 0x466   :  { %v3825_v42 = vpop.f32.mrf.mxu0 }
 0x468   :  { %v3826_v45 = vpop.f32.mrf.mxu0 }
 0x469   :  { %v3827_v29 = vadd.f32 %v3826_v45, %v3825_v42 }
 0x46a   :  { %v3026_v20 = vpop.f32.mrf.mxu1 }
 0x46b   :  { %v2957_v23 = vadd.f32 %v3827_v29, %v2744_v31 }
 0x46c   :  { %v4063_v47 = vpop.f32.mrf.mxu1 }
 0x46d   :  { %v3027_v36 = vadd.f32 %v3026_v20, %v2957_v23 }
 0x46f   :  { %v3032_v62 = vmax.f32 %v3027_v36, 0.0 }
 0x471   :  { %4097 = vmatmul.mubr.f32.vlgmr.msra.gmra.mxu1 %v3032_v62 }
 0x514   :  { %v3877_v34 = vpop.f32.mrf.mxu0 }
 0x516   :  { %v3878_v25 = vpop.f32.mrf.mxu0 }
 0x517   :  { %v3879_v58 = vadd.f32 %v3878_v25, %v3877_v34 }
 0x519   :  { %v3155_v41 = vadd.f32 %v3879_v58, %v3298_v57 }
 0x531   :  { %v3224_v40 = vpop.f32.mrf.mxu1 }
 0x532   :  { %v3225_v59 = vadd.f32 %v3224_v40, %v3155_v41 }
 0x533   :  { %v4098_v46 = vpop.f32.mrf.mxu1 }
 0x534   :  { %3228 = vst [vmem:[%s6973_s11] sm:$0x3] %v3225_v59 }

</bundles_post_ra>
